<compile_context>
chip_gen: v7x
topology: tpu7x:2x2x1
jax: 0.10.0
libtpu: 0.0.40
codegen_flags: <defaults>
</compile_context>

<pallas_src>
import math

import jax
import jax.numpy as jnp
from jax.experimental import pallas as pl
from jax.experimental.pallas import tpu as pltpu

MEL = 80          # mel channels (fixed by the module: x_in / mu_in / cond_in are [2, 80, T])
MELP = 128        # lane-padded mel width used inside the kernel
HID = 256         # synthetic estimator hidden width
TDIM = 128        # time-embedding width
N_TIMESTEPS = 10  # self.n_timesteps
CFG_RATE = 0.7    # self.inference_cfg_rate
T_SCHEDULER = "cosine"
TILE_T = 512      # T-tile (MXU M dim): multiple of 256, fits all VMEM budgets comfortably


def _silu(x):
    # silu(x) = x*sigmoid(x) = x*0.5*(tanh(x/2)+1): one EUP op (tanh) per element
    # instead of exp + divide.
    return x * (0.5 * jnp.tanh(0.5 * x) + 0.5)


def _make_cfm_euler_kernel(dt_vals):
    """Build the kernel with the (fully static) Euler step sizes baked in."""
    n_steps = len(dt_vals)

    def kernel(
        x0_ref,       # (TILE, MELP) f32   initial noise tile (lane-padded)
        mask_ref,     # (TILE, MELP) f32   mask, pre-broadcast to lane width
        cpart_ref,    # (TILE, HID)  f32   mu@wmu + spks@wspk + cond@wcond (time-invariant)
        wx_ref,       # (MELP, HID)  bf16  input 1x1 conv, x slice
        wmid_ref,     # (HID, HID)   bf16  hidden block
        wout_ref,     # (HID, MELP)  bf16  output 1x1 conv
        bias1_ref,    # (n_steps, HID)  f32  = bin  + temb[step]
        bias2_ref,    # (n_steps, HID)  f32  = bmid + temb[step]
        boutdt_ref,   # (n_steps, MELP) f32  = dt[step] * bout
        x_ref,        # OUT (TILE, MELP) f32
    ):
        tb = x0_ref.shape[0]

        x = x0_ref[...]            # f32 ODE state for this T-tile
        mask_b = mask_ref[...]     # lane-broadcast once per call, not per Euler step
        cond_part = cpart_ref[...]

        # Fully unrolled static Euler loop: static dt, static bias-row slices.
        # Weight refs are read at each use site so Mosaic streams them from VMEM
        # (no long live ranges across the unrolled body).
        for step in range(n_steps):
            dt = dt_vals[step]
            b1 = bias1_ref[pl.ds(step, 1), :]                    # (1, HID)
            b2 = bias2_ref[pl.ds(step, 1), :]                    # (1, HID)
            bo = boutdt_ref[pl.ds(step, 1), :]                   # (1, MELP) = dt*bout

            # input 1x1 conv over packed channels [x, mu, spks, cond]; x part shared
            base = jnp.dot(x.astype(jnp.bfloat16), wx_ref[...],
                           preferred_element_type=jnp.float32) + b1          # (T, HID)

            # stack CFG branches -> one weight push for the hidden matmul
            h = jnp.concatenate([_silu(base + cond_part),        # conditional   (torch row 0)
                                 _silu(base)], axis=0)           # unconditional (torch row 1)
            h = h + _silu(jnp.dot(h.astype(jnp.bfloat16), wmid_ref[...],
                                  preferred_element_type=jnp.float32) + b2)  # (2T, HID)

            # CFG combine folded BEFORE the linear output projection, with the static
            # Euler dt folded into the coefficients (exact: (1+r)-r = 1, and bout is
            # pre-scaled by dt host-side).  Halves the wout matmul.
            h_comb = (dt * (1.0 + CFG_RATE)) * h[:tb] - (dt * CFG_RATE) * h[tb:]
            o = jnp.dot(h_comb.astype(jnp.bfloat16), wout_ref[...],
                        preferred_element_type=jnp.float32) + bo             # (T, MELP)

            # single mask application + Euler step (dt already folded in)
            x = x + mask_b * o

        x_ref[...] = x

    return kernel


def _pad_lanes(a, target=MELP):
    """Zero-pad the last dim (mel channels) to the lane width."""
    pad = target - a.shape[-1]
    return jnp.pad(a, [(0, 0)] * (a.ndim - 1) + [(0, pad)])


def _round_up(n, m):
    return ((n + m - 1) // m) * m


def conditional_decoder(mel_len1, mu, mask, spks, cond, rand_noise, params, tile_t=TILE_T):
    """mu: (1,80,T)  mask: (1,1,T)  spks: (1,80)  cond: (1,80,T)  rand_noise: (1,80,Tmax)."""
    B, C, T = mu.shape
    assert B == 1 and C == MEL

    temperature = 1.0

    # ---- t_span is fully static: compute schedule + dt host-side (python floats) ----
    ts = [i / N_TIMESTEPS for i in range(N_TIMESTEPS + 1)]
    if T_SCHEDULER == "cosine":
        ts = [1.0 - math.cos(t * 0.5 * math.pi) for t in ts]
    dt_vals = tuple(ts[i + 1] - ts[i] for i in range(N_TIMESTEPS))
    t_vals = jnp.asarray(ts[:N_TIMESTEPS], dtype=jnp.float32)                # (10,)

    # ---- precompute the time embedding + time-MLP for all 10 steps (tiny XLA) ----
    temb0 = jnp.sin(t_vals[:, None] * params["freqs"] + params["phase"])     # (10, TDIM)
    temb = _silu(temb0 @ params["wt1"] + params["bt1"]) @ params["wt2"] + params["bt2"]
    bias1_all = (params["bin"] + temb).astype(jnp.float32)                   # (10, HID)
    bias2_all = (params["bmid"] + temb).astype(jnp.float32)                  # (10, HID)
    dt_col = jnp.asarray(dt_vals, jnp.float32)[:, None]                      # (10, 1)
    boutdt_all = _pad_lanes(dt_col * params["bout"]).astype(jnp.float32)     # (10, MELP)

    # ---- time-invariant conditioning projection: computed ONCE per call (tiny XLA) ----
    # (the CFG/unconditional branch has mu_in/spks_in/cond_in == 0, so this term drops there)
    cond_part = (mu[0].T @ params["wmu"]
                 + cond[0].T @ params["wcond"]
                 + spks.reshape(1, MEL) @ params["wspk"]).astype(jnp.float32)  # (T, HID)

    # ---- channel-last, lane-padded slabs; T padded to a multiple of the tile ----
    tile_t = min(tile_t, _round_up(T, 8))
    T_pad = _round_up(T, tile_t)

    def pad_t(a):  # zero-pad rows T -> T_pad (padded rows: mask == 0 -> x stays 0, sliced off)
        return jnp.pad(a, [(0, T_pad - T)] + [(0, 0)] * (a.ndim - 1))

    x0_tl = pad_t(_pad_lanes((rand_noise[0, :, :T] * temperature).T.astype(jnp.float32)))
    mask_b = pad_t(jnp.broadcast_to(mask[0].T.astype(jnp.float32), (T, MELP)))
    cond_part_p = pad_t(cond_part)

    def pad_rows(w):   # (80, HID) -> (128, HID), zero rows for padded lanes
        return jnp.pad(w, [(0, MELP - w.shape[0]), (0, 0)])

    wx_p = pad_rows(params["wx"]).astype(jnp.bfloat16)
    wmid_p = params["wmid"].astype(jnp.bfloat16)
    wout_p = _pad_lanes(params["wout"]).astype(jnp.bfloat16)     # (HID, 128), zero extra cols

    grid = (T_pad // tile_t,)

    # T-tiled inputs/outputs move per grid step; weights / bias tables have constant
    # index_maps (block (0,0)) so they stay VMEM-resident across tiles.
    in_specs = [
        pl.BlockSpec((tile_t, MELP), lambda i: (i, 0)),          # x0
        pl.BlockSpec((tile_t, MELP), lambda i: (i, 0)),          # mask (lane-broadcast)
        pl.BlockSpec((tile_t, HID), lambda i: (i, 0)),           # cond_part
        pl.BlockSpec((MELP, HID), lambda i: (0, 0)),             # wx
        pl.BlockSpec((HID, HID), lambda i: (0, 0)),              # wmid
        pl.BlockSpec((HID, MELP), lambda i: (0, 0)),             # wout
        pl.BlockSpec((N_TIMESTEPS, HID), lambda i: (0, 0)),      # bias1 table
        pl.BlockSpec((N_TIMESTEPS, HID), lambda i: (0, 0)),      # bias2 table
        pl.BlockSpec((N_TIMESTEPS, MELP), lambda i: (0, 0)),     # dt*bout table
    ]
    out_spec = pl.BlockSpec((tile_t, MELP), lambda i: (i, 0))

    x_final = pl.pallas_call(
        _make_cfm_euler_kernel(dt_vals),
        out_shape=jax.ShapeDtypeStruct((T_pad, MELP), jnp.float32),
        grid=grid,
        in_specs=in_specs,
        out_specs=out_spec,
        compiler_params=pltpu.CompilerParams(
            dimension_semantics=("parallel",)),      # independent T-tiles (v7x dual-TC)
    )(x0_tl, mask_b, cond_part_p, wx_p, wmid_p, wout_p, bias1_all, bias2_all, boutdt_all)

    feat = x_final[:T, :MEL].T[None, :, :].astype(jnp.float32)   # (1, 80, T) == x.float()
    # output_mels = feat[:, :, mel_len1.squeeze():]  (mel_len1 is a static int here)
    output_mels = feat[:, :, mel_len1:]
    return output_mels


def init_params(key):
    ks = jax.random.split(key, 8)

    def w(k, shape, fan_in):
        return jax.random.normal(k, shape, jnp.float32) / jnp.sqrt(jnp.float32(fan_in))

    half = TDIM // 2
    freqs_half = jnp.exp(-jnp.log(10000.0) * jnp.arange(half, dtype=jnp.float32) / (half - 1))
    freqs = jnp.concatenate([freqs_half, freqs_half])[None, :]                      # (1, TDIM)
    phase = jnp.concatenate([jnp.zeros((half,), jnp.float32),
                             jnp.full((half,), jnp.pi / 2, jnp.float32)])[None, :]  # sin|cos

    return dict(
        freqs=freqs, phase=phase,
        wt1=w(ks[0], (TDIM, HID), TDIM), bt1=jnp.zeros((1, HID), jnp.float32),
        wt2=w(ks[1], (HID, HID), HID),   bt2=jnp.zeros((1, HID), jnp.float32),
        wx=w(ks[2], (MEL, HID), 4 * MEL), wmu=w(ks[3], (MEL, HID), 4 * MEL),
        wspk=w(ks[4], (MEL, HID), 4 * MEL), wcond=w(ks[5], (MEL, HID), 4 * MEL),
        bin=jnp.zeros((1, HID), jnp.float32),
        wmid=w(ks[6], (HID, HID), HID), bmid=jnp.zeros((1, HID), jnp.float32),
        wout=w(ks[7], (HID, MEL), HID), bout=jnp.zeros((1, MEL), jnp.float32),
    )


if __name__ == "__main__":
    key = jax.random.PRNGKey(0)
    k_noise, k_mu, k_spk, k_cond, k_par = jax.random.split(key, 5)

    T = 16          # current mel length
    T_MAX = 64      # length of pre-sampled rand_noise buffer
    mel_len1 = 4    # prompt mel length (static int; torch does mel_len1.squeeze())

    mu = jax.random.normal(k_mu, (1, MEL, T), jnp.float32)
    mask = jnp.ones((1, 1, T), jnp.float32)
    spks = jax.random.normal(k_spk, (1, MEL), jnp.float32)
    cond = jax.random.normal(k_cond, (1, MEL, T), jnp.float32)
    rand_noise = jax.random.normal(k_noise, (1, MEL, T_MAX), jnp.float32)

    params = init_params(k_par)

    out = conditional_decoder(mel_len1, mu, mask, spks, cond, rand_noise, params)
    out = jax.block_until_ready(out)
    assert out.shape == (1, MEL, T - mel_len1), out.shape
    assert out.dtype == jnp.float32
    assert bool(jnp.all(jnp.isfinite(out)))
    print("KERNEL_OK")
</pallas_src>

<mosaic_0001>
module attributes {stable_mosaic.version = 11 : i64} {
  func.func @kernel(%arg0: i32, %arg1: memref<16x128xf32, #tpu.memory_space<vmem>>, %arg2: memref<16x128xf32, #tpu.memory_space<vmem>>, %arg3: memref<16x256xf32, #tpu.memory_space<vmem>>, %arg4: memref<128x256xbf16, #tpu.memory_space<vmem>>, %arg5: memref<256x256xbf16, #tpu.memory_space<vmem>>, %arg6: memref<256x128xbf16, #tpu.memory_space<vmem>>, %arg7: memref<10x256xf32, #tpu.memory_space<vmem>>, %arg8: memref<10x256xf32, #tpu.memory_space<vmem>>, %arg9: memref<10x128xf32, #tpu.memory_space<vmem>>, %arg10: memref<16x128xf32, #tpu.memory_space<vmem>>) attributes {dimension_semantics = [#tpu.dimension_semantics<parallel>], iteration_bounds = array<i64: 1>, scalar_prefetch = 0 : i64, scratch_operands = 0 : i64, tpu.core_type = #tpu.core_type<tc>, window_params = [{transform_indices = @transform_0, window_bounds = array<i64: 16, 128>}, {transform_indices = @transform_1, window_bounds = array<i64: 16, 128>}, {transform_indices = @transform_2, window_bounds = array<i64: 16, 256>}, {pipeline_mode = #tpu.pipeline_mode<synchronous>, transform_indices = @transform_3, window_bounds = array<i64: 128, 256>}, {pipeline_mode = #tpu.pipeline_mode<synchronous>, transform_indices = @transform_4, window_bounds = array<i64: 256, 256>}, {pipeline_mode = #tpu.pipeline_mode<synchronous>, transform_indices = @transform_5, window_bounds = array<i64: 256, 128>}, {pipeline_mode = #tpu.pipeline_mode<synchronous>, transform_indices = @transform_6, window_bounds = array<i64: 10, 256>}, {pipeline_mode = #tpu.pipeline_mode<synchronous>, transform_indices = @transform_7, window_bounds = array<i64: 10, 256>}, {pipeline_mode = #tpu.pipeline_mode<synchronous>, transform_indices = @transform_8, window_bounds = array<i64: 10, 128>}, {transform_indices = @transform_9, window_bounds = array<i64: 16, 128>}]} {
    %c0 = arith.constant 0 : index
    %c0_0 = arith.constant 0 : index
    %0 = vector.load %arg1[%c0, %c0_0] : memref<16x128xf32, #tpu.memory_space<vmem>>, vector<16x128xf32>
    %c0_1 = arith.constant 0 : index
    %c0_2 = arith.constant 0 : index
    %1 = vector.load %arg2[%c0_1, %c0_2] : memref<16x128xf32, #tpu.memory_space<vmem>>, vector<16x128xf32>
    %c0_3 = arith.constant 0 : index
    %c0_4 = arith.constant 0 : index
    %2 = vector.load %arg3[%c0_3, %c0_4] : memref<16x256xf32, #tpu.memory_space<vmem>>, vector<16x256xf32>
    %c0_5 = arith.constant 0 : index
    %c0_6 = arith.constant 0 : index
    %3 = vector.load %arg7[%c0_5, %c0_6] : memref<10x256xf32, #tpu.memory_space<vmem>>, vector<1x256xf32>
    %c0_7 = arith.constant 0 : index
    %c0_8 = arith.constant 0 : index
    %4 = vector.load %arg8[%c0_7, %c0_8] : memref<10x256xf32, #tpu.memory_space<vmem>>, vector<1x256xf32>
    %c0_9 = arith.constant 0 : index
    %c0_10 = arith.constant 0 : index
    %5 = vector.load %arg9[%c0_9, %c0_10] : memref<10x128xf32, #tpu.memory_space<vmem>>, vector<1x128xf32>
    %6 = arith.truncf %0 : vector<16x128xf32> to vector<16x128xbf16>
    %c0_11 = arith.constant 0 : index
    %c0_12 = arith.constant 0 : index
    %7 = vector.load %arg4[%c0_11, %c0_12] : memref<128x256xbf16, #tpu.memory_space<vmem>>, vector<128x256xbf16>
    %cst = arith.constant dense<0.000000e+00> : vector<16x256xf32>
    %8 = tpu.matmul %6, %7, %cst {dimension_numbers = #tpu.dot_dimension_numbers<[1], [0], [0], [1], [0, 0, 1, 1], [], []>} : vector<16x128xbf16>, vector<128x256xbf16>, vector<16x256xf32> -> vector<16x256xf32>
    %9 = vector.broadcast %3 : vector<1x256xf32> to vector<16x256xf32>
    %10 = arith.addf %8, %9 : vector<16x256xf32>
    %11 = arith.addf %10, %2 : vector<16x256xf32>
    %cst_13 = arith.constant 5.000000e-01 : f32
    %12 = vector.broadcast %cst_13 : f32 to vector<16x256xf32>
    %13 = arith.mulf %12, %11 : vector<16x256xf32>
    %14 = math.tanh %13 : vector<16x256xf32>
    %cst_14 = arith.constant 5.000000e-01 : f32
    %15 = vector.broadcast %cst_14 : f32 to vector<16x256xf32>
    %16 = arith.mulf %15, %14 : vector<16x256xf32>
    %cst_15 = arith.constant 5.000000e-01 : f32
    %17 = vector.broadcast %cst_15 : f32 to vector<16x256xf32>
    %18 = arith.addf %16, %17 : vector<16x256xf32>
    %19 = arith.mulf %11, %18 : vector<16x256xf32>
    %cst_16 = arith.constant 5.000000e-01 : f32
    %20 = vector.broadcast %cst_16 : f32 to vector<16x256xf32>
    %21 = arith.mulf %20, %10 : vector<16x256xf32>
    %22 = math.tanh %21 : vector<16x256xf32>
    %cst_17 = arith.constant 5.000000e-01 : f32
    %23 = vector.broadcast %cst_17 : f32 to vector<16x256xf32>
    %24 = arith.mulf %23, %22 : vector<16x256xf32>
    %cst_18 = arith.constant 5.000000e-01 : f32
    %25 = vector.broadcast %cst_18 : f32 to vector<16x256xf32>
    %26 = arith.addf %24, %25 : vector<16x256xf32>
    %27 = arith.mulf %10, %26 : vector<16x256xf32>
    %28 = tpu.concatenate %19, %27 in 0 : vector<16x256xf32>, vector<16x256xf32> -> vector<32x256xf32>
    %29 = arith.truncf %28 : vector<32x256xf32> to vector<32x256xbf16>
    %c0_19 = arith.constant 0 : index
    %c0_20 = arith.constant 0 : index
    %30 = vector.load %arg5[%c0_19, %c0_20] : memref<256x256xbf16, #tpu.memory_space<vmem>>, vector<256x256xbf16>
    %cst_21 = arith.constant dense<0.000000e+00> : vector<32x256xf32>
    %31 = tpu.matmul %29, %30, %cst_21 {dimension_numbers = #tpu.dot_dimension_numbers<[1], [0], [0], [1], [0, 0, 1, 1], [], []>} : vector<32x256xbf16>, vector<256x256xbf16>, vector<32x256xf32> -> vector<32x256xf32>
    %32 = vector.broadcast %4 : vector<1x256xf32> to vector<32x256xf32>
    %33 = arith.addf %31, %32 : vector<32x256xf32>
    %cst_22 = arith.constant 5.000000e-01 : f32
    %34 = vector.broadcast %cst_22 : f32 to vector<32x256xf32>
    %35 = arith.mulf %34, %33 : vector<32x256xf32>
    %36 = math.tanh %35 : vector<32x256xf32>
    %cst_23 = arith.constant 5.000000e-01 : f32
    %37 = vector.broadcast %cst_23 : f32 to vector<32x256xf32>
    %38 = arith.mulf %37, %36 : vector<32x256xf32>
    %cst_24 = arith.constant 5.000000e-01 : f32
    %39 = vector.broadcast %cst_24 : f32 to vector<32x256xf32>
    %40 = arith.addf %38, %39 : vector<32x256xf32>
    %41 = arith.mulf %33, %40 : vector<32x256xf32>
    %42 = arith.addf %28, %41 : vector<32x256xf32>
    %43 = vector.extract_strided_slice %42 {offsets = [0, 0], sizes = [16, 256], strides = [1, 1]} : vector<32x256xf32> to vector<16x256xf32>
    %cst_25 = arith.constant 0.0209298208 : f32
    %44 = vector.broadcast %cst_25 : f32 to vector<16x256xf32>
    %45 = arith.mulf %44, %43 : vector<16x256xf32>
    %46 = vector.extract_strided_slice %42 {offsets = [16, 0], sizes = [16, 256], strides = [1, 1]} : vector<32x256xf32> to vector<16x256xf32>
    %cst_26 = arith.constant 0.00861816201 : f32
    %47 = vector.broadcast %cst_26 : f32 to vector<16x256xf32>
    %48 = arith.mulf %47, %46 : vector<16x256xf32>
    %49 = arith.subf %45, %48 : vector<16x256xf32>
    %50 = arith.truncf %49 : vector<16x256xf32> to vector<16x256xbf16>
    %c0_27 = arith.constant 0 : index
    %c0_28 = arith.constant 0 : index
    %51 = vector.load %arg6[%c0_27, %c0_28] : memref<256x128xbf16, #tpu.memory_space<vmem>>, vector<256x128xbf16>
    %cst_29 = arith.constant dense<0.000000e+00> : vector<16x128xf32>
    %52 = tpu.matmul %50, %51, %cst_29 {dimension_numbers = #tpu.dot_dimension_numbers<[1], [0], [0], [1], [0, 0, 1, 1], [], []>} : vector<16x256xbf16>, vector<256x128xbf16>, vector<16x128xf32> -> vector<16x128xf32>
    %53 = vector.broadcast %5 : vector<1x128xf32> to vector<16x128xf32>
    %54 = arith.addf %52, %53 : vector<16x128xf32>
    %55 = arith.mulf %1, %54 : vector<16x128xf32>
    %56 = arith.addf %0, %55 : vector<16x128xf32>
    %c1 = arith.constant 1 : index
    %c0_30 = arith.constant 0 : index
    %57 = vector.load %arg7[%c1, %c0_30] : memref<10x256xf32, #tpu.memory_space<vmem>>, vector<1x256xf32>
    %c1_31 = arith.constant 1 : index
    %c0_32 = arith.constant 0 : index
    %58 = vector.load %arg8[%c1_31, %c0_32] : memref<10x256xf32, #tpu.memory_space<vmem>>, vector<1x256xf32>
    %c1_33 = arith.constant 1 : index
    %c0_34 = arith.constant 0 : index
    %59 = vector.load %arg9[%c1_33, %c0_34] : memref<10x128xf32, #tpu.memory_space<vmem>>, vector<1x128xf32>
    %60 = arith.truncf %56 : vector<16x128xf32> to vector<16x128xbf16>
    %c0_35 = arith.constant 0 : index
    %c0_36 = arith.constant 0 : index
    %61 = vector.load %arg4[%c0_35, %c0_36] : memref<128x256xbf16, #tpu.memory_space<vmem>>, vector<128x256xbf16>
    %cst_37 = arith.constant dense<0.000000e+00> : vector<16x256xf32>
    %62 = tpu.matmul %60, %61, %cst_37 {dimension_numbers = #tpu.dot_dimension_numbers<[1], [0], [0], [1], [0, 0, 1, 1], [], []>} : vector<16x128xbf16>, vector<128x256xbf16>, vector<16x256xf32> -> vector<16x256xf32>
    %63 = vector.broadcast %57 : vector<1x256xf32> to vector<16x256xf32>
    %64 = arith.addf %62, %63 : vector<16x256xf32>
    %65 = arith.addf %64, %2 : vector<16x256xf32>
    %cst_38 = arith.constant 5.000000e-01 : f32
    %66 = vector.broadcast %cst_38 : f32 to vector<16x256xf32>
    %67 = arith.mulf %66, %65 : vector<16x256xf32>
    %68 = math.tanh %67 : vector<16x256xf32>
    %cst_39 = arith.constant 5.000000e-01 : f32
    %69 = vector.broadcast %cst_39 : f32 to vector<16x256xf32>
    %70 = arith.mulf %69, %68 : vector<16x256xf32>
    %cst_40 = arith.constant 5.000000e-01 : f32
    %71 = vector.broadcast %cst_40 : f32 to vector<16x256xf32>
    %72 = arith.addf %70, %71 : vector<16x256xf32>
    %73 = arith.mulf %65, %72 : vector<16x256xf32>
    %cst_41 = arith.constant 5.000000e-01 : f32
    %74 = vector.broadcast %cst_41 : f32 to vector<16x256xf32>
    %75 = arith.mulf %74, %64 : vector<16x256xf32>
    %76 = math.tanh %75 : vector<16x256xf32>
    %cst_42 = arith.constant 5.000000e-01 : f32
    %77 = vector.broadcast %cst_42 : f32 to vector<16x256xf32>
    %78 = arith.mulf %77, %76 : vector<16x256xf32>
    %cst_43 = arith.constant 5.000000e-01 : f32
    %79 = vector.broadcast %cst_43 : f32 to vector<16x256xf32>
    %80 = arith.addf %78, %79 : vector<16x256xf32>
    %81 = arith.mulf %64, %80 : vector<16x256xf32>
    %82 = tpu.concatenate %73, %81 in 0 : vector<16x256xf32>, vector<16x256xf32> -> vector<32x256xf32>
    %83 = arith.truncf %82 : vector<32x256xf32> to vector<32x256xbf16>
    %c0_44 = arith.constant 0 : index
    %c0_45 = arith.constant 0 : index
    %84 = vector.load %arg5[%c0_44, %c0_45] : memref<256x256xbf16, #tpu.memory_space<vmem>>, vector<256x256xbf16>
    %cst_46 = arith.constant dense<0.000000e+00> : vector<32x256xf32>
    %85 = tpu.matmul %83, %84, %cst_46 {dimension_numbers = #tpu.dot_dimension_numbers<[1], [0], [0], [1], [0, 0, 1, 1], [], []>} : vector<32x256xbf16>, vector<256x256xbf16>, vector<32x256xf32> -> vector<32x256xf32>
    %86 = vector.broadcast %58 : vector<1x256xf32> to vector<32x256xf32>
    %87 = arith.addf %85, %86 : vector<32x256xf32>
    %cst_47 = arith.constant 5.000000e-01 : f32
    %88 = vector.broadcast %cst_47 : f32 to vector<32x256xf32>
    %89 = arith.mulf %88, %87 : vector<32x256xf32>
    %90 = math.tanh %89 : vector<32x256xf32>
    %cst_48 = arith.constant 5.000000e-01 : f32
    %91 = vector.broadcast %cst_48 : f32 to vector<32x256xf32>
    %92 = arith.mulf %91, %90 : vector<32x256xf32>
    %cst_49 = arith.constant 5.000000e-01 : f32
    %93 = vector.broadcast %cst_49 : f32 to vector<32x256xf32>
    %94 = arith.addf %92, %93 : vector<32x256xf32>
    %95 = arith.mulf %87, %94 : vector<32x256xf32>
    %96 = arith.addf %82, %95 : vector<32x256xf32>
    %97 = vector.extract_strided_slice %96 {offsets = [0, 0], sizes = [16, 256], strides = [1, 1]} : vector<32x256xf32> to vector<16x256xf32>
    %cst_50 = arith.constant 0.0622741021 : f32
    %98 = vector.broadcast %cst_50 : f32 to vector<16x256xf32>
    %99 = arith.mulf %98, %97 : vector<16x256xf32>
    %100 = vector.extract_strided_slice %96 {offsets = [16, 0], sizes = [16, 256], strides = [1, 1]} : vector<32x256xf32> to vector<16x256xf32>
    %cst_51 = arith.constant 0.0256422777 : f32
    %101 = vector.broadcast %cst_51 : f32 to vector<16x256xf32>
    %102 = arith.mulf %101, %100 : vector<16x256xf32>
    %103 = arith.subf %99, %102 : vector<16x256xf32>
    %104 = arith.truncf %103 : vector<16x256xf32> to vector<16x256xbf16>
    %c0_52 = arith.constant 0 : index
    %c0_53 = arith.constant 0 : index
    %105 = vector.load %arg6[%c0_52, %c0_53] : memref<256x128xbf16, #tpu.memory_space<vmem>>, vector<256x128xbf16>
    %cst_54 = arith.constant dense<0.000000e+00> : vector<16x128xf32>
    %106 = tpu.matmul %104, %105, %cst_54 {dimension_numbers = #tpu.dot_dimension_numbers<[1], [0], [0], [1], [0, 0, 1, 1], [], []>} : vector<16x256xbf16>, vector<256x128xbf16>, vector<16x128xf32> -> vector<16x128xf32>
    %107 = vector.broadcast %59 : vector<1x128xf32> to vector<16x128xf32>
    %108 = arith.addf %106, %107 : vector<16x128xf32>
    %109 = arith.mulf %1, %108 : vector<16x128xf32>
    %110 = arith.addf %56, %109 : vector<16x128xf32>
    %c2 = arith.constant 2 : index
    %c0_55 = arith.constant 0 : index
    %111 = vector.load %arg7[%c2, %c0_55] : memref<10x256xf32, #tpu.memory_space<vmem>>, vector<1x256xf32>
    %c2_56 = arith.constant 2 : index
    %c0_57 = arith.constant 0 : index
    %112 = vector.load %arg8[%c2_56, %c0_57] : memref<10x256xf32, #tpu.memory_space<vmem>>, vector<1x256xf32>
    %c2_58 = arith.constant 2 : index
    %c0_59 = arith.constant 0 : index
    %113 = vector.load %arg9[%c2_58, %c0_59] : memref<10x128xf32, #tpu.memory_space<vmem>>, vector<1x128xf32>
    %114 = arith.truncf %110 : vector<16x128xf32> to vector<16x128xbf16>
    %c0_60 = arith.constant 0 : index
    %c0_61 = arith.constant 0 : index
    %115 = vector.load %arg4[%c0_60, %c0_61] : memref<128x256xbf16, #tpu.memory_space<vmem>>, vector<128x256xbf16>
    %cst_62 = arith.constant dense<0.000000e+00> : vector<16x256xf32>
    %116 = tpu.matmul %114, %115, %cst_62 {dimension_numbers = #tpu.dot_dimension_numbers<[1], [0], [0], [1], [0, 0, 1, 1], [], []>} : vector<16x128xbf16>, vector<128x256xbf16>, vector<16x256xf32> -> vector<16x256xf32>
    %117 = vector.broadcast %111 : vector<1x256xf32> to vector<16x256xf32>
    %118 = arith.addf %116, %117 : vector<16x256xf32>
    %119 = arith.addf %118, %2 : vector<16x256xf32>
    %cst_63 = arith.constant 5.000000e-01 : f32
    %120 = vector.broadcast %cst_63 : f32 to vector<16x256xf32>
    %121 = arith.mulf %120, %119 : vector<16x256xf32>
    %122 = math.tanh %121 : vector<16x256xf32>
    %cst_64 = arith.constant 5.000000e-01 : f32
    %123 = vector.broadcast %cst_64 : f32 to vector<16x256xf32>
    %124 = arith.mulf %123, %122 : vector<16x256xf32>
    %cst_65 = arith.constant 5.000000e-01 : f32
    %125 = vector.broadcast %cst_65 : f32 to vector<16x256xf32>
    %126 = arith.addf %124, %125 : vector<16x256xf32>
    %127 = arith.mulf %119, %126 : vector<16x256xf32>
    %cst_66 = arith.constant 5.000000e-01 : f32
    %128 = vector.broadcast %cst_66 : f32 to vector<16x256xf32>
    %129 = arith.mulf %128, %118 : vector<16x256xf32>
    %130 = math.tanh %129 : vector<16x256xf32>
    %cst_67 = arith.constant 5.000000e-01 : f32
    %131 = vector.broadcast %cst_67 : f32 to vector<16x256xf32>
    %132 = arith.mulf %131, %130 : vector<16x256xf32>
    %cst_68 = arith.constant 5.000000e-01 : f32
    %133 = vector.broadcast %cst_68 : f32 to vector<16x256xf32>
    %134 = arith.addf %132, %133 : vector<16x256xf32>
    %135 = arith.mulf %118, %134 : vector<16x256xf32>
    %136 = tpu.concatenate %127, %135 in 0 : vector<16x256xf32>, vector<16x256xf32> -> vector<32x256xf32>
    %137 = arith.truncf %136 : vector<32x256xf32> to vector<32x256xbf16>
    %c0_69 = arith.constant 0 : index
    %c0_70 = arith.constant 0 : index
    %138 = vector.load %arg5[%c0_69, %c0_70] : memref<256x256xbf16, #tpu.memory_space<vmem>>, vector<256x256xbf16>
    %cst_71 = arith.constant dense<0.000000e+00> : vector<32x256xf32>
    %139 = tpu.matmul %137, %138, %cst_71 {dimension_numbers = #tpu.dot_dimension_numbers<[1], [0], [0], [1], [0, 0, 1, 1], [], []>} : vector<32x256xbf16>, vector<256x256xbf16>, vector<32x256xf32> -> vector<32x256xf32>
    %140 = vector.broadcast %112 : vector<1x256xf32> to vector<32x256xf32>
    %141 = arith.addf %139, %140 : vector<32x256xf32>
    %cst_72 = arith.constant 5.000000e-01 : f32
    %142 = vector.broadcast %cst_72 : f32 to vector<32x256xf32>
    %143 = arith.mulf %142, %141 : vector<32x256xf32>
    %144 = math.tanh %143 : vector<32x256xf32>
    %cst_73 = arith.constant 5.000000e-01 : f32
    %145 = vector.broadcast %cst_73 : f32 to vector<32x256xf32>
    %146 = arith.mulf %145, %144 : vector<32x256xf32>
    %cst_74 = arith.constant 5.000000e-01 : f32
    %147 = vector.broadcast %cst_74 : f32 to vector<32x256xf32>
    %148 = arith.addf %146, %147 : vector<32x256xf32>
    %149 = arith.mulf %141, %148 : vector<32x256xf32>
    %150 = arith.addf %136, %149 : vector<32x256xf32>
    %151 = vector.extract_strided_slice %150 {offsets = [0, 0], sizes = [16, 256], strides = [1, 1]} : vector<32x256xf32> to vector<16x256xf32>
    %cst_75 = arith.constant 0.102084987 : f32
    %152 = vector.broadcast %cst_75 : f32 to vector<16x256xf32>
    %153 = arith.mulf %152, %151 : vector<16x256xf32>
    %154 = vector.extract_strided_slice %150 {offsets = [16, 0], sizes = [16, 256], strides = [1, 1]} : vector<32x256xf32> to vector<16x256xf32>
    %cst_76 = arith.constant 0.0420349948 : f32
    %155 = vector.broadcast %cst_76 : f32 to vector<16x256xf32>
    %156 = arith.mulf %155, %154 : vector<16x256xf32>
    %157 = arith.subf %153, %156 : vector<16x256xf32>
    %158 = arith.truncf %157 : vector<16x256xf32> to vector<16x256xbf16>
    %c0_77 = arith.constant 0 : index
    %c0_78 = arith.constant 0 : index
    %159 = vector.load %arg6[%c0_77, %c0_78] : memref<256x128xbf16, #tpu.memory_space<vmem>>, vector<256x128xbf16>
    %cst_79 = arith.constant dense<0.000000e+00> : vector<16x128xf32>
    %160 = tpu.matmul %158, %159, %cst_79 {dimension_numbers = #tpu.dot_dimension_numbers<[1], [0], [0], [1], [0, 0, 1, 1], [], []>} : vector<16x256xbf16>, vector<256x128xbf16>, vector<16x128xf32> -> vector<16x128xf32>
    %161 = vector.broadcast %113 : vector<1x128xf32> to vector<16x128xf32>
    %162 = arith.addf %160, %161 : vector<16x128xf32>
    %163 = arith.mulf %1, %162 : vector<16x128xf32>
    %164 = arith.addf %110, %163 : vector<16x128xf32>
    %c3 = arith.constant 3 : index
    %c0_80 = arith.constant 0 : index
    %165 = vector.load %arg7[%c3, %c0_80] : memref<10x256xf32, #tpu.memory_space<vmem>>, vector<1x256xf32>
    %c3_81 = arith.constant 3 : index
    %c0_82 = arith.constant 0 : index
    %166 = vector.load %arg8[%c3_81, %c0_82] : memref<10x256xf32, #tpu.memory_space<vmem>>, vector<1x256xf32>
    %c3_83 = arith.constant 3 : index
    %c0_84 = arith.constant 0 : index
    %167 = vector.load %arg9[%c3_83, %c0_84] : memref<10x128xf32, #tpu.memory_space<vmem>>, vector<1x128xf32>
    %168 = arith.truncf %164 : vector<16x128xf32> to vector<16x128xbf16>
    %c0_85 = arith.constant 0 : index
    %c0_86 = arith.constant 0 : index
    %169 = vector.load %arg4[%c0_85, %c0_86] : memref<128x256xbf16, #tpu.memory_space<vmem>>, vector<128x256xbf16>
    %cst_87 = arith.constant dense<0.000000e+00> : vector<16x256xf32>
    %170 = tpu.matmul %168, %169, %cst_87 {dimension_numbers = #tpu.dot_dimension_numbers<[1], [0], [0], [1], [0, 0, 1, 1], [], []>} : vector<16x128xbf16>, vector<128x256xbf16>, vector<16x256xf32> -> vector<16x256xf32>
    %171 = vector.broadcast %165 : vector<1x256xf32> to vector<16x256xf32>
    %172 = arith.addf %170, %171 : vector<16x256xf32>
    %173 = arith.addf %172, %2 : vector<16x256xf32>
    %cst_88 = arith.constant 5.000000e-01 : f32
    %174 = vector.broadcast %cst_88 : f32 to vector<16x256xf32>
    %175 = arith.mulf %174, %173 : vector<16x256xf32>
    %176 = math.tanh %175 : vector<16x256xf32>
    %cst_89 = arith.constant 5.000000e-01 : f32
    %177 = vector.broadcast %cst_89 : f32 to vector<16x256xf32>
    %178 = arith.mulf %177, %176 : vector<16x256xf32>
    %cst_90 = arith.constant 5.000000e-01 : f32
    %179 = vector.broadcast %cst_90 : f32 to vector<16x256xf32>
    %180 = arith.addf %178, %179 : vector<16x256xf32>
    %181 = arith.mulf %173, %180 : vector<16x256xf32>
    %cst_91 = arith.constant 5.000000e-01 : f32
    %182 = vector.broadcast %cst_91 : f32 to vector<16x256xf32>
    %183 = arith.mulf %182, %172 : vector<16x256xf32>
    %184 = math.tanh %183 : vector<16x256xf32>
    %cst_92 = arith.constant 5.000000e-01 : f32
    %185 = vector.broadcast %cst_92 : f32 to vector<16x256xf32>
    %186 = arith.mulf %185, %184 : vector<16x256xf32>
    %cst_93 = arith.constant 5.000000e-01 : f32
    %187 = vector.broadcast %cst_93 : f32 to vector<16x256xf32>
    %188 = arith.addf %186, %187 : vector<16x256xf32>
    %189 = arith.mulf %172, %188 : vector<16x256xf32>
    %190 = tpu.concatenate %181, %189 in 0 : vector<16x256xf32>, vector<16x256xf32> -> vector<32x256xf32>
    %191 = arith.truncf %190 : vector<32x256xf32> to vector<32x256xbf16>
    %c0_94 = arith.constant 0 : index
    %c0_95 = arith.constant 0 : index
    %192 = vector.load %arg5[%c0_94, %c0_95] : memref<256x256xbf16, #tpu.memory_space<vmem>>, vector<256x256xbf16>
    %cst_96 = arith.constant dense<0.000000e+00> : vector<32x256xf32>
    %193 = tpu.matmul %191, %192, %cst_96 {dimension_numbers = #tpu.dot_dimension_numbers<[1], [0], [0], [1], [0, 0, 1, 1], [], []>} : vector<32x256xbf16>, vector<256x256xbf16>, vector<32x256xf32> -> vector<32x256xf32>
    %194 = vector.broadcast %166 : vector<1x256xf32> to vector<32x256xf32>
    %195 = arith.addf %193, %194 : vector<32x256xf32>
    %cst_97 = arith.constant 5.000000e-01 : f32
    %196 = vector.broadcast %cst_97 : f32 to vector<32x256xf32>
    %197 = arith.mulf %196, %195 : vector<32x256xf32>
    %198 = math.tanh %197 : vector<32x256xf32>
    %cst_98 = arith.constant 5.000000e-01 : f32
    %199 = vector.broadcast %cst_98 : f32 to vector<32x256xf32>
    %200 = arith.mulf %199, %198 : vector<32x256xf32>
    %cst_99 = arith.constant 5.000000e-01 : f32
    %201 = vector.broadcast %cst_99 : f32 to vector<32x256xf32>
    %202 = arith.addf %200, %201 : vector<32x256xf32>
    %203 = arith.mulf %195, %202 : vector<32x256xf32>
    %204 = arith.addf %190, %203 : vector<32x256xf32>
    %205 = vector.extract_strided_slice %204 {offsets = [0, 0], sizes = [16, 256], strides = [1, 1]} : vector<32x256xf32> to vector<16x256xf32>
    %cst_100 = arith.constant 0.139382198 : f32
    %206 = vector.broadcast %cst_100 : f32 to vector<16x256xf32>
    %207 = arith.mulf %206, %205 : vector<16x256xf32>
    %208 = vector.extract_strided_slice %204 {offsets = [16, 0], sizes = [16, 256], strides = [1, 1]} : vector<32x256xf32> to vector<16x256xf32>
    %cst_101 = arith.constant 0.0573926717 : f32
    %209 = vector.broadcast %cst_101 : f32 to vector<16x256xf32>
    %210 = arith.mulf %209, %208 : vector<16x256xf32>
    %211 = arith.subf %207, %210 : vector<16x256xf32>
    %212 = arith.truncf %211 : vector<16x256xf32> to vector<16x256xbf16>
    %c0_102 = arith.constant 0 : index
    %c0_103 = arith.constant 0 : index
    %213 = vector.load %arg6[%c0_102, %c0_103] : memref<256x128xbf16, #tpu.memory_space<vmem>>, vector<256x128xbf16>
    %cst_104 = arith.constant dense<0.000000e+00> : vector<16x128xf32>
    %214 = tpu.matmul %212, %213, %cst_104 {dimension_numbers = #tpu.dot_dimension_numbers<[1], [0], [0], [1], [0, 0, 1, 1], [], []>} : vector<16x256xbf16>, vector<256x128xbf16>, vector<16x128xf32> -> vector<16x128xf32>
    %215 = vector.broadcast %167 : vector<1x128xf32> to vector<16x128xf32>
    %216 = arith.addf %214, %215 : vector<16x128xf32>
    %217 = arith.mulf %1, %216 : vector<16x128xf32>
    %218 = arith.addf %164, %217 : vector<16x128xf32>
    %c4 = arith.constant 4 : index
    %c0_105 = arith.constant 0 : index
    %219 = vector.load %arg7[%c4, %c0_105] : memref<10x256xf32, #tpu.memory_space<vmem>>, vector<1x256xf32>
    %c4_106 = arith.constant 4 : index
    %c0_107 = arith.constant 0 : index
    %220 = vector.load %arg8[%c4_106, %c0_107] : memref<10x256xf32, #tpu.memory_space<vmem>>, vector<1x256xf32>
    %c4_108 = arith.constant 4 : index
    %c0_109 = arith.constant 0 : index
    %221 = vector.load %arg9[%c4_108, %c0_109] : memref<10x128xf32, #tpu.memory_space<vmem>>, vector<1x128xf32>
    %222 = arith.truncf %218 : vector<16x128xf32> to vector<16x128xbf16>
    %c0_110 = arith.constant 0 : index
    %c0_111 = arith.constant 0 : index
    %223 = vector.load %arg4[%c0_110, %c0_111] : memref<128x256xbf16, #tpu.memory_space<vmem>>, vector<128x256xbf16>
    %cst_112 = arith.constant dense<0.000000e+00> : vector<16x256xf32>
    %224 = tpu.matmul %222, %223, %cst_112 {dimension_numbers = #tpu.dot_dimension_numbers<[1], [0], [0], [1], [0, 0, 1, 1], [], []>} : vector<16x128xbf16>, vector<128x256xbf16>, vector<16x256xf32> -> vector<16x256xf32>
    %225 = vector.broadcast %219 : vector<1x256xf32> to vector<16x256xf32>
    %226 = arith.addf %224, %225 : vector<16x256xf32>
    %227 = arith.addf %226, %2 : vector<16x256xf32>
    %cst_113 = arith.constant 5.000000e-01 : f32
    %228 = vector.broadcast %cst_113 : f32 to vector<16x256xf32>
    %229 = arith.mulf %228, %227 : vector<16x256xf32>
    %230 = math.tanh %229 : vector<16x256xf32>
    %cst_114 = arith.constant 5.000000e-01 : f32
    %231 = vector.broadcast %cst_114 : f32 to vector<16x256xf32>
    %232 = arith.mulf %231, %230 : vector<16x256xf32>
    %cst_115 = arith.constant 5.000000e-01 : f32
    %233 = vector.broadcast %cst_115 : f32 to vector<16x256xf32>
    %234 = arith.addf %232, %233 : vector<16x256xf32>
    %235 = arith.mulf %227, %234 : vector<16x256xf32>
    %cst_116 = arith.constant 5.000000e-01 : f32
    %236 = vector.broadcast %cst_116 : f32 to vector<16x256xf32>
    %237 = arith.mulf %236, %226 : vector<16x256xf32>
    %238 = math.tanh %237 : vector<16x256xf32>
    %cst_117 = arith.constant 5.000000e-01 : f32
    %239 = vector.broadcast %cst_117 : f32 to vector<16x256xf32>
    %240 = arith.mulf %239, %238 : vector<16x256xf32>
    %cst_118 = arith.constant 5.000000e-01 : f32
    %241 = vector.broadcast %cst_118 : f32 to vector<16x256xf32>
    %242 = arith.addf %240, %241 : vector<16x256xf32>
    %243 = arith.mulf %226, %242 : vector<16x256xf32>
    %244 = tpu.concatenate %235, %243 in 0 : vector<16x256xf32>, vector<16x256xf32> -> vector<32x256xf32>
    %245 = arith.truncf %244 : vector<32x256xf32> to vector<32x256xbf16>
    %c0_119 = arith.constant 0 : index
    %c0_120 = arith.constant 0 : index
    %246 = vector.load %arg5[%c0_119, %c0_120] : memref<256x256xbf16, #tpu.memory_space<vmem>>, vector<256x256xbf16>
    %cst_121 = arith.constant dense<0.000000e+00> : vector<32x256xf32>
    %247 = tpu.matmul %245, %246, %cst_121 {dimension_numbers = #tpu.dot_dimension_numbers<[1], [0], [0], [1], [0, 0, 1, 1], [], []>} : vector<32x256xbf16>, vector<256x256xbf16>, vector<32x256xf32> -> vector<32x256xf32>
    %248 = vector.broadcast %220 : vector<1x256xf32> to vector<32x256xf32>
    %249 = arith.addf %247, %248 : vector<32x256xf32>
    %cst_122 = arith.constant 5.000000e-01 : f32
    %250 = vector.broadcast %cst_122 : f32 to vector<32x256xf32>
    %251 = arith.mulf %250, %249 : vector<32x256xf32>
    %252 = math.tanh %251 : vector<32x256xf32>
    %cst_123 = arith.constant 5.000000e-01 : f32
    %253 = vector.broadcast %cst_123 : f32 to vector<32x256xf32>
    %254 = arith.mulf %253, %252 : vector<32x256xf32>
    %cst_124 = arith.constant 5.000000e-01 : f32
    %255 = vector.broadcast %cst_124 : f32 to vector<32x256xf32>
    %256 = arith.addf %254, %255 : vector<32x256xf32>
    %257 = arith.mulf %249, %256 : vector<32x256xf32>
    %258 = arith.addf %244, %257 : vector<32x256xf32>
    %259 = vector.extract_strided_slice %258 {offsets = [0, 0], sizes = [16, 256], strides = [1, 1]} : vector<32x256xf32> to vector<16x256xf32>
    %cst_125 = arith.constant 0.173247367 : f32
    %260 = vector.broadcast %cst_125 : f32 to vector<16x256xf32>
    %261 = arith.mulf %260, %259 : vector<16x256xf32>
    %262 = vector.extract_strided_slice %258 {offsets = [16, 0], sizes = [16, 256], strides = [1, 1]} : vector<32x256xf32> to vector<16x256xf32>
    %cst_126 = arith.constant 0.0713371485 : f32
    %263 = vector.broadcast %cst_126 : f32 to vector<16x256xf32>
    %264 = arith.mulf %263, %262 : vector<16x256xf32>
    %265 = arith.subf %261, %264 : vector<16x256xf32>
    %266 = arith.truncf %265 : vector<16x256xf32> to vector<16x256xbf16>
    %c0_127 = arith.constant 0 : index
    %c0_128 = arith.constant 0 : index
    %267 = vector.load %arg6[%c0_127, %c0_128] : memref<256x128xbf16, #tpu.memory_space<vmem>>, vector<256x128xbf16>
    %cst_129 = arith.constant dense<0.000000e+00> : vector<16x128xf32>
    %268 = tpu.matmul %266, %267, %cst_129 {dimension_numbers = #tpu.dot_dimension_numbers<[1], [0], [0], [1], [0, 0, 1, 1], [], []>} : vector<16x256xbf16>, vector<256x128xbf16>, vector<16x128xf32> -> vector<16x128xf32>
    %269 = vector.broadcast %221 : vector<1x128xf32> to vector<16x128xf32>
    %270 = arith.addf %268, %269 : vector<16x128xf32>
    %271 = arith.mulf %1, %270 : vector<16x128xf32>
    %272 = arith.addf %218, %271 : vector<16x128xf32>
    %c5 = arith.constant 5 : index
    %c0_130 = arith.constant 0 : index
    %273 = vector.load %arg7[%c5, %c0_130] : memref<10x256xf32, #tpu.memory_space<vmem>>, vector<1x256xf32>
    %c5_131 = arith.constant 5 : index
    %c0_132 = arith.constant 0 : index
    %274 = vector.load %arg8[%c5_131, %c0_132] : memref<10x256xf32, #tpu.memory_space<vmem>>, vector<1x256xf32>
    %c5_133 = arith.constant 5 : index
    %c0_134 = arith.constant 0 : index
    %275 = vector.load %arg9[%c5_133, %c0_134] : memref<10x128xf32, #tpu.memory_space<vmem>>, vector<1x128xf32>
    %276 = arith.truncf %272 : vector<16x128xf32> to vector<16x128xbf16>
    %c0_135 = arith.constant 0 : index
    %c0_136 = arith.constant 0 : index
    %277 = vector.load %arg4[%c0_135, %c0_136] : memref<128x256xbf16, #tpu.memory_space<vmem>>, vector<128x256xbf16>
    %cst_137 = arith.constant dense<0.000000e+00> : vector<16x256xf32>
    %278 = tpu.matmul %276, %277, %cst_137 {dimension_numbers = #tpu.dot_dimension_numbers<[1], [0], [0], [1], [0, 0, 1, 1], [], []>} : vector<16x128xbf16>, vector<128x256xbf16>, vector<16x256xf32> -> vector<16x256xf32>
    %279 = vector.broadcast %273 : vector<1x256xf32> to vector<16x256xf32>
    %280 = arith.addf %278, %279 : vector<16x256xf32>
    %281 = arith.addf %280, %2 : vector<16x256xf32>
    %cst_138 = arith.constant 5.000000e-01 : f32
    %282 = vector.broadcast %cst_138 : f32 to vector<16x256xf32>
    %283 = arith.mulf %282, %281 : vector<16x256xf32>
    %284 = math.tanh %283 : vector<16x256xf32>
    %cst_139 = arith.constant 5.000000e-01 : f32
    %285 = vector.broadcast %cst_139 : f32 to vector<16x256xf32>
    %286 = arith.mulf %285, %284 : vector<16x256xf32>
    %cst_140 = arith.constant 5.000000e-01 : f32
    %287 = vector.broadcast %cst_140 : f32 to vector<16x256xf32>
    %288 = arith.addf %286, %287 : vector<16x256xf32>
    %289 = arith.mulf %281, %288 : vector<16x256xf32>
    %cst_141 = arith.constant 5.000000e-01 : f32
    %290 = vector.broadcast %cst_141 : f32 to vector<16x256xf32>
    %291 = arith.mulf %290, %280 : vector<16x256xf32>
    %292 = math.tanh %291 : vector<16x256xf32>
    %cst_142 = arith.constant 5.000000e-01 : f32
    %293 = vector.broadcast %cst_142 : f32 to vector<16x256xf32>
    %294 = arith.mulf %293, %292 : vector<16x256xf32>
    %cst_143 = arith.constant 5.000000e-01 : f32
    %295 = vector.broadcast %cst_143 : f32 to vector<16x256xf32>
    %296 = arith.addf %294, %295 : vector<16x256xf32>
    %297 = arith.mulf %280, %296 : vector<16x256xf32>
    %298 = tpu.concatenate %289, %297 in 0 : vector<16x256xf32>, vector<16x256xf32> -> vector<32x256xf32>
    %299 = arith.truncf %298 : vector<32x256xf32> to vector<32x256xbf16>
    %c0_144 = arith.constant 0 : index
    %c0_145 = arith.constant 0 : index
    %300 = vector.load %arg5[%c0_144, %c0_145] : memref<256x256xbf16, #tpu.memory_space<vmem>>, vector<256x256xbf16>
    %cst_146 = arith.constant dense<0.000000e+00> : vector<32x256xf32>
    %301 = tpu.matmul %299, %300, %cst_146 {dimension_numbers = #tpu.dot_dimension_numbers<[1], [0], [0], [1], [0, 0, 1, 1], [], []>} : vector<32x256xbf16>, vector<256x256xbf16>, vector<32x256xf32> -> vector<32x256xf32>
    %302 = vector.broadcast %274 : vector<1x256xf32> to vector<32x256xf32>
    %303 = arith.addf %301, %302 : vector<32x256xf32>
    %cst_147 = arith.constant 5.000000e-01 : f32
    %304 = vector.broadcast %cst_147 : f32 to vector<32x256xf32>
    %305 = arith.mulf %304, %303 : vector<32x256xf32>
    %306 = math.tanh %305 : vector<32x256xf32>
    %cst_148 = arith.constant 5.000000e-01 : f32
    %307 = vector.broadcast %cst_148 : f32 to vector<32x256xf32>
    %308 = arith.mulf %307, %306 : vector<32x256xf32>
    %cst_149 = arith.constant 5.000000e-01 : f32
    %309 = vector.broadcast %cst_149 : f32 to vector<32x256xf32>
    %310 = arith.addf %308, %309 : vector<32x256xf32>
    %311 = arith.mulf %303, %310 : vector<32x256xf32>
    %312 = arith.addf %298, %311 : vector<32x256xf32>
    %313 = vector.extract_strided_slice %312 {offsets = [0, 0], sizes = [16, 256], strides = [1, 1]} : vector<32x256xf32> to vector<16x256xf32>
    %cst_150 = arith.constant 0.202846602 : f32
    %314 = vector.broadcast %cst_150 : f32 to vector<16x256xf32>
    %315 = arith.mulf %314, %313 : vector<16x256xf32>
    %316 = vector.extract_strided_slice %312 {offsets = [16, 0], sizes = [16, 256], strides = [1, 1]} : vector<32x256xf32> to vector<16x256xf32>
    %cst_151 = arith.constant 0.083525069 : f32
    %317 = vector.broadcast %cst_151 : f32 to vector<16x256xf32>
    %318 = arith.mulf %317, %316 : vector<16x256xf32>
    %319 = arith.subf %315, %318 : vector<16x256xf32>
    %320 = arith.truncf %319 : vector<16x256xf32> to vector<16x256xbf16>
    %c0_152 = arith.constant 0 : index
    %c0_153 = arith.constant 0 : index
    %321 = vector.load %arg6[%c0_152, %c0_153] : memref<256x128xbf16, #tpu.memory_space<vmem>>, vector<256x128xbf16>
    %cst_154 = arith.constant dense<0.000000e+00> : vector<16x128xf32>
    %322 = tpu.matmul %320, %321, %cst_154 {dimension_numbers = #tpu.dot_dimension_numbers<[1], [0], [0], [1], [0, 0, 1, 1], [], []>} : vector<16x256xbf16>, vector<256x128xbf16>, vector<16x128xf32> -> vector<16x128xf32>
    %323 = vector.broadcast %275 : vector<1x128xf32> to vector<16x128xf32>
    %324 = arith.addf %322, %323 : vector<16x128xf32>
    %325 = arith.mulf %1, %324 : vector<16x128xf32>
    %326 = arith.addf %272, %325 : vector<16x128xf32>
    %c6 = arith.constant 6 : index
    %c0_155 = arith.constant 0 : index
    %327 = vector.load %arg7[%c6, %c0_155] : memref<10x256xf32, #tpu.memory_space<vmem>>, vector<1x256xf32>
    %c6_156 = arith.constant 6 : index
    %c0_157 = arith.constant 0 : index
    %328 = vector.load %arg8[%c6_156, %c0_157] : memref<10x256xf32, #tpu.memory_space<vmem>>, vector<1x256xf32>
    %c6_158 = arith.constant 6 : index
    %c0_159 = arith.constant 0 : index
    %329 = vector.load %arg9[%c6_158, %c0_159] : memref<10x128xf32, #tpu.memory_space<vmem>>, vector<1x128xf32>
    %330 = arith.truncf %326 : vector<16x128xf32> to vector<16x128xbf16>
    %c0_160 = arith.constant 0 : index
    %c0_161 = arith.constant 0 : index
    %331 = vector.load %arg4[%c0_160, %c0_161] : memref<128x256xbf16, #tpu.memory_space<vmem>>, vector<128x256xbf16>
    %cst_162 = arith.constant dense<0.000000e+00> : vector<16x256xf32>
    %332 = tpu.matmul %330, %331, %cst_162 {dimension_numbers = #tpu.dot_dimension_numbers<[1], [0], [0], [1], [0, 0, 1, 1], [], []>} : vector<16x128xbf16>, vector<128x256xbf16>, vector<16x256xf32> -> vector<16x256xf32>
    %333 = vector.broadcast %327 : vector<1x256xf32> to vector<16x256xf32>
    %334 = arith.addf %332, %333 : vector<16x256xf32>
    %335 = arith.addf %334, %2 : vector<16x256xf32>
    %cst_163 = arith.constant 5.000000e-01 : f32
    %336 = vector.broadcast %cst_163 : f32 to vector<16x256xf32>
    %337 = arith.mulf %336, %335 : vector<16x256xf32>
    %338 = math.tanh %337 : vector<16x256xf32>
    %cst_164 = arith.constant 5.000000e-01 : f32
    %339 = vector.broadcast %cst_164 : f32 to vector<16x256xf32>
    %340 = arith.mulf %339, %338 : vector<16x256xf32>
    %cst_165 = arith.constant 5.000000e-01 : f32
    %341 = vector.broadcast %cst_165 : f32 to vector<16x256xf32>
    %342 = arith.addf %340, %341 : vector<16x256xf32>
    %343 = arith.mulf %335, %342 : vector<16x256xf32>
    %cst_166 = arith.constant 5.000000e-01 : f32
    %344 = vector.broadcast %cst_166 : f32 to vector<16x256xf32>
    %345 = arith.mulf %344, %334 : vector<16x256xf32>
    %346 = math.tanh %345 : vector<16x256xf32>
    %cst_167 = arith.constant 5.000000e-01 : f32
    %347 = vector.broadcast %cst_167 : f32 to vector<16x256xf32>
    %348 = arith.mulf %347, %346 : vector<16x256xf32>
    %cst_168 = arith.constant 5.000000e-01 : f32
    %349 = vector.broadcast %cst_168 : f32 to vector<16x256xf32>
    %350 = arith.addf %348, %349 : vector<16x256xf32>
    %351 = arith.mulf %334, %350 : vector<16x256xf32>
    %352 = tpu.concatenate %343, %351 in 0 : vector<16x256xf32>, vector<16x256xf32> -> vector<32x256xf32>
    %353 = arith.truncf %352 : vector<32x256xf32> to vector<32x256xbf16>
    %c0_169 = arith.constant 0 : index
    %c0_170 = arith.constant 0 : index
    %354 = vector.load %arg5[%c0_169, %c0_170] : memref<256x256xbf16, #tpu.memory_space<vmem>>, vector<256x256xbf16>
    %cst_171 = arith.constant dense<0.000000e+00> : vector<32x256xf32>
    %355 = tpu.matmul %353, %354, %cst_171 {dimension_numbers = #tpu.dot_dimension_numbers<[1], [0], [0], [1], [0, 0, 1, 1], [], []>} : vector<32x256xbf16>, vector<256x256xbf16>, vector<32x256xf32> -> vector<32x256xf32>
    %356 = vector.broadcast %328 : vector<1x256xf32> to vector<32x256xf32>
    %357 = arith.addf %355, %356 : vector<32x256xf32>
    %cst_172 = arith.constant 5.000000e-01 : f32
    %358 = vector.broadcast %cst_172 : f32 to vector<32x256xf32>
    %359 = arith.mulf %358, %357 : vector<32x256xf32>
    %360 = math.tanh %359 : vector<32x256xf32>
    %cst_173 = arith.constant 5.000000e-01 : f32
    %361 = vector.broadcast %cst_173 : f32 to vector<32x256xf32>
    %362 = arith.mulf %361, %360 : vector<32x256xf32>
    %cst_174 = arith.constant 5.000000e-01 : f32
    %363 = vector.broadcast %cst_174 : f32 to vector<32x256xf32>
    %364 = arith.addf %362, %363 : vector<32x256xf32>
    %365 = arith.mulf %357, %364 : vector<32x256xf32>
    %366 = arith.addf %352, %365 : vector<32x256xf32>
    %367 = vector.extract_strided_slice %366 {offsets = [0, 0], sizes = [16, 256], strides = [1, 1]} : vector<32x256xf32> to vector<16x256xf32>
    %cst_175 = arith.constant 0.227451086 : f32
    %368 = vector.broadcast %cst_175 : f32 to vector<16x256xf32>
    %369 = arith.mulf %368, %367 : vector<16x256xf32>
    %370 = vector.extract_strided_slice %366 {offsets = [16, 0], sizes = [16, 256], strides = [1, 1]} : vector<32x256xf32> to vector<16x256xf32>
    %cst_176 = arith.constant 0.0936563238 : f32
    %371 = vector.broadcast %cst_176 : f32 to vector<16x256xf32>
    %372 = arith.mulf %371, %370 : vector<16x256xf32>
    %373 = arith.subf %369, %372 : vector<16x256xf32>
    %374 = arith.truncf %373 : vector<16x256xf32> to vector<16x256xbf16>
    %c0_177 = arith.constant 0 : index
    %c0_178 = arith.constant 0 : index
    %375 = vector.load %arg6[%c0_177, %c0_178] : memref<256x128xbf16, #tpu.memory_space<vmem>>, vector<256x128xbf16>
    %cst_179 = arith.constant dense<0.000000e+00> : vector<16x128xf32>
    %376 = tpu.matmul %374, %375, %cst_179 {dimension_numbers = #tpu.dot_dimension_numbers<[1], [0], [0], [1], [0, 0, 1, 1], [], []>} : vector<16x256xbf16>, vector<256x128xbf16>, vector<16x128xf32> -> vector<16x128xf32>
    %377 = vector.broadcast %329 : vector<1x128xf32> to vector<16x128xf32>
    %378 = arith.addf %376, %377 : vector<16x128xf32>
    %379 = arith.mulf %1, %378 : vector<16x128xf32>
    %380 = arith.addf %326, %379 : vector<16x128xf32>
    %c7 = arith.constant 7 : index
    %c0_180 = arith.constant 0 : index
    %381 = vector.load %arg7[%c7, %c0_180] : memref<10x256xf32, #tpu.memory_space<vmem>>, vector<1x256xf32>
    %c7_181 = arith.constant 7 : index
    %c0_182 = arith.constant 0 : index
    %382 = vector.load %arg8[%c7_181, %c0_182] : memref<10x256xf32, #tpu.memory_space<vmem>>, vector<1x256xf32>
    %c7_183 = arith.constant 7 : index
    %c0_184 = arith.constant 0 : index
    %383 = vector.load %arg9[%c7_183, %c0_184] : memref<10x128xf32, #tpu.memory_space<vmem>>, vector<1x128xf32>
    %384 = arith.truncf %380 : vector<16x128xf32> to vector<16x128xbf16>
    %c0_185 = arith.constant 0 : index
    %c0_186 = arith.constant 0 : index
    %385 = vector.load %arg4[%c0_185, %c0_186] : memref<128x256xbf16, #tpu.memory_space<vmem>>, vector<128x256xbf16>
    %cst_187 = arith.constant dense<0.000000e+00> : vector<16x256xf32>
    %386 = tpu.matmul %384, %385, %cst_187 {dimension_numbers = #tpu.dot_dimension_numbers<[1], [0], [0], [1], [0, 0, 1, 1], [], []>} : vector<16x128xbf16>, vector<128x256xbf16>, vector<16x256xf32> -> vector<16x256xf32>
    %387 = vector.broadcast %381 : vector<1x256xf32> to vector<16x256xf32>
    %388 = arith.addf %386, %387 : vector<16x256xf32>
    %389 = arith.addf %388, %2 : vector<16x256xf32>
    %cst_188 = arith.constant 5.000000e-01 : f32
    %390 = vector.broadcast %cst_188 : f32 to vector<16x256xf32>
    %391 = arith.mulf %390, %389 : vector<16x256xf32>
    %392 = math.tanh %391 : vector<16x256xf32>
    %cst_189 = arith.constant 5.000000e-01 : f32
    %393 = vector.broadcast %cst_189 : f32 to vector<16x256xf32>
    %394 = arith.mulf %393, %392 : vector<16x256xf32>
    %cst_190 = arith.constant 5.000000e-01 : f32
    %395 = vector.broadcast %cst_190 : f32 to vector<16x256xf32>
    %396 = arith.addf %394, %395 : vector<16x256xf32>
    %397 = arith.mulf %389, %396 : vector<16x256xf32>
    %cst_191 = arith.constant 5.000000e-01 : f32
    %398 = vector.broadcast %cst_191 : f32 to vector<16x256xf32>
    %399 = arith.mulf %398, %388 : vector<16x256xf32>
    %400 = math.tanh %399 : vector<16x256xf32>
    %cst_192 = arith.constant 5.000000e-01 : f32
    %401 = vector.broadcast %cst_192 : f32 to vector<16x256xf32>
    %402 = arith.mulf %401, %400 : vector<16x256xf32>
    %cst_193 = arith.constant 5.000000e-01 : f32
    %403 = vector.broadcast %cst_193 : f32 to vector<16x256xf32>
    %404 = arith.addf %402, %403 : vector<16x256xf32>
    %405 = arith.mulf %388, %404 : vector<16x256xf32>
    %406 = tpu.concatenate %397, %405 in 0 : vector<16x256xf32>, vector<16x256xf32> -> vector<32x256xf32>
    %407 = arith.truncf %406 : vector<32x256xf32> to vector<32x256xbf16>
    %c0_194 = arith.constant 0 : index
    %c0_195 = arith.constant 0 : index
    %408 = vector.load %arg5[%c0_194, %c0_195] : memref<256x256xbf16, #tpu.memory_space<vmem>>, vector<256x256xbf16>
    %cst_196 = arith.constant dense<0.000000e+00> : vector<32x256xf32>
    %409 = tpu.matmul %407, %408, %cst_196 {dimension_numbers = #tpu.dot_dimension_numbers<[1], [0], [0], [1], [0, 0, 1, 1], [], []>} : vector<32x256xbf16>, vector<256x256xbf16>, vector<32x256xf32> -> vector<32x256xf32>
    %410 = vector.broadcast %382 : vector<1x256xf32> to vector<32x256xf32>
    %411 = arith.addf %409, %410 : vector<32x256xf32>
    %cst_197 = arith.constant 5.000000e-01 : f32
    %412 = vector.broadcast %cst_197 : f32 to vector<32x256xf32>
    %413 = arith.mulf %412, %411 : vector<32x256xf32>
    %414 = math.tanh %413 : vector<32x256xf32>
    %cst_198 = arith.constant 5.000000e-01 : f32
    %415 = vector.broadcast %cst_198 : f32 to vector<32x256xf32>
    %416 = arith.mulf %415, %414 : vector<32x256xf32>
    %cst_199 = arith.constant 5.000000e-01 : f32
    %417 = vector.broadcast %cst_199 : f32 to vector<32x256xf32>
    %418 = arith.addf %416, %417 : vector<32x256xf32>
    %419 = arith.mulf %411, %418 : vector<32x256xf32>
    %420 = arith.addf %406, %419 : vector<32x256xf32>
    %421 = vector.extract_strided_slice %420 {offsets = [0, 0], sizes = [16, 256], strides = [1, 1]} : vector<32x256xf32> to vector<16x256xf32>
    %cst_200 = arith.constant 0.246454954 : f32
    %422 = vector.broadcast %cst_200 : f32 to vector<16x256xf32>
    %423 = arith.mulf %422, %421 : vector<16x256xf32>
    %424 = vector.extract_strided_slice %420 {offsets = [16, 0], sizes = [16, 256], strides = [1, 1]} : vector<32x256xf32> to vector<16x256xf32>
    %cst_201 = arith.constant 0.101481453 : f32
    %425 = vector.broadcast %cst_201 : f32 to vector<16x256xf32>
    %426 = arith.mulf %425, %424 : vector<16x256xf32>
    %427 = arith.subf %423, %426 : vector<16x256xf32>
    %428 = arith.truncf %427 : vector<16x256xf32> to vector<16x256xbf16>
    %c0_202 = arith.constant 0 : index
    %c0_203 = arith.constant 0 : index
    %429 = vector.load %arg6[%c0_202, %c0_203] : memref<256x128xbf16, #tpu.memory_space<vmem>>, vector<256x128xbf16>
    %cst_204 = arith.constant dense<0.000000e+00> : vector<16x128xf32>
    %430 = tpu.matmul %428, %429, %cst_204 {dimension_numbers = #tpu.dot_dimension_numbers<[1], [0], [0], [1], [0, 0, 1, 1], [], []>} : vector<16x256xbf16>, vector<256x128xbf16>, vector<16x128xf32> -> vector<16x128xf32>
    %431 = vector.broadcast %383 : vector<1x128xf32> to vector<16x128xf32>
    %432 = arith.addf %430, %431 : vector<16x128xf32>
    %433 = arith.mulf %1, %432 : vector<16x128xf32>
    %434 = arith.addf %380, %433 : vector<16x128xf32>
    %c8 = arith.constant 8 : index
    %c0_205 = arith.constant 0 : index
    %435 = vector.load %arg7[%c8, %c0_205] : memref<10x256xf32, #tpu.memory_space<vmem>>, vector<1x256xf32>
    %c8_206 = arith.constant 8 : index
    %c0_207 = arith.constant 0 : index
    %436 = vector.load %arg8[%c8_206, %c0_207] : memref<10x256xf32, #tpu.memory_space<vmem>>, vector<1x256xf32>
    %c8_208 = arith.constant 8 : index
    %c0_209 = arith.constant 0 : index
    %437 = vector.load %arg9[%c8_208, %c0_209] : memref<10x128xf32, #tpu.memory_space<vmem>>, vector<1x128xf32>
    %438 = arith.truncf %434 : vector<16x128xf32> to vector<16x128xbf16>
    %c0_210 = arith.constant 0 : index
    %c0_211 = arith.constant 0 : index
    %439 = vector.load %arg4[%c0_210, %c0_211] : memref<128x256xbf16, #tpu.memory_space<vmem>>, vector<128x256xbf16>
    %cst_212 = arith.constant dense<0.000000e+00> : vector<16x256xf32>
    %440 = tpu.matmul %438, %439, %cst_212 {dimension_numbers = #tpu.dot_dimension_numbers<[1], [0], [0], [1], [0, 0, 1, 1], [], []>} : vector<16x128xbf16>, vector<128x256xbf16>, vector<16x256xf32> -> vector<16x256xf32>
    %441 = vector.broadcast %435 : vector<1x256xf32> to vector<16x256xf32>
    %442 = arith.addf %440, %441 : vector<16x256xf32>
    %443 = arith.addf %442, %2 : vector<16x256xf32>
    %cst_213 = arith.constant 5.000000e-01 : f32
    %444 = vector.broadcast %cst_213 : f32 to vector<16x256xf32>
    %445 = arith.mulf %444, %443 : vector<16x256xf32>
    %446 = math.tanh %445 : vector<16x256xf32>
    %cst_214 = arith.constant 5.000000e-01 : f32
    %447 = vector.broadcast %cst_214 : f32 to vector<16x256xf32>
    %448 = arith.mulf %447, %446 : vector<16x256xf32>
    %cst_215 = arith.constant 5.000000e-01 : f32
    %449 = vector.broadcast %cst_215 : f32 to vector<16x256xf32>
    %450 = arith.addf %448, %449 : vector<16x256xf32>
    %451 = arith.mulf %443, %450 : vector<16x256xf32>
    %cst_216 = arith.constant 5.000000e-01 : f32
    %452 = vector.broadcast %cst_216 : f32 to vector<16x256xf32>
    %453 = arith.mulf %452, %442 : vector<16x256xf32>
    %454 = math.tanh %453 : vector<16x256xf32>
    %cst_217 = arith.constant 5.000000e-01 : f32
    %455 = vector.broadcast %cst_217 : f32 to vector<16x256xf32>
    %456 = arith.mulf %455, %454 : vector<16x256xf32>
    %cst_218 = arith.constant 5.000000e-01 : f32
    %457 = vector.broadcast %cst_218 : f32 to vector<16x256xf32>
    %458 = arith.addf %456, %457 : vector<16x256xf32>
    %459 = arith.mulf %442, %458 : vector<16x256xf32>
    %460 = tpu.concatenate %451, %459 in 0 : vector<16x256xf32>, vector<16x256xf32> -> vector<32x256xf32>
    %461 = arith.truncf %460 : vector<32x256xf32> to vector<32x256xbf16>
    %c0_219 = arith.constant 0 : index
    %c0_220 = arith.constant 0 : index
    %462 = vector.load %arg5[%c0_219, %c0_220] : memref<256x256xbf16, #tpu.memory_space<vmem>>, vector<256x256xbf16>
    %cst_221 = arith.constant dense<0.000000e+00> : vector<32x256xf32>
    %463 = tpu.matmul %461, %462, %cst_221 {dimension_numbers = #tpu.dot_dimension_numbers<[1], [0], [0], [1], [0, 0, 1, 1], [], []>} : vector<32x256xbf16>, vector<256x256xbf16>, vector<32x256xf32> -> vector<32x256xf32>
    %464 = vector.broadcast %436 : vector<1x256xf32> to vector<32x256xf32>
    %465 = arith.addf %463, %464 : vector<32x256xf32>
    %cst_222 = arith.constant 5.000000e-01 : f32
    %466 = vector.broadcast %cst_222 : f32 to vector<32x256xf32>
    %467 = arith.mulf %466, %465 : vector<32x256xf32>
    %468 = math.tanh %467 : vector<32x256xf32>
    %cst_223 = arith.constant 5.000000e-01 : f32
    %469 = vector.broadcast %cst_223 : f32 to vector<32x256xf32>
    %470 = arith.mulf %469, %468 : vector<32x256xf32>
    %cst_224 = arith.constant 5.000000e-01 : f32
    %471 = vector.broadcast %cst_224 : f32 to vector<32x256xf32>
    %472 = arith.addf %470, %471 : vector<32x256xf32>
    %473 = arith.mulf %465, %472 : vector<32x256xf32>
    %474 = arith.addf %460, %473 : vector<32x256xf32>
    %475 = vector.extract_strided_slice %474 {offsets = [0, 0], sizes = [16, 256], strides = [1, 1]} : vector<32x256xf32> to vector<16x256xf32>
    %cst_225 = arith.constant 0.259390295 : f32
    %476 = vector.broadcast %cst_225 : f32 to vector<16x256xf32>
    %477 = arith.mulf %476, %475 : vector<16x256xf32>
    %478 = vector.extract_strided_slice %474 {offsets = [16, 0], sizes = [16, 256], strides = [1, 1]} : vector<32x256xf32> to vector<16x256xf32>
    %cst_226 = arith.constant 0.106807768 : f32
    %479 = vector.broadcast %cst_226 : f32 to vector<16x256xf32>
    %480 = arith.mulf %479, %478 : vector<16x256xf32>
    %481 = arith.subf %477, %480 : vector<16x256xf32>
    %482 = arith.truncf %481 : vector<16x256xf32> to vector<16x256xbf16>
    %c0_227 = arith.constant 0 : index
    %c0_228 = arith.constant 0 : index
    %483 = vector.load %arg6[%c0_227, %c0_228] : memref<256x128xbf16, #tpu.memory_space<vmem>>, vector<256x128xbf16>
    %cst_229 = arith.constant dense<0.000000e+00> : vector<16x128xf32>
    %484 = tpu.matmul %482, %483, %cst_229 {dimension_numbers = #tpu.dot_dimension_numbers<[1], [0], [0], [1], [0, 0, 1, 1], [], []>} : vector<16x256xbf16>, vector<256x128xbf16>, vector<16x128xf32> -> vector<16x128xf32>
    %485 = vector.broadcast %437 : vector<1x128xf32> to vector<16x128xf32>
    %486 = arith.addf %484, %485 : vector<16x128xf32>
    %487 = arith.mulf %1, %486 : vector<16x128xf32>
    %488 = arith.addf %434, %487 : vector<16x128xf32>
    %c9 = arith.constant 9 : index
    %c0_230 = arith.constant 0 : index
    %489 = vector.load %arg7[%c9, %c0_230] : memref<10x256xf32, #tpu.memory_space<vmem>>, vector<1x256xf32>
    %c9_231 = arith.constant 9 : index
    %c0_232 = arith.constant 0 : index
    %490 = vector.load %arg8[%c9_231, %c0_232] : memref<10x256xf32, #tpu.memory_space<vmem>>, vector<1x256xf32>
    %c9_233 = arith.constant 9 : index
    %c0_234 = arith.constant 0 : index
    %491 = vector.load %arg9[%c9_233, %c0_234] : memref<10x128xf32, #tpu.memory_space<vmem>>, vector<1x128xf32>
    %492 = arith.truncf %488 : vector<16x128xf32> to vector<16x128xbf16>
    %c0_235 = arith.constant 0 : index
    %c0_236 = arith.constant 0 : index
    %493 = vector.load %arg4[%c0_235, %c0_236] : memref<128x256xbf16, #tpu.memory_space<vmem>>, vector<128x256xbf16>
    %cst_237 = arith.constant dense<0.000000e+00> : vector<16x256xf32>
    %494 = tpu.matmul %492, %493, %cst_237 {dimension_numbers = #tpu.dot_dimension_numbers<[1], [0], [0], [1], [0, 0, 1, 1], [], []>} : vector<16x128xbf16>, vector<128x256xbf16>, vector<16x256xf32> -> vector<16x256xf32>
    %495 = vector.broadcast %489 : vector<1x256xf32> to vector<16x256xf32>
    %496 = arith.addf %494, %495 : vector<16x256xf32>
    %497 = arith.addf %496, %2 : vector<16x256xf32>
    %cst_238 = arith.constant 5.000000e-01 : f32
    %498 = vector.broadcast %cst_238 : f32 to vector<16x256xf32>
    %499 = arith.mulf %498, %497 : vector<16x256xf32>
    %500 = math.tanh %499 : vector<16x256xf32>
    %cst_239 = arith.constant 5.000000e-01 : f32
    %501 = vector.broadcast %cst_239 : f32 to vector<16x256xf32>
    %502 = arith.mulf %501, %500 : vector<16x256xf32>
    %cst_240 = arith.constant 5.000000e-01 : f32
    %503 = vector.broadcast %cst_240 : f32 to vector<16x256xf32>
    %504 = arith.addf %502, %503 : vector<16x256xf32>
    %505 = arith.mulf %497, %504 : vector<16x256xf32>
    %cst_241 = arith.constant 5.000000e-01 : f32
    %506 = vector.broadcast %cst_241 : f32 to vector<16x256xf32>
    %507 = arith.mulf %506, %496 : vector<16x256xf32>
    %508 = math.tanh %507 : vector<16x256xf32>
    %cst_242 = arith.constant 5.000000e-01 : f32
    %509 = vector.broadcast %cst_242 : f32 to vector<16x256xf32>
    %510 = arith.mulf %509, %508 : vector<16x256xf32>
    %cst_243 = arith.constant 5.000000e-01 : f32
    %511 = vector.broadcast %cst_243 : f32 to vector<16x256xf32>
    %512 = arith.addf %510, %511 : vector<16x256xf32>
    %513 = arith.mulf %496, %512 : vector<16x256xf32>
    %514 = tpu.concatenate %505, %513 in 0 : vector<16x256xf32>, vector<16x256xf32> -> vector<32x256xf32>
    %515 = arith.truncf %514 : vector<32x256xf32> to vector<32x256xbf16>
    %c0_244 = arith.constant 0 : index
    %c0_245 = arith.constant 0 : index
    %516 = vector.load %arg5[%c0_244, %c0_245] : memref<256x256xbf16, #tpu.memory_space<vmem>>, vector<256x256xbf16>
    %cst_246 = arith.constant dense<0.000000e+00> : vector<32x256xf32>
    %517 = tpu.matmul %515, %516, %cst_246 {dimension_numbers = #tpu.dot_dimension_numbers<[1], [0], [0], [1], [0, 0, 1, 1], [], []>} : vector<32x256xbf16>, vector<256x256xbf16>, vector<32x256xf32> -> vector<32x256xf32>
    %518 = vector.broadcast %490 : vector<1x256xf32> to vector<32x256xf32>
    %519 = arith.addf %517, %518 : vector<32x256xf32>
    %cst_247 = arith.constant 5.000000e-01 : f32
    %520 = vector.broadcast %cst_247 : f32 to vector<32x256xf32>
    %521 = arith.mulf %520, %519 : vector<32x256xf32>
    %522 = math.tanh %521 : vector<32x256xf32>
    %cst_248 = arith.constant 5.000000e-01 : f32
    %523 = vector.broadcast %cst_248 : f32 to vector<32x256xf32>
    %524 = arith.mulf %523, %522 : vector<32x256xf32>
    %cst_249 = arith.constant 5.000000e-01 : f32
    %525 = vector.broadcast %cst_249 : f32 to vector<32x256xf32>
    %526 = arith.addf %524, %525 : vector<32x256xf32>
    %527 = arith.mulf %519, %526 : vector<32x256xf32>
    %528 = arith.addf %514, %527 : vector<32x256xf32>
    %529 = vector.extract_strided_slice %528 {offsets = [0, 0], sizes = [16, 256], strides = [1, 1]} : vector<32x256xf32> to vector<16x256xf32>
    %cst_250 = arith.constant 0.26593858 : f32
    %530 = vector.broadcast %cst_250 : f32 to vector<16x256xf32>
    %531 = arith.mulf %530, %529 : vector<16x256xf32>
    %532 = vector.extract_strided_slice %528 {offsets = [16, 0], sizes = [16, 256], strides = [1, 1]} : vector<32x256xf32> to vector<16x256xf32>
    %cst_251 = arith.constant 0.109504126 : f32
    %533 = vector.broadcast %cst_251 : f32 to vector<16x256xf32>
    %534 = arith.mulf %533, %532 : vector<16x256xf32>
    %535 = arith.subf %531, %534 : vector<16x256xf32>
    %536 = arith.truncf %535 : vector<16x256xf32> to vector<16x256xbf16>
    %c0_252 = arith.constant 0 : index
    %c0_253 = arith.constant 0 : index
    %537 = vector.load %arg6[%c0_252, %c0_253] : memref<256x128xbf16, #tpu.memory_space<vmem>>, vector<256x128xbf16>
    %cst_254 = arith.constant dense<0.000000e+00> : vector<16x128xf32>
    %538 = tpu.matmul %536, %537, %cst_254 {dimension_numbers = #tpu.dot_dimension_numbers<[1], [0], [0], [1], [0, 0, 1, 1], [], []>} : vector<16x256xbf16>, vector<256x128xbf16>, vector<16x128xf32> -> vector<16x128xf32>
    %539 = vector.broadcast %491 : vector<1x128xf32> to vector<16x128xf32>
    %540 = arith.addf %538, %539 : vector<16x128xf32>
    %541 = arith.mulf %1, %540 : vector<16x128xf32>
    %542 = arith.addf %488, %541 : vector<16x128xf32>
    %c0_255 = arith.constant 0 : index
    %c0_256 = arith.constant 0 : index
    %543 = vector.load %arg10[%c0_255, %c0_256] : memref<16x128xf32, #tpu.memory_space<vmem>>, vector<16x128xf32>
    tpu.vector_store %arg10[%c0_255, %c0_256], %542 {strides = array<i32>} : memref<16x128xf32, #tpu.memory_space<vmem>>, vector<16x128xf32>,
    return
  }
  func.func @transform_0(%arg0: i32) -> (i32, i32) {
    %c0_i32 = arith.constant 0 : i32
    %c0_i32_0 = arith.constant 0 : i32
    return %arg0, %c0_i32 : i32, i32
  }
  func.func @transform_1(%arg0: i32) -> (i32, i32) {
    %c0_i32 = arith.constant 0 : i32
    %c0_i32_0 = arith.constant 0 : i32
    return %arg0, %c0_i32 : i32, i32
  }
  func.func @transform_2(%arg0: i32) -> (i32, i32) {
    %c0_i32 = arith.constant 0 : i32
    %c0_i32_0 = arith.constant 0 : i32
    return %arg0, %c0_i32 : i32, i32
  }
  func.func @transform_3(%arg0: i32) -> (i32, i32) {
    %c0_i32 = arith.constant 0 : i32
    %c0_i32_0 = arith.constant 0 : i32
    %c0_i32_1 = arith.constant 0 : i32
    return %c0_i32, %c0_i32_0 : i32, i32
  }
  func.func @transform_4(%arg0: i32) -> (i32, i32) {
    %c0_i32 = arith.constant 0 : i32
    %c0_i32_0 = arith.constant 0 : i32
    %c0_i32_1 = arith.constant 0 : i32
    return %c0_i32, %c0_i32_0 : i32, i32
  }
  func.func @transform_5(%arg0: i32) -> (i32, i32) {
    %c0_i32 = arith.constant 0 : i32
    %c0_i32_0 = arith.constant 0 : i32
    %c0_i32_1 = arith.constant 0 : i32
    return %c0_i32, %c0_i32_0 : i32, i32
  }
  func.func @transform_6(%arg0: i32) -> (i32, i32) {
    %c0_i32 = arith.constant 0 : i32
    %c0_i32_0 = arith.constant 0 : i32
    %c0_i32_1 = arith.constant 0 : i32
    return %c0_i32, %c0_i32_0 : i32, i32
  }
  func.func @transform_7(%arg0: i32) -> (i32, i32) {
    %c0_i32 = arith.constant 0 : i32
    %c0_i32_0 = arith.constant 0 : i32
    %c0_i32_1 = arith.constant 0 : i32
    return %c0_i32, %c0_i32_0 : i32, i32
  }
  func.func @transform_8(%arg0: i32) -> (i32, i32) {
    %c0_i32 = arith.constant 0 : i32
    %c0_i32_0 = arith.constant 0 : i32
    %c0_i32_1 = arith.constant 0 : i32
    return %c0_i32, %c0_i32_0 : i32, i32
  }
  func.func @transform_9(%arg0: i32) -> (i32, i32) {
    %c0_i32 = arith.constant 0 : i32
    %c0_i32_0 = arith.constant 0 : i32
    return %arg0, %c0_i32 : i32, i32
  }
}

</mosaic_0001>

<bundles_post_ra>
// kernel: tpu_custom_call.1
= control target key start
LH: loop header
LB: loop body
LE: loop exit
PB: predicated region body
PF: predicated region fallthrough
CT: control target
= control target key end

     0   :  { %14 = vsyncpa [#allocation3], 0  ;;  %s6417_s0 = inlined_call_operand.hbm [shape: f32[16,128], index: 0, kind: input, shape index: {}]   ;;  %s6418_s1 = inlined_call_operand.hbm [shape: f32[16,128], index: 1, kind: input, shape index: {}]   ;;  %s6419_s2 = inlined_call_operand.hbm [shape: f32[16,256], index: 2, kind: input, shape index: {}]   ;;  %s6420_s3 = inlined_call_operand.hbm [shape: bf16[128,256], index: 3, kind: input, shape index: {}]   ;;  %s6421_s4 = inlined_call_operand.hbm [shape: bf16[256,256], index: 4, kind: input, shape index: {}]   ;;  %s6422_s5 = inlined_call_operand.hbm [shape: bf16[256,128], index: 5, kind: input, shape index: {}]   ;;  %s6423_s6 = inlined_call_operand.hbm [shape: f32[10,256], index: 6, kind: input, shape index: {}]   ;;  %s6424_s7 = inlined_call_operand.hbm [shape: f32[10,256], index: 7, kind: input, shape index: {}]   ;;  %s6425_s8 = inlined_call_operand.vmem [shape: f32[10,128], index: 8, kind: input, shape index: {}]   ;;  %s6426_s9 = inlined_call_operand.hbm [shape: f32[16,128], index: 9, kind: output, shape index: {}]  }
   0x1   :  { %15 = vsyncpa [#allocation6], 0 }
   0x2   :  { %16 = vsyncpa [#allocation9], 0 }
   0x3   :  { %17 = vsyncpa [#allocation12], 0 }
   0x4   :  { %18 = vsyncpa [#allocation15], 0 }
   0x5   :  { %19 = vsyncpa [#allocation4], 0  ;;  %s4556_s30 = smov [#allocation5]   ;;  %s4557_s11 = smov [#allocation8]  }
   0x6   :  { %s37_s10 = sshll.u32 %s4556_s30, 4  ;;  %s61_s12 = sshll.u32 %s4557_s11, 4  ;;  %s38_s10 = int_to_ptr.vmem [resolvable:$true] %s37_s10  ;;  %s4622_s12 = int_to_ptr.vmem [resolvable:$true] %s61_s12 }
   0x7   :  { %s4346_s15 = scalar_lea.hbm %s6418_s1, 256 }
   0x8   :  { %p4347_p0 = scmp.ne.s32.totalorder %s6418_s1, %s4346_s15  ;;  %p4350_p1 = scmp.lt.u32.totalorder %s4346_s15, %s6418_s1 }
   0xa   :  { %p4352_p2 = pnand %p4350_p1, %p4347_p0 }
   0xc   :  { %4355 = shalt.err (!%p4352_p2)
}
   0xd   :  { %s4356_s20 = scalar_lea.vmem %s38_s10, 256  ;;  %p4361_p4 = scmp.lt.s32.totalorder %s38_s10, %s38_s10 }
   0xe   :  { %p4357_p3 = scmp.ne.s32.totalorder %s38_s10, %s4356_s20  ;;  %p4362_p5 = scmp.lt.s32.totalorder %s4356_s20, %s4356_s20 }
  0x10   :  { %p4363_p6 = por %p4362_p5, %p4361_p4 }
  0x12   :  { %p4364_p7 = pnand %p4363_p6, %p4357_p3 }
  0x14   :  { %4367 = shalt.err (!%p4364_p7)
}
  0x15   :  { %s4558_s21 = smov 128   ;;  %s4559_s22 = smov 8  }
  0x16   :  { %43 = dma.hbm_to_vmem [thread:$0]  %s6418_s1, 256, %s38_s10, [#allocation6], %s4558_s21, %s4558_s21, %s4559_s22  }
  0x17   :  { %s4368_s27 = scalar_lea.hbm %s6420_s3, 2048 }
  0x18   :  { %p4369_p8 = scmp.ne.s32.totalorder %s6420_s3, %s4368_s27  ;;  %p4372_p9 = scmp.lt.u32.totalorder %s4368_s27, %s6420_s3 }
  0x1a   :  { %p4374_p10 = pnand %p4372_p9, %p4369_p8 }
  0x1c   :  { %4377 = shalt.err (!%p4374_p10)
}
  0x1d   :  { %s4378_s13 = scalar_lea.vmem %s4622_s12, 2048  ;;  %p4383_p12 = scmp.lt.s32.totalorder %s4622_s12, %s4622_s12 }
  0x1e   :  { %p4379_p11 = scmp.ne.s32.totalorder %s4622_s12, %s4378_s13  ;;  %p4384_p13 = scmp.lt.s32.totalorder %s4378_s13, %s4378_s13 }
  0x20   :  { %p4385_p0 = por %p4384_p13, %p4383_p12 }
  0x22   :  { %p4386_p1 = pnand %p4385_p0, %p4379_p11 }
  0x24   :  { %4389 = shalt.err (!%p4386_p1)
}
  0x25   :  { %67 = dma.hbm_to_vmem [thread:$0]  %s6420_s3, 2048, %s4622_s12, [#allocation9], %s4558_s21, %s4558_s21, %s4559_s22  }
  0x26   :  { %s4560_s14 = smov [#allocation11]   ;;  %s4390_s18 = scalar_lea.hbm %s6422_s5, 2048 }
  0x27   :  { %s85_s15 = sshll.u32 %s4560_s14, 4  ;;  %p4391_p2 = scmp.ne.s32.totalorder %s6422_s5, %s4390_s18  ;;  %s86_s15 = int_to_ptr.vmem [resolvable:$true] %s85_s15 }
  0x28   :  { %p4394_p3 = scmp.lt.u32.totalorder %s4390_s18, %s6422_s5 }
  0x2a   :  { %p4396_p4 = pnand %p4394_p3, %p4391_p2 }
  0x2c   :  { %4399 = shalt.err (!%p4396_p4)
}
  0x2d   :  { %s4400_s25 = scalar_lea.vmem %s86_s15, 2048  ;;  %p4405_p6 = scmp.lt.s32.totalorder %s86_s15, %s86_s15 }
  0x2e   :  { %p4401_p5 = scmp.ne.s32.totalorder %s86_s15, %s4400_s25  ;;  %p4406_p7 = scmp.lt.s32.totalorder %s4400_s25, %s4400_s25 }
  0x30   :  { %p4407_p8 = por %p4406_p7, %p4405_p6 }
  0x32   :  { %p4408_p9 = pnand %p4407_p8, %p4401_p5 }
  0x34   :  { %4411 = shalt.err (!%p4408_p9)
}
  0x35   :  { %s4561_s3 = smov 64   ;;  %s4562_s12 = smov 4  }
  0x36   :  { %91 = dma.hbm_to_vmem [thread:$0]  %s6422_s5, 2048, %s86_s15, [#allocation12], %s4561_s3, %s4561_s3, %s4562_s12  }
  0x37   :  { %s4563_s28 = smov [#allocation2]   ;;  %s4564_s30 = smov [#allocation7]  }
  0x38   :  { %s25_s29 = sshll.u32 %s4563_s28, 4  ;;  %s49_s11 = sshll.u32 %s4564_s30, 4  ;;  %s26_s29 = int_to_ptr.vmem [resolvable:$true] %s25_s29  ;;  %s50_s11 = int_to_ptr.vmem [resolvable:$true] %s49_s11 }
  0x39   :  { %s4412_s10 = scalar_lea.hbm %s6417_s0, 256 }
  0x3a   :  { %p4413_p10 = scmp.ne.s32.totalorder %s6417_s0, %s4412_s10  ;;  %p4416_p11 = scmp.lt.u32.totalorder %s4412_s10, %s6417_s0 }
  0x3c   :  { %p4418_p12 = pnand %p4416_p11, %p4413_p10 }
  0x3e   :  { %4421 = shalt.err (!%p4418_p12)
}
  0x3f   :  { %s4422_s5 = scalar_lea.vmem %s26_s29, 256  ;;  %p4427_p0 = scmp.lt.s32.totalorder %s26_s29, %s26_s29 }
  0x40   :  { %p4423_p13 = scmp.ne.s32.totalorder %s26_s29, %s4422_s5  ;;  %p4428_p1 = scmp.lt.s32.totalorder %s4422_s5, %s4422_s5 }
  0x42   :  { %p4429_p2 = por %p4428_p1, %p4427_p0 }
  0x44   :  { %p4430_p3 = pnand %p4429_p2, %p4423_p13 }
  0x46   :  { %4433 = shalt.err (!%p4430_p3)
}
  0x47   :  { %31 = dma.hbm_to_vmem [thread:$0]  %s6417_s0, 256, %s26_s29, [#allocation3], %s4558_s21, %s4558_s21, %s4559_s22  }
  0x48   :  { %s4434_s24 = scalar_lea.hbm %s6419_s2, 512 }
  0x49   :  { %p4435_p4 = scmp.ne.s32.totalorder %s6419_s2, %s4434_s24  ;;  %p4438_p5 = scmp.lt.u32.totalorder %s4434_s24, %s6419_s2 }
  0x4b   :  { %p4440_p6 = pnand %p4438_p5, %p4435_p4 }
  0x4d   :  { %4443 = shalt.err (!%p4440_p6)
}
  0x4e   :  { %s4444_s27 = scalar_lea.vmem %s50_s11, 512  ;;  %p4449_p8 = scmp.lt.s32.totalorder %s50_s11, %s50_s11 }
  0x4f   :  { %p4445_p7 = scmp.ne.s32.totalorder %s50_s11, %s4444_s27  ;;  %p4450_p9 = scmp.lt.s32.totalorder %s4444_s27, %s4444_s27 }
  0x51   :  { %p4451_p10 = por %p4450_p9, %p4449_p8 }
  0x53   :  { %p4452_p11 = pnand %p4451_p10, %p4445_p7 }
  0x55   :  { %4455 = shalt.err (!%p4452_p11)
}
  0x56   :  { %s4565_s0 = smov 256   ;;  %s4566_s28 = smov 16  }
  0x57   :  { %55 = dma.hbm_to_vmem [thread:$0]  %s6419_s2, 512, %s50_s11, [#allocation6], %s4565_s0, %s4565_s0, %s4566_s28  }
  0x58   :  { %s4567_s13 = smov [#allocation10]   ;;  %s4568_s10 = smov [#allocation13]  }
  0x59   :  { %s73_s1 = sshll.u32 %s4567_s13, 4  ;;  %s97_s14 = sshll.u32 %s4568_s10, 4  ;;  %s74_s1 = int_to_ptr.vmem [resolvable:$true] %s73_s1  ;;  %s98_s14 = int_to_ptr.vmem [resolvable:$true] %s97_s14 }
  0x5a   :  { %s4456_s18 = scalar_lea.hbm %s6421_s4, 4096 }
  0x5b   :  { %p4457_p12 = scmp.ne.s32.totalorder %s6421_s4, %s4456_s18  ;;  %p4460_p13 = scmp.lt.u32.totalorder %s4456_s18, %s6421_s4 }
  0x5d   :  { %p4462_p0 = pnand %p4460_p13, %p4457_p12 }
  0x5f   :  { %4465 = shalt.err (!%p4462_p0)
}
  0x60   :  { %s4466_s2 = scalar_lea.vmem %s74_s1, 4096  ;;  %p4471_p2 = scmp.lt.s32.totalorder %s74_s1, %s74_s1 }
  0x61   :  { %p4467_p1 = scmp.ne.s32.totalorder %s74_s1, %s4466_s2  ;;  %p4472_p3 = scmp.lt.s32.totalorder %s4466_s2, %s4466_s2 }
  0x63   :  { %p4473_p4 = por %p4472_p3, %p4471_p2 }
  0x65   :  { %p4474_p5 = pnand %p4473_p4, %p4467_p1 }
  0x67   :  { %4477 = shalt.err (!%p4474_p5)
}
  0x68   :  { %79 = dma.hbm_to_vmem [thread:$0]  %s6421_s4, 4096, %s74_s1, [#allocation9], %s4558_s21, %s4558_s21, %s4559_s22  }
  0x69   :  { %s4478_s3 = scalar_lea.hbm %s6423_s6, 512 }
  0x6a   :  { %p4479_p6 = scmp.ne.s32.totalorder %s6423_s6, %s4478_s3  ;;  %p4482_p7 = scmp.lt.u32.totalorder %s4478_s3, %s6423_s6 }
  0x6c   :  { %p4484_p8 = pnand %p4482_p7, %p4479_p6 }
  0x6e   :  { %4487 = shalt.err (!%p4484_p8)
}
  0x6f   :  { %s4488_s30 = scalar_lea.vmem %s98_s14, 512  ;;  %p4493_p10 = scmp.lt.s32.totalorder %s98_s14, %s98_s14 }
  0x70   :  { %p4489_p9 = scmp.ne.s32.totalorder %s98_s14, %s4488_s30  ;;  %p4494_p11 = scmp.lt.s32.totalorder %s4488_s30, %s4488_s30 }
  0x72   :  { %p4495_p12 = por %p4494_p11, %p4493_p10 }
  0x74   :  { %p4496_p13 = pnand %p4495_p12, %p4489_p9 }
  0x76   :  { %4499 = shalt.err (!%p4496_p13)
}
  0x77   :  { %103 = dma.hbm_to_vmem [thread:$0]  %s6423_s6, 512, %s98_s14, [#allocation12], %s4565_s0, %s4565_s0, %s4566_s28  }
  0x78   :  { %s4569_s1 = smov [#allocation14]   ;;  %s4500_s18 = scalar_lea.hbm %s6424_s7, 512 }
  0x79   :  { %s109_s10 = sshll.u32 %s4569_s1, 4  ;;  %p4501_p0 = scmp.ne.s32.totalorder %s6424_s7, %s4500_s18  ;;  %s110_s10 = int_to_ptr.vmem [resolvable:$true] %s109_s10 }
  0x7a   :  { %p4504_p1 = scmp.lt.u32.totalorder %s4500_s18, %s6424_s7 }
  0x7c   :  { %p4506_p2 = pnand %p4504_p1, %p4501_p0 }
  0x7e   :  { %4509 = shalt.err (!%p4506_p2)
}
  0x7f   :  { %s4510_s2 = scalar_lea.vmem %s110_s10, 512  ;;  %p4515_p4 = scmp.lt.s32.totalorder %s110_s10, %s110_s10 }
  0x80   :  { %p4511_p3 = scmp.ne.s32.totalorder %s110_s10, %s4510_s2  ;;  %p4516_p5 = scmp.lt.s32.totalorder %s4510_s2, %s4510_s2 }
  0x82   :  { %p4517_p6 = por %p4516_p5, %p4515_p4 }
  0x84   :  { %p4518_p7 = pnand %p4517_p6, %p4511_p3 }
  0x86   :  { %4521 = shalt.err (!%p4518_p7)
}
  0x87   :  { %115 = dma.hbm_to_vmem [thread:$0]  %s6424_s7, 512, %s110_s10, [#allocation15], %s4565_s0, %s4565_s0, %s4566_s28  }
  0x88   :  { %4544 = dma.done.wait [#allocation3], 256  }
  0x89   :  { %4545 = vsyncadd [#allocation3], 4294967040 }
  0x8a   :  { %4546 = dma.done.wait [#allocation6], 768  }
  0x8b   :  { %4547 = vsyncadd [#allocation6], 4294966528 }
  0x8c   :  { %4548 = dma.done.wait [#allocation9], 6144  }
  0x8d   :  { %4549 = vsyncadd [#allocation9], 4294961152 }
  0x8e   :  { %4550 = dma.done.wait [#allocation12], 2560  }
  0x8f   :  { %4551 = vsyncadd [#allocation12], 4294964736 }
  0x90   :  { %4552 = dma.done.wait [#allocation15], 512  }
  0x91   :  { %4553 = vsyncadd [#allocation15], 4294966784  ;;  %v6427_v0 = vmov 0   ;;  %v4747_v1 = vld [vmem:[#allocation8 + $0x4] ss:$8 sps:$4 sm:$0xff]   ;;  %v172_v52 = vlaneseq  ;;  %s4571_s5 = smov [#allocation16]  }
  0x92   :  { %294 = vmatprep.mubr.bf16.mxu0 %v6427_v0  ;;  %v4749_v2 = vld [vmem:[#allocation8] ss:$8 sps:$4 sm:$0xff]   ;;  %262 = vmatprep.subr.bf16.mxu0 %v4747_v1  ;;  %v4752_v3 = vld [vmem:[#allocation8 + $0x14] ss:$8 sps:$4 sm:$0xff]   ;;  %v4755_v4 = vld [vmem:[#allocation8 + $0x10] ss:$8 sps:$4 sm:$0xff]  }
  0x93   :  { %6668 = vst [vmem:[#allocation23_spill] sm:$0xff] %v4749_v2  ;;  %6669 = vst [vmem:[#allocation24_spill] sm:$0xff] %v4752_v3  ;;  %263 = vmatpush1.bf16.msra.mxu0 %v4749_v2  ;;  %v4758_v5 = vld [vmem:[#allocation8 + $0x24] ss:$8 sps:$4 sm:$0xff]   ;;  %v4761_v6 = vld [vmem:[#allocation8 + $0x20] ss:$8 sps:$4 sm:$0xff]  }
  0x94   :  { %6670 = vst [vmem:[#allocation25_spill] sm:$0xff] %v4755_v4  ;;  %264 = vmatprep.subr.bf16.mxu0 %v4752_v3  ;;  %6671 = vst [vmem:[#allocation26_spill] sm:$0xff] %v4758_v5  ;;  %v4764_v7 = vld [vmem:[#allocation8 + $0x34] ss:$8 sps:$4 sm:$0xff]   ;;  %v4766_v8 = vld [vmem:[#allocation8 + $0x30] ss:$8 sps:$4 sm:$0xff]  }
  0x95   :  { %6672 = vst [vmem:[#allocation27_spill] sm:$0xff] %v4761_v6  ;;  %6673 = vst [vmem:[#allocation28_spill] sm:$0xff] %v4764_v7  ;;  %v4769_v9 = vld [vmem:[#allocation8 + $0x44] ss:$8 sps:$4 sm:$0xff]   ;;  %v4774_v11 = vld [vmem:[#allocation10] ss:$8 sps:$4 sm:$0xff]  }
  0x96   :  { %6674 = vst [vmem:[#allocation29_spill] sm:$0xff] %v4766_v8  ;;  %6675 = vst [vmem:[#allocation30_spill] sm:$0xff] %v4769_v9  ;;  %v4772_v10 = vld [vmem:[#allocation10 + $0x4] ss:$8 sps:$4 sm:$0xff]   ;;  %v4776_v12 = vld [vmem:[#allocation10 + $0x14] ss:$8 sps:$4 sm:$0xff]  }
  0x97   :  { %265 = vmatpush1.bf16.msra.mxu0 %v4755_v4  ;;  %v4778_v13 = vld [vmem:[#allocation8 + $0x40] ss:$8 sps:$4 sm:$0xff]   ;;  %556 = vmatprep.subr.bf16.mxu1 %v4772_v10  ;;  %v4783_v14 = vld [vmem:[#allocation10 + $0x10] ss:$8 sps:$4 sm:$0xff]   ;;  %v4786_v15 = vld [vmem:[#allocation8 + $0x54] ss:$8 sps:$4 sm:$0xff]  }
  0x98   :  { %266 = vmatprep.subr.bf16.mxu0 %v4758_v5  ;;  %6676 = vst [vmem:[#allocation31_spill] sm:$0xff] %v4778_v13  ;;  %557 = vmatpush1.bf16.msra.mxu1 %v4774_v11  ;;  %6677 = vst [vmem:[#allocation32_spill] sm:$0xff] %v4786_v15  ;;  %v4789_v16 = vld [vmem:[#allocation10 + $0x24] ss:$8 sps:$4 sm:$0xff]   ;;  %v4791_v17 = vld [vmem:[#allocation8 + $0x50] ss:$8 sps:$4 sm:$0xff]  }
  0x99   :  { %558 = vmatprep.subr.bf16.mxu1 %v4776_v12  ;;  %6678 = vst [vmem:[#allocation33_spill] sm:$0xff] %v4791_v17  ;;  %v4795_v18 = vld [vmem:[#allocation10 + $0x20] ss:$8 sps:$4 sm:$0xff]   ;;  %v4798_v19 = vld [vmem:[#allocation8 + $0x64] ss:$8 sps:$4 sm:$0xff]   ;;  %v173_v53 = vshrl.u32 %v172_v52, 7 }
  0x9a   :  { %6679 = vst [vmem:[#allocation34_spill] sm:$0xff] %v4798_v19  ;;  %v4801_v20 = vld [vmem:[#allocation10 + $0x34] ss:$8 sps:$4 sm:$0xff]   ;;  %v4803_v21 = vld [vmem:[#allocation8 + $0x60] ss:$8 sps:$4 sm:$0xff]   ;;  %s3402_s15 = sshll.u32 %s4571_s5, 4  ;;  %s3403_s15 = int_to_ptr.vmem [resolvable:$true] %s3402_s15 }
  0x9b   :  { %267 = vmatpush1.bf16.msra.mxu0 %v4761_v6  ;;  %6680 = vst [vmem:[#allocation35_spill] sm:$0xff] %v4801_v20  ;;  %6681 = vst [vmem:[#allocation36_spill] sm:$0xff] %v4803_v21  ;;  %v4806_v22 = vld [vmem:[#allocation8 + $0x74] ss:$8 sps:$4 sm:$0xff]   ;;  %v4809_v23 = vld [vmem:[#allocation10 + $0x30] ss:$8 sps:$4 sm:$0xff]   ;;  %p4527_p9 = scmp.lt.s32.totalorder %s3403_s15, %s3403_s15 }
  0x9c   :  { %268 = vmatprep.subr.bf16.mxu0 %v4764_v7  ;;  %559 = vmatpush1.bf16.msra.mxu1 %v4783_v14  ;;  %6682 = vst [vmem:[#allocation37_spill] sm:$0xff] %v4806_v22  ;;  %6683 = vst [vmem:[#allocation38_spill] sm:$0xff] %v4809_v23  ;;  %v4811_v24 = vld [vmem:[#allocation10 + $0x44] ss:$8 sps:$4 sm:$0xff]   ;;  %v4815_v25 = vld [vmem:[#allocation8 + $0x70] ss:$8 sps:$4 sm:$0xff]  }
  0x9d   :  { %560 = vmatprep.subr.bf16.mxu1 %v4789_v16  ;;  %6684 = vst [vmem:[#allocation39_spill] sm:$0xff] %v4811_v24  ;;  %6685 = vst [vmem:[#allocation40_spill] sm:$0xff] %v4815_v25  ;;  %v4817_v26 = vld [vmem:[#allocation2] sm:$0xff]  ;;  %v4819_v27 = vld [vmem:[#allocation2 + $0x8] sm:$0xff]  ;;  %v4898_v54 = vsub.s32 0, %v173_v53  ;;  %v4900_v56 = vsub.s32 1, %v173_v53 }
  0x9e   :  { %6686 = vst [vmem:[#allocation41_spill] sm:$0xff] %v4817_v26  ;;  %6687 = vst [vmem:[#allocation42_spill] sm:$0xff] %v4819_v27  ;;  %v4821_v28 = vld [vmem:[#allocation10 + $0x40] ss:$8 sps:$4 sm:$0xff]   ;;  %v4823_v29 = vld [vmem:[#allocation10 + $0x54] ss:$8 sps:$4 sm:$0xff]   ;;  %v154_v31 = vpack.c.bf16 %v4819_v27, %v4817_v26 }
  0x9f   :  { %269 = vmatpush1.bf16.msra.mxu0 %v4766_v8  ;;  %6688 = vst [vmem:[#allocation43_spill] sm:$0xff] %v4821_v28  ;;  %6689 = vst [vmem:[#allocation44_spill] sm:$0xff] %v4823_v29  ;;  %v4829_v30 = vld [vmem:[#allocation10 + $0x50] ss:$8 sps:$4 sm:$0xff]   ;;  %v4833_v32 = vld [vmem:[#allocation10 + $0x64] ss:$8 sps:$4 sm:$0xff]  }
  0xa0   :  { %270 = vmatprep.subr.bf16.mxu0 %v4769_v9  ;;  %561 = vmatpush1.bf16.msra.mxu1 %v4795_v18  ;;  %6690 = vst [vmem:[#allocation45_spill] sm:$0xff] %v4829_v30  ;;  %6691 = vst [vmem:[#allocation46_spill] sm:$0xff] %v4833_v32  ;;  %v4838_v33 = vld [vmem:[#allocation10 + $0x60] ss:$8 sps:$4 sm:$0xff]   ;;  %v4840_v34 = vld [vmem:[#allocation10 + $0x74] ss:$8 sps:$4 sm:$0xff]  }
  0xa1   :  { %562 = vmatprep.subr.bf16.mxu1 %v4801_v20  ;;  %6692 = vst [vmem:[#allocation47_spill] sm:$0xff] %v4838_v33  ;;  %6693 = vst [vmem:[#allocation48_spill] sm:$0xff] %v4840_v34  ;;  %v4845_v35 = vld [vmem:[#allocation10 + $0x70] ss:$8 sps:$4 sm:$0xff]   ;;  %v4848_v36 = vld [vmem:[#allocation10 + $0x84] ss:$8 sps:$4 sm:$0xff]  }
  0xa2   :  { %6694 = vst [vmem:[#allocation49_spill] sm:$0xff] %v4845_v35  ;;  %6695 = vst [vmem:[#allocation50_spill] sm:$0xff] %v4848_v36  ;;  %v4851_v37 = vld [vmem:[#allocation10 + $0x80] ss:$8 sps:$4 sm:$0xff]   ;;  %v4855_v38 = vld [vmem:[#allocation10 + $0x94] ss:$8 sps:$4 sm:$0xff]  }
  0xa3   :  { %271 = vmatpush1.bf16.msra.mxu0 %v4778_v13  ;;  %6696 = vst [vmem:[#allocation51_spill] sm:$0xff] %v4851_v37  ;;  %6697 = vst [vmem:[#allocation52_spill] sm:$0xff] %v4855_v38  ;;  %v4858_v39 = vld [vmem:[#allocation10 + $0x90] ss:$8 sps:$4 sm:$0xff]   ;;  %v4861_v40 = vld [vmem:[#allocation10 + $0xa4] ss:$8 sps:$4 sm:$0xff]  }
  0xa4   :  { %272 = vmatprep.subr.bf16.mxu0 %v4786_v15  ;;  %563 = vmatpush1.bf16.msra.mxu1 %v4809_v23  ;;  %6698 = vst [vmem:[#allocation53_spill] sm:$0xff] %v4858_v39  ;;  %6699 = vst [vmem:[#allocation54_spill] sm:$0xff] %v4861_v40  ;;  %v4863_v41 = vld [vmem:[#allocation10 + $0xa0] ss:$8 sps:$4 sm:$0xff]   ;;  %v4867_v42 = vld [vmem:[#allocation10 + $0xb4] ss:$8 sps:$4 sm:$0xff]  }
  0xa5   :  { %564 = vmatprep.subr.bf16.mxu1 %v4811_v24  ;;  %6700 = vst [vmem:[#allocation55_spill] sm:$0xff] %v4863_v41  ;;  %6701 = vst [vmem:[#allocation56_spill] sm:$0xff] %v4867_v42  ;;  %v4869_v43 = vld [vmem:[#allocation10 + $0xb0] ss:$8 sps:$4 sm:$0xff]   ;;  %v4873_v44 = vld [vmem:[#allocation10 + $0xc4] ss:$8 sps:$4 sm:$0xff]  }
  0xa6   :  { %6702 = vst [vmem:[#allocation57_spill] sm:$0xff] %v4869_v43  ;;  %6703 = vst [vmem:[#allocation58_spill] sm:$0xff] %v4873_v44  ;;  %v4875_v45 = vld [vmem:[#allocation10 + $0xc0] ss:$8 sps:$4 sm:$0xff]   ;;  %v4879_v46 = vld [vmem:[#allocation10 + $0xd4] ss:$8 sps:$4 sm:$0xff]  }
  0xa7   :  { %273 = vmatpush1.bf16.msra.mxu0 %v4791_v17  ;;  %6704 = vst [vmem:[#allocation59_spill] sm:$0xff] %v4875_v45  ;;  %6705 = vst [vmem:[#allocation60_spill] sm:$0xff] %v4879_v46  ;;  %v4881_v47 = vld [vmem:[#allocation10 + $0xd0] ss:$8 sps:$4 sm:$0xff]   ;;  %v4885_v48 = vld [vmem:[#allocation10 + $0xe4] ss:$8 sps:$4 sm:$0xff]  }
  0xa8   :  { %274 = vmatprep.subr.bf16.mxu0 %v4798_v19  ;;  %565 = vmatpush1.bf16.msra.mxu1 %v4821_v28  ;;  %6706 = vst [vmem:[#allocation61_spill] sm:$0xff] %v4881_v47  ;;  %6707 = vst [vmem:[#allocation62_spill] sm:$0xff] %v4885_v48  ;;  %v4887_v49 = vld [vmem:[#allocation10 + $0xe0] ss:$8 sps:$4 sm:$0xff]   ;;  %v4891_v50 = vld [vmem:[#allocation10 + $0xf4] ss:$8 sps:$4 sm:$0xff]  }
  0xa9   :  { %566 = vmatprep.subr.bf16.mxu1 %v4823_v29  ;;  %6708 = vst [vmem:[#allocation63_spill] sm:$0xff] %v4887_v49  ;;  %6709 = vst [vmem:[#allocation64_spill] sm:$0xff] %v4891_v50  ;;  %v4893_v51 = vld [vmem:[#allocation10 + $0xf0] ss:$8 sps:$4 sm:$0xff]   ;;  %v4904_v59 = vld [vmem:[#allocation7] sm:$0xff] }
  0xaa   :  { %6710 = vst [vmem:[#allocation65_spill] sm:$0xff] %v4893_v51  ;;  %6711 = vst [vmem:[#allocation66_spill] sm:$0xff] %v4898_v54  ;;  %v151_v55 = vld [vmem:[#allocation13] ss:$8 sm:$0x3]  ;;  %v4910_v0 = vld [vmem:[#allocation7 + $0x10] sm:$0xff] }
  0xab   :  { %275 = vmatpush1.bf16.msra.mxu0 %v4803_v21  ;;  %6712 = vst [vmem:[#allocation67_spill] sm:$0xff] %v4900_v56  ;;  %v175_v57 = vrot.slane %v151_v55, %v4898_v54  ;;  %v179_v58 = vrot.slane %v151_v55, %v4900_v56  ;;  %6713 = vst [vmem:[#allocation68_spill] sm:$0xff] %v4904_v59  ;;  %v4908_v63 = vld [vmem:[#allocation7 + $0x8] sm:$0xff] }
  0xac   :  { %276 = vmatprep.subr.bf16.mxu0 %v4806_v22  ;;  %567 = vmatpush1.bf16.msra.mxu1 %v4829_v30  ;;  %6714 = vst [vmem:[#allocation69_spill] sm:$0xff] %v4908_v63  ;;  %6715 = vst [vmem:[#allocation70_spill] sm:$0xff] %v4910_v0 }
  0xad   :  { %568 = vmatprep.subr.bf16.mxu1 %v4833_v32 }
  0xaf   :  { %277 = vmatpush1.bf16.msra.mxu0 %v4815_v25  ;;  %v4914_v25 = vld [vmem:[#allocation7 + $0x18] sm:$0xff] }
  0xb0   :  { %569 = vmatpush1.bf16.msra.mxu1 %v4838_v33  ;;  %6716 = vst [vmem:[#allocation71_spill] sm:$0xff] %v4914_v25 }
  0xb1   :  { %570 = vmatprep.subr.bf16.mxu1 %v4840_v34 }
  0xb2   :  { %295 = vmatmul.mubr.bf16.vlgmr.msra.gmra.mrb[0].mxu0 %v154_v31 }
  0xb4   :  { %571 = vmatpush1.bf16.msra.mxu1 %v4845_v35 }
  0xb5   :  { %572 = vmatprep.subr.bf16.mxu1 %v4848_v36 }
  0xb8   :  { %573 = vmatpush1.bf16.msra.mxu1 %v4851_v37 }
  0xb9   :  { %574 = vmatprep.subr.bf16.mxu1 %v4855_v38 }
  0xbc   :  { %575 = vmatpush1.bf16.msra.mxu1 %v4858_v39 }
  0xbd   :  { %576 = vmatprep.subr.bf16.mxu1 %v4861_v40 }
  0xc0   :  { %577 = vmatpush1.bf16.msra.mxu1 %v4863_v41 }
  0xc1   :  { %578 = vmatprep.subr.bf16.mxu1 %v4867_v42 }
  0xc4   :  { %579 = vmatpush1.bf16.msra.mxu1 %v4869_v43 }
  0xc5   :  { %580 = vmatprep.subr.bf16.mxu1 %v4873_v44 }
  0xc8   :  { %581 = vmatpush1.bf16.msra.mxu1 %v4875_v45 }
  0xc9   :  { %582 = vmatprep.subr.bf16.mxu1 %v4879_v46 }
  0xcc   :  { %583 = vmatpush1.bf16.msra.mxu1 %v4881_v47 }
  0xcd   :  { %584 = vmatprep.subr.bf16.mxu1 %v4885_v48 }
  0xd0   :  { %585 = vmatpush1.bf16.msra.mxu1 %v4887_v49 }
  0xd1   :  { %586 = vmatprep.subr.bf16.mxu1 %v4891_v50 }
  0xd4   :  { %587 = vmatpush1.bf16.msra.mxu1 %v4893_v51 }
  0xd5   :  { %967 = vmatprep.subr.bf16.mxu1 %v4772_v10 }
 0x185   :  { %v296_v60 = vpop.f32.mrb[0].mxu0 }
 0x186   :  { %v4906_v61 = vadd.f32 %v296_v60, %v175_v57  ;;  %v298_v62 = vpop.f32.mrb[1].mxu0 }
 0x187   :  { %v299_v31 = vadd.f32 %v298_v62, %v179_v58  ;;  %v300_v52 = vpop.f32.mrb[2].mxu0 }
 0x188   :  { %v305_v53 = vadd.f32 %v4906_v61, %v4904_v59  ;;  %v301_v27 = vadd.f32 %v300_v52, %v175_v57  ;;  %v302_v26 = vpop.f32.mrb[3].mxu0  ;;  %v329_v52 = vmul.f32 0.5, %v4906_v61 }
 0x189   :  { %v330_v55 = vmul.f32 0.5, %v299_v31  ;;  %v303_v22 = vadd.f32 %v302_v26, %v179_v58  ;;  %v306_v21 = vadd.f32 %v299_v31, %v4908_v63 }
 0x18a   :  { %v309_v60 = vmul.f32 0.5, %v305_v53  ;;  %v307_v19 = vadd.f32 %v301_v27, %v4910_v0  ;;  %v331_v57 = vmul.f32 0.5, %v301_v27 }
 0x18b   :  { %v332_v17 = vmul.f32 0.5, %v303_v22  ;;  %v308_v62 = vadd.f32 %v303_v22, %v4914_v25  ;;  %v310_v13 = vmul.f32 0.5, %v306_v21 }
 0x18c   :  { %3816 = vtanh.f32 %v309_v60  ;;  %v311_v15 = vmul.f32 0.5, %v307_v19 }
 0x18d   :  { %3818 = vtanh.f32 %v330_v55  ;;  %v312_v9 = vmul.f32 0.5, %v308_v62 }
 0x18e   :  { %3820 = vtanh.f32 %v311_v15 }
 0x18f   :  { %3822 = vtanh.f32 %v332_v17 }
 0x190   :  { %3824 = vtanh.f32 %v310_v13 }
 0x191   :  { %3826 = vtanh.f32 %v312_v9 }
 0x192   :  { %3828 = vtanh.f32 %v331_v57 }
 0x193   :  { %3830 = vtanh.f32 %v329_v52 }
 0x196   :  { %v3817_v26 = vpop.eup %3816 }
 0x197   :  { %v3819_v58 = vpop.eup %3818  ;;  %v317_v59 = vmul.f32 0.5, %v3817_v26 }
 0x198   :  { %v3821_v0 = vpop.eup %3820  ;;  %v338_v8 = vmul.f32 0.5, %v3819_v58 }
 0x199   :  { %v3823_v63 = vpop.eup %3822  ;;  %v319_v25 = vmul.f32 0.5, %v3821_v0  ;;  %v321_v13 = vadd.f32 0.5, %v317_v59  ;;  %v4985_v59 = vld [vmem:[#allocation11 + $0x8] sm:$0xff]  }
 0x19a   :  { %v3825_v60 = vpop.eup %3824  ;;  %v340_v7 = vmul.f32 0.5, %v3823_v63  ;;  %v342_v57 = vadd.f32 0.5, %v338_v8 }
 0x19b   :  { %v3827_v55 = vpop.eup %3826  ;;  %v318_v6 = vmul.f32 0.5, %v3825_v60  ;;  %v323_v15 = vadd.f32 0.5, %v319_v25  ;;  %v4928_v58 = vmul.f32 %v321_v13, %v305_v53  ;;  %v4997_v53 = vld [vmem:[#allocation11 + $0x18] sm:$0xff]   ;;  %v5003_v60 = vld [vmem:[#allocation11 + $0x20] sm:$0xff]   ;;  %v5015_v13 = vld [vmem:[#allocation11 + $0x30] sm:$0xff]  }
 0x19c   :  { %v3829_v5 = vpop.eup %3828  ;;  %v344_v17 = vadd.f32 0.5, %v340_v7  ;;  %v320_v4 = vmul.f32 0.5, %v3827_v55  ;;  %v4930_v25 = vmul.f32 %v342_v57, %v299_v31  ;;  %v4991_v31 = vld [vmem:[#allocation11 + $0x10] sm:$0xff]   ;;  %v5007_v55 = vld [vmem:[#allocation11 + $0x68] sm:$0xff]   ;;  %v5021_v57 = vld [vmem:[#allocation11 + $0x38] sm:$0xff]  }
 0x19d   :  { %v322_v3 = vadd.f32 0.5, %v318_v6  ;;  %v3831_v9 = vpop.eup %3830  ;;  %v339_v2 = vmul.f32 0.5, %v3829_v5  ;;  %v4920_v56 = vmul.f32 %v323_v15, %v307_v19  ;;  %v5009_v15 = vld [vmem:[#allocation11 + $0x28] sm:$0xff]  }
 0x19e   :  { %v324_v52 = vadd.f32 0.5, %v320_v4  ;;  %v4922_v54 = vmul.f32 %v344_v17, %v303_v22  ;;  %v337_v63 = vmul.f32 0.5, %v3831_v9  ;;  %v4979_v22 = vld [vmem:[#allocation11] sm:$0xff]   ;;  %v5013_v17 = vld [vmem:[#allocation11 + $0x70] sm:$0xff]   ;;  %v5019_v9 = vld [vmem:[#allocation11 + $0x78] sm:$0xff]  }
 0x19f   :  { %v4924_v0 = vmul.f32 %v322_v3, %v306_v21  ;;  %v343_v7 = vadd.f32 0.5, %v339_v2  ;;  %v349_v4 = vpack.c.bf16 %v4920_v56, %v4928_v58  ;;  %v4977_v21 = vld [vmem:[#allocation11 + $0x40] sm:$0xff]  }
 0x1a0   :  { %v4926_v26 = vmul.f32 %v324_v52, %v308_v62  ;;  %v352_v5 = vpack.c.bf16 %v4922_v54, %v4930_v25  ;;  %v341_v3 = vadd.f32 0.5, %v337_v63  ;;  %3492 = vmatprep.subr.bf16.mxu0 %v4977_v21  ;;  %v5001_v62 = vld [vmem:[#allocation11 + $0x60] sm:$0xff]   ;;  %v6717_v63 = vld [vmem:[#allocation66_spill] sm:$0xff] }
 0x1a1   :  { %v4939_v8 = vmul.f32 %v343_v7, %v301_v27  ;;  %3493 = vmatpush3.bf16.msra.mxu0 %v4979_v22  ;;  %v4983_v27 = vld [vmem:[#allocation11 + $0x48] sm:$0xff]   ;;  %v6718_v7 = vld [vmem:[#allocation67_spill] sm:$0xff] }
 0x1a2   :  { %v350_v6 = vpack.c.bf16 %v4926_v26, %v4924_v0  ;;  %v4943_v19 = vmul.f32 %v341_v3, %v4906_v61  ;;  %3494 = vmatprep.subr.bf16.mxu0 %v4983_v27  ;;  %v4989_v61 = vld [vmem:[#allocation11 + $0x50] sm:$0xff]   ;;  %v152_v52 = vld [vmem:[#allocation14] ss:$8 sm:$0x3] }
 0x1a4   :  { %588 = vmatprep.mubr.bf16.mxu1 %v350_v6  ;;  %v351_v2 = vpack.c.bf16 %v4939_v8, %v4943_v19  ;;  %v389_v6 = vrot.slane %v152_v52, %v6717_v63 }
 0x1a5   :  { %589 = vmatmul.mubr.bf16.vlgmr.msra.gmra.mrb[0].mxu1 %v349_v4  ;;  %3495 = vmatpush3.bf16.msra.mxu0 %v4985_v59  ;;  %v393_v4 = vrot.slane %v152_v52, %v6718_v7 }
 0x1a6   :  { %598 = vmatprep.mubr.bf16.mxu1 %v352_v5  ;;  %968 = vmatpush1.bf16.msra.mxu1 %v4774_v11 }
 0x1a7   :  { %969 = vmatprep.subr.bf16.mxu1 %v4776_v12  ;;  %3496 = vmatprep.subr.bf16.mxu0 %v4989_v61 }
 0x1a9   :  { %3497 = vmatpush3.bf16.msra.mxu0 %v4991_v31 }
 0x1aa   :  { %970 = vmatpush1.bf16.msra.mxu1 %v4783_v14 }
 0x1ab   :  { %971 = vmatprep.subr.bf16.mxu1 %v4789_v16 }
 0x1ad   :  { %599 = vmatmul.mubr.bf16.gmra.mrb[4].mxu1 %v351_v2 }
 0x1ae   :  { %972 = vmatpush1.bf16.msra.mxu1 %v4795_v18 }
 0x1af   :  { %973 = vmatprep.subr.bf16.mxu1 %v4801_v20 }
 0x1b2   :  { %974 = vmatpush1.bf16.msra.mxu1 %v4809_v23 }
 0x1b3   :  { %975 = vmatprep.subr.bf16.mxu1 %v4811_v24 }
 0x1b6   :  { %976 = vmatpush1.bf16.msra.mxu1 %v4821_v28 }
 0x1b7   :  { %977 = vmatprep.subr.bf16.mxu1 %v4823_v29 }
 0x1ba   :  { %978 = vmatpush1.bf16.msra.mxu1 %v4829_v30 }
 0x1bb   :  { %979 = vmatprep.subr.bf16.mxu1 %v4833_v32 }
 0x1be   :  { %980 = vmatpush1.bf16.msra.mxu1 %v4838_v33 }
 0x1bf   :  { %981 = vmatprep.subr.bf16.mxu1 %v4840_v34 }
 0x1c2   :  { %982 = vmatpush1.bf16.msra.mxu1 %v4845_v35 }
 0x1c3   :  { %983 = vmatprep.subr.bf16.mxu1 %v4848_v36 }
 0x1c6   :  { %984 = vmatpush1.bf16.msra.mxu1 %v4851_v37 }
 0x1c7   :  { %985 = vmatprep.subr.bf16.mxu1 %v4855_v38 }
 0x1ca   :  { %986 = vmatpush1.bf16.msra.mxu1 %v4858_v39 }
 0x1cb   :  { %987 = vmatprep.subr.bf16.mxu1 %v4861_v40 }
 0x1ce   :  { %988 = vmatpush1.bf16.msra.mxu1 %v4863_v41 }
 0x1cf   :  { %989 = vmatprep.subr.bf16.mxu1 %v4867_v42 }
 0x1d2   :  { %990 = vmatpush1.bf16.msra.mxu1 %v4869_v43 }
 0x1d3   :  { %991 = vmatprep.subr.bf16.mxu1 %v4873_v44 }
 0x1d6   :  { %992 = vmatpush1.bf16.msra.mxu1 %v4875_v45 }
 0x1d7   :  { %993 = vmatprep.subr.bf16.mxu1 %v4879_v46 }
 0x1da   :  { %994 = vmatpush1.bf16.msra.mxu1 %v4881_v47 }
 0x1db   :  { %995 = vmatprep.subr.bf16.mxu1 %v4885_v48 }
 0x1de   :  { %996 = vmatpush1.bf16.msra.mxu1 %v4887_v49 }
 0x1df   :  { %997 = vmatprep.subr.bf16.mxu1 %v4891_v50 }
 0x1e2   :  { %998 = vmatpush1.bf16.msra.mxu1 %v4893_v51 }
 0x1e3   :  { %1250 = vmatprep.subr.bf16.mxu1 %v4772_v10  ;;  %v4995_v10 = vld [vmem:[#allocation11 + $0x58] sm:$0xff]  }
 0x1e4   :  { %3498 = vmatprep.subr.bf16.mxu0 %v4995_v10 }
 0x1e5   :  { %3499 = vmatpush3.bf16.msra.mxu0 %v4997_v53 }
 0x1e6   :  { %3500 = vmatprep.subr.bf16.mxu0 %v5001_v62 }
 0x1e9   :  { %3501 = vmatpush3.bf16.msra.mxu0 %v5003_v60 }
 0x1ea   :  { %3502 = vmatprep.subr.bf16.mxu0 %v5007_v55 }
 0x1ed   :  { %3503 = vmatpush3.bf16.msra.mxu0 %v5009_v15 }
 0x1ee   :  { %3504 = vmatprep.subr.bf16.mxu0 %v5013_v17 }
 0x1f1   :  { %3505 = vmatpush3.bf16.msra.mxu0 %v5015_v13 }
 0x1f2   :  { %3506 = vmatprep.subr.bf16.mxu0 %v5019_v9 }
 0x1f5   :  { %3507 = vmatpush3.bf16.msra.mxu0 %v5021_v57 }
 0x1f6   :  { %865 = vmatprep.subr.bf16.mxu0 %v4747_v1 }
 0x278   :  { %v590_v5 = vpop.f32.mrb[0].mxu1 }
 0x279   :  { %v591_v3 = vadd.f32 %v590_v5, %v389_v6  ;;  %v592_v2 = vpop.f32.mrb[1].mxu1 }
 0x27a   :  { %v593_v51 = vadd.f32 %v592_v2, %v393_v4  ;;  %v594_v50 = vpop.f32.mrb[2].mxu1 }
 0x27b   :  { %v609_v49 = vmul.f32 0.5, %v591_v3  ;;  %v595_v48 = vadd.f32 %v594_v50, %v389_v6  ;;  %v596_v47 = vpop.f32.mrb[3].mxu1 }
 0x27c   :  { %v610_v46 = vmul.f32 0.5, %v593_v51  ;;  %v597_v45 = vadd.f32 %v596_v47, %v393_v4 }
 0x27d   :  { %3832 = vtanh.f32 %v609_v49  ;;  %v611_v44 = vmul.f32 0.5, %v595_v48 }
 0x27e   :  { %3834 = vtanh.f32 %v610_v46  ;;  %v612_v43 = vmul.f32 0.5, %v597_v45 }
 0x27f   :  { %3836 = vtanh.f32 %v611_v44 }
 0x280   :  { %3838 = vtanh.f32 %v612_v43  ;;  %v600_v42 = vpop.f32.mrb[4].mxu1 }
 0x281   :  { %v601_v41 = vadd.f32 %v600_v42, %v389_v6  ;;  %v602_v40 = vpop.f32.mrb[5].mxu1 }
 0x282   :  { %v603_v52 = vadd.f32 %v602_v40, %v393_v4  ;;  %v604_v39 = vpop.f32.mrb[6].mxu1 }
 0x283   :  { %v613_v5 = vmul.f32 0.5, %v601_v41  ;;  %v605_v38 = vadd.f32 %v604_v39, %v389_v6  ;;  %v606_v2 = vpop.f32.mrb[7].mxu1 }
 0x284   :  { %v614_v37 = vmul.f32 0.5, %v603_v52  ;;  %v607_v36 = vadd.f32 %v606_v2, %v393_v4 }
 0x285   :  { %3840 = vtanh.f32 %v613_v5  ;;  %v615_v50 = vmul.f32 0.5, %v605_v38 }
 0x286   :  { %3842 = vtanh.f32 %v614_v37  ;;  %v616_v47 = vmul.f32 0.5, %v607_v36 }
 0x287   :  { %v3833_v49 = vpop.eup %3832  ;;  %3844 = vtanh.f32 %v615_v50 }
 0x288   :  { %v3835_v46 = vpop.eup %3834  ;;  %v625_v35 = vmul.f32 0.5, %v3833_v49  ;;  %3846 = vtanh.f32 %v616_v47 }
 0x289   :  { %v3837_v43 = vpop.eup %3836  ;;  %v626_v44 = vmul.f32 0.5, %v3835_v46 }
 0x28a   :  { %v3839_v42 = vpop.eup %3838  ;;  %v627_v34 = vmul.f32 0.5, %v3837_v43  ;;  %v633_v33 = vadd.f32 0.5, %v625_v35 }
 0x28b   :  { %v628_v40 = vmul.f32 0.5, %v3839_v42  ;;  %v634_v32 = vadd.f32 0.5, %v626_v44 }
 0x28c   :  { %v635_v39 = vadd.f32 0.5, %v627_v34  ;;  %v641_v5 = vmul.f32 %v633_v33, %v591_v3 }
 0x28d   :  { %v636_v30 = vadd.f32 0.5, %v628_v40  ;;  %v642_v29 = vmul.f32 %v634_v32, %v593_v51 }
 0x28e   :  { %v643_v24 = vmul.f32 %v635_v39, %v595_v48  ;;  %v649_v43 = vadd.f32 %v641_v5, %v4928_v58  ;;  %v6724_v5 = vld [vmem:[#allocation27_spill] sm:$0xff] }
 0x28f   :  { %v3841_v6 = vpop.eup %3840  ;;  %v644_v23 = vmul.f32 %v636_v30, %v597_v45  ;;  %v650_v34 = vadd.f32 %v642_v29, %v4924_v0 }
 0x290   :  { %v3843_v4 = vpop.eup %3842  ;;  %v629_v2 = vmul.f32 0.5, %v3841_v6  ;;  %v651_v33 = vadd.f32 %v643_v24, %v4920_v56 }
 0x291   :  { %v3845_v37 = vpop.eup %3844  ;;  %v630_v28 = vmul.f32 0.5, %v3843_v4  ;;  %v652_v48 = vadd.f32 %v644_v23, %v4926_v26  ;;  %v6722_v4 = vld [vmem:[#allocation25_spill] sm:$0xff] }
 0x292   :  { %v3847_v50 = vpop.eup %3846  ;;  %v637_v49 = vadd.f32 0.5, %v629_v2  ;;  %v631_v47 = vmul.f32 0.5, %v3845_v37  ;;  %v659_v0 = vmul.f32 0.02092982, %v651_v33  ;;  %v6725_v2 = vld [vmem:[#allocation28_spill] sm:$0xff]  ;;  %v6726_v37 = vld [vmem:[#allocation29_spill] sm:$0xff] }
 0x293   :  { %v638_v46 = vadd.f32 0.5, %v630_v28  ;;  %v632_v20 = vmul.f32 0.5, %v3847_v50  ;;  %v657_v28 = vmul.f32 0.02092982, %v649_v43  ;;  %v660_v24 = vmul.f32 0.02092982, %v652_v48 }
 0x294   :  { %v645_v35 = vmul.f32 %v637_v49, %v601_v41  ;;  %v639_v44 = vadd.f32 0.5, %v631_v47  ;;  %v658_v41 = vmul.f32 0.02092982, %v650_v34  ;;  %v6727_v50 = vld [vmem:[#allocation30_spill] sm:$0xff]  ;;  %v6728_v49 = vld [vmem:[#allocation31_spill] sm:$0xff]  ;;  %v6729_v47 = vld [vmem:[#allocation32_spill] sm:$0xff] }
 0x295   :  { %v646_v42 = vmul.f32 %v638_v46, %v603_v52  ;;  %v640_v40 = vadd.f32 0.5, %v632_v20  ;;  %v6730_v46 = vld [vmem:[#allocation33_spill] sm:$0xff]  ;;  %v6731_v43 = vld [vmem:[#allocation34_spill] sm:$0xff]  ;;  %v6734_v34 = vld [vmem:[#allocation40_spill] sm:$0xff] }
 0x296   :  { %v653_v32 = vadd.f32 %v645_v35, %v4943_v19  ;;  %v647_v51 = vmul.f32 %v639_v44, %v605_v38  ;;  %v6732_v35 = vld [vmem:[#allocation36_spill] sm:$0xff]  ;;  %v6733_v44 = vld [vmem:[#allocation37_spill] sm:$0xff]  ;;  %v5056_v48 = vld [vmem:[#allocation5] sm:$0xff] }
 0x297   :  { %v654_v3 = vadd.f32 %v646_v42, %v4930_v25  ;;  %v648_v30 = vmul.f32 %v640_v40, %v607_v36  ;;  %v6719_v36 = vld [vmem:[#allocation23_spill] sm:$0xff]  ;;  %v6720_v25 = vmov 0   ;;  %v3466_v40 = vld [vmem:[%s6425_s8] ss:$0 sm:$0xff] }
 0x298   :  { %v661_v45 = vmul.f32 0.008618162, %v653_v32  ;;  %v655_v58 = vadd.f32 %v647_v51, %v4939_v8  ;;  %v6721_v8 = vld [vmem:[#allocation24_spill] sm:$0xff] }
 0x299   :  { %v662_v39 = vmul.f32 0.008618162, %v654_v3  ;;  %v656_v29 = vadd.f32 %v648_v30, %v4922_v54  ;;  %v6723_v54 = vld [vmem:[#allocation26_spill] sm:$0xff] }
 0x29a   :  { %v665_v20 = vsub.f32 %v657_v28, %v661_v45  ;;  %v663_v52 = vmul.f32 0.008618162, %v655_v58  ;;  %v5058_v45 = vld [vmem:[#allocation5 + $0x8] sm:$0xff] }
 0x29b   :  { %v664_v56 = vmul.f32 0.008618162, %v656_v29  ;;  %v666_v19 = vsub.f32 %v658_v41, %v662_v39  ;;  %v6735_v29 = vld [vmem:[#allocation41_spill] sm:$0xff] }
 0x29c   :  { %v667_v38 = vsub.f32 %v659_v0, %v663_v52 }
 0x29d   :  { %v668_v6 = vsub.f32 %v660_v24, %v664_v56  ;;  %v849_v56 = vld [vmem:[#allocation13 + $0x1] ss:$8 sm:$0x3] }
 0x29e   :  { %v669_v23 = vpack.c.bf16 %v667_v38, %v665_v20  ;;  %v6736_v20 = vld [vmem:[#allocation42_spill] sm:$0xff]  ;;  %v862_v38 = vrot.slane %v849_v56, %v6718_v7 }
 0x29f   :  { %v670_v26 = vpack.c.bf16 %v668_v6, %v666_v19  ;;  %v858_v19 = vrot.slane %v849_v56, %v6717_v63 }
 0x2a1   :  { %835 = vmatprep.mubr.bf16.mxu0 %v670_v26 }
 0x2a2   :  { %836 = vmatmul.mubr.bf16.vlgmr.msra.gmra.mrb[4].mxu0 %v669_v23 }
 0x2a3   :  { %866 = vmatpush1.bf16.msra.mxu0 %v6719_v36  ;;  %897 = vmatprep.mubr.bf16.mxu0 %v6720_v25 }
 0x2a4   :  { %867 = vmatprep.subr.bf16.mxu0 %v6721_v8 }
 0x2a7   :  { %868 = vmatpush1.bf16.msra.mxu0 %v6722_v4  ;;  %v6737_v4 = vld [vmem:[#allocation68_spill] sm:$0xff] }
 0x2a8   :  { %869 = vmatprep.subr.bf16.mxu0 %v6723_v54 }
 0x2ab   :  { %870 = vmatpush1.bf16.msra.mxu0 %v6724_v5 }
 0x2ac   :  { %871 = vmatprep.subr.bf16.mxu0 %v6725_v2 }
 0x2af   :  { %872 = vmatpush1.bf16.msra.mxu0 %v6726_v37  ;;  %v6738_v37 = vld [vmem:[#allocation69_spill] sm:$0xff] }
 0x2b0   :  { %873 = vmatprep.subr.bf16.mxu0 %v6727_v50 }
 0x2b3   :  { %874 = vmatpush1.bf16.msra.mxu0 %v6728_v49 }
 0x2b4   :  { %875 = vmatprep.subr.bf16.mxu0 %v6729_v47 }
 0x2b7   :  { %876 = vmatpush1.bf16.msra.mxu0 %v6730_v46  ;;  %v6739_v46 = vld [vmem:[#allocation70_spill] sm:$0xff] }
 0x2b8   :  { %877 = vmatprep.subr.bf16.mxu0 %v6731_v43 }
 0x2bb   :  { %878 = vmatpush1.bf16.msra.mxu0 %v6732_v35 }
 0x2bc   :  { %879 = vmatprep.subr.bf16.mxu0 %v6733_v44 }
 0x2bf   :  { %880 = vmatpush1.bf16.msra.mxu0 %v6734_v34  ;;  %v6740_v34 = vld [vmem:[#allocation71_spill] sm:$0xff] }
 0x2c0   :  { %3514 = vmatprep.subr.bf16.mxu0 %v4977_v21 }
 0x375   :  { %v3508_v42 = vpop.f32.mrb[4].mxu0 }
 0x376   :  { %v3509_v33 = vpop.f32.mrb[5].mxu0 }
 0x377   :  { %v3510_v32 = vadd.f32 %v3509_v33, %v3508_v42  ;;  %v3511_v51 = vpop.f32.mrb[6].mxu0 }
 0x378   :  { %v3512_v3 = vpop.f32.mrb[7].mxu0 }
 0x379   :  { %v838_v30 = vadd.f32 %v3510_v32, %v3466_v40  ;;  %v3513_v28 = vadd.f32 %v3512_v3, %v3511_v51 }
 0x37b   :  { %v844_v58 = vmul.f32 %v838_v30, %v5056_v48  ;;  %v841_v41 = vadd.f32 %v3513_v28, %v3466_v40 }
 0x37d   :  { %v845_v39 = vmul.f32 %v841_v41, %v5058_v45  ;;  %v5063_v0 = vadd.f32 %v844_v58, %v6735_v29 }
 0x37f   :  { %v5066_v52 = vadd.f32 %v845_v39, %v6736_v20 }
 0x381   :  { %v853_v24 = vpack.c.bf16 %v5066_v52, %v5063_v0 }
 0x383   :  { %898 = vmatmul.mubr.bf16.vlgmr.msra.gmra.mrb[8].mxu0 %v853_v24 }
 0x384   :  { %3515 = vmatpush3.bf16.msra.mxu0 %v4979_v22 }
 0x385   :  { %3516 = vmatprep.subr.bf16.mxu0 %v4983_v27 }
 0x388   :  { %3517 = vmatpush3.bf16.msra.mxu0 %v4985_v59 }
 0x389   :  { %3518 = vmatprep.subr.bf16.mxu0 %v4989_v61 }
 0x38c   :  { %3519 = vmatpush3.bf16.msra.mxu0 %v4991_v31 }
 0x38d   :  { %3520 = vmatprep.subr.bf16.mxu0 %v4995_v10 }
 0x390   :  { %3521 = vmatpush3.bf16.msra.mxu0 %v4997_v53 }
 0x391   :  { %3522 = vmatprep.subr.bf16.mxu0 %v5001_v62 }
 0x394   :  { %3523 = vmatpush3.bf16.msra.mxu0 %v5003_v60 }
 0x395   :  { %3524 = vmatprep.subr.bf16.mxu0 %v5007_v55 }
 0x398   :  { %3525 = vmatpush3.bf16.msra.mxu0 %v5009_v15 }
 0x399   :  { %3526 = vmatprep.subr.bf16.mxu0 %v5013_v17 }
 0x39c   :  { %3527 = vmatpush3.bf16.msra.mxu0 %v5015_v13 }
 0x39d   :  { %3528 = vmatprep.subr.bf16.mxu0 %v5019_v9 }
 0x3a0   :  { %3529 = vmatpush3.bf16.msra.mxu0 %v5021_v57 }
 0x3a1   :  { %1148 = vmatprep.subr.bf16.mxu0 %v4747_v1 }
 0x456   :  { %v899_v6 = vpop.f32.mrb[8].mxu0 }
 0x457   :  { %v5088_v23 = vadd.f32 %v899_v6, %v858_v19  ;;  %v901_v26 = vpop.f32.mrb[9].mxu0 }
 0x458   :  { %v902_v36 = vadd.f32 %v901_v26, %v862_v38  ;;  %v903_v8 = vpop.f32.mrb[10].mxu0 }
 0x459   :  { %v908_v54 = vadd.f32 %v5088_v23, %v6737_v4  ;;  %v904_v5 = vadd.f32 %v903_v8, %v858_v19  ;;  %v905_v2 = vpop.f32.mrb[11].mxu0  ;;  %v932_v51 = vmul.f32 0.5, %v5088_v23 }
 0x45a   :  { %v909_v50 = vadd.f32 %v902_v36, %v6738_v37  ;;  %v933_v49 = vmul.f32 0.5, %v902_v36  ;;  %v906_v1 = vadd.f32 %v905_v2, %v862_v38 }
 0x45b   :  { %v912_v47 = vmul.f32 0.5, %v908_v54  ;;  %v910_v43 = vadd.f32 %v904_v5, %v6739_v46  ;;  %v934_v44 = vmul.f32 0.5, %v904_v5 }
 0x45c   :  { %v913_v35 = vmul.f32 0.5, %v909_v50  ;;  %3848 = vtanh.f32 %v933_v49  ;;  %v911_v42 = vadd.f32 %v906_v1, %v6740_v34  ;;  %v935_v32 = vmul.f32 0.5, %v906_v1 }
 0x45d   :  { %3850 = vtanh.f32 %v912_v47  ;;  %v914_v40 = vmul.f32 0.5, %v910_v43 }
 0x45e   :  { %3852 = vtanh.f32 %v913_v35  ;;  %v915_v33 = vmul.f32 0.5, %v911_v42 }
 0x45f   :  { %3854 = vtanh.f32 %v914_v40 }
 0x460   :  { %3856 = vtanh.f32 %v934_v44 }
 0x461   :  { %3858 = vtanh.f32 %v915_v33 }
 0x462   :  { %3860 = vtanh.f32 %v935_v32 }
 0x463   :  { %3862 = vtanh.f32 %v932_v51 }
 0x466   :  { %v3849_v3 = vpop.eup %3848 }
 0x467   :  { %v3851_v30 = vpop.eup %3850  ;;  %v941_v20 = vmul.f32 0.5, %v3849_v3 }
 0x468   :  { %v3853_v28 = vpop.eup %3852  ;;  %v920_v41 = vmul.f32 0.5, %v3851_v30 }
 0x469   :  { %v3855_v58 = vpop.eup %3854  ;;  %v921_v39 = vmul.f32 0.5, %v3853_v28  ;;  %v945_v37 = vadd.f32 0.5, %v941_v20  ;;  %v6741_v28 = vld [vmem:[#allocation35_spill] sm:$0xff]  ;;  %v6753_v20 = vld [vmem:[#allocation52_spill] sm:$0xff] }
 0x46a   :  { %v3857_v29 = vpop.eup %3856  ;;  %v922_v24 = vmul.f32 0.5, %v3855_v58  ;;  %v924_v8 = vadd.f32 0.5, %v920_v41  ;;  %v6746_v58 = vld [vmem:[#allocation45_spill] sm:$0xff]  ;;  %v6748_v41 = vld [vmem:[#allocation47_spill] sm:$0xff] }
 0x46b   :  { %v3859_v56 = vpop.eup %3858  ;;  %v925_v26 = vadd.f32 0.5, %v921_v39  ;;  %v942_v46 = vmul.f32 0.5, %v3857_v29  ;;  %v5106_v51 = vmul.f32 %v945_v37, %v902_v36  ;;  %v6750_v39 = vld [vmem:[#allocation49_spill] sm:$0xff]  ;;  %v6752_v29 = vld [vmem:[#allocation51_spill] sm:$0xff]  ;;  %v6763_v37 = vld [vmem:[#allocation62_spill] sm:$0xff] }
 0x46c   :  { %v3861_v19 = vpop.eup %3860  ;;  %v926_v38 = vadd.f32 0.5, %v922_v24  ;;  %v923_v6 = vmul.f32 0.5, %v3859_v56  ;;  %v5102_v40 = vmul.f32 %v924_v8, %v908_v54  ;;  %v6754_v24 = vld [vmem:[#allocation53_spill] sm:$0xff]  ;;  %v6755_v56 = vld [vmem:[#allocation54_spill] sm:$0xff]  ;;  %v6760_v8 = vld [vmem:[#allocation59_spill] sm:$0xff] }
 0x46d   :  { %v943_v4 = vmul.f32 0.5, %v3861_v19  ;;  %v3863_v2 = vpop.eup %3862  ;;  %v5098_v44 = vmul.f32 %v925_v26, %v909_v50  ;;  %v946_v30 = vadd.f32 0.5, %v942_v46  ;;  %v6756_v19 = vld [vmem:[#allocation55_spill] sm:$0xff]  ;;  %v6759_v26 = vld [vmem:[#allocation58_spill] sm:$0xff]  ;;  %v6765_v46 = vld [vmem:[#allocation64_spill] sm:$0xff] }
 0x46e   :  { %v927_v49 = vadd.f32 0.5, %v923_v6  ;;  %v5096_v47 = vmul.f32 %v926_v38, %v910_v43  ;;  %v940_v33 = vmul.f32 0.5, %v3863_v2  ;;  %v6757_v38 = vld [vmem:[#allocation56_spill] sm:$0xff]  ;;  %v6758_v6 = vld [vmem:[#allocation57_spill] sm:$0xff] }
 0x46f   :  { %v947_v35 = vadd.f32 0.5, %v943_v4  ;;  %v5115_v54 = vmul.f32 %v946_v30, %v904_v5  ;;  %v6743_v5 = vld [vmem:[#allocation39_spill] sm:$0xff]  ;;  %v6761_v4 = vld [vmem:[#allocation60_spill] sm:$0xff]  ;;  %v6762_v2 = vld [vmem:[#allocation61_spill] sm:$0xff] }
 0x470   :  { %v5100_v34 = vmul.f32 %v927_v49, %v911_v42  ;;  %v952_v43 = vpack.c.bf16 %v5096_v47, %v5102_v40  ;;  %v944_v42 = vadd.f32 0.5, %v940_v33  ;;  %v6764_v49 = vld [vmem:[#allocation63_spill] sm:$0xff]  ;;  %v5152_v33 = vld [vmem:[#allocation10 + $0x4] ss:$8 sps:$4 sm:$0xff]  }
 0x471   :  { %v5104_v32 = vmul.f32 %v947_v35, %v906_v1  ;;  %v6766_v35 = vld [vmem:[#allocation65_spill] sm:$0xff]  ;;  %6767 = vst [vmem:[#allocation23_spill] sm:$0xff] %v5152_v33 }
 0x472   :  { %v953_v3 = vpack.c.bf16 %v5100_v34, %v5098_v44  ;;  %v5119_v36 = vmul.f32 %v944_v42, %v5088_v23  ;;  %v6745_v23 = vld [vmem:[#allocation44_spill] sm:$0xff] }
 0x473   :  { %v955_v50 = vpack.c.bf16 %v5104_v32, %v5106_v51 }
 0x474   :  { %999 = vmatprep.mubr.bf16.mxu1 %v953_v3  ;;  %v954_v1 = vpack.c.bf16 %v5115_v54, %v5119_v36  ;;  %v851_v3 = vld [vmem:[#allocation14 + $0x1] ss:$8 sm:$0x3] }
 0x475   :  { %1000 = vmatmul.mubr.bf16.vlgmr.msra.gmra.mrb[8].mxu1 %v952_v43  ;;  %v960_v30 = vrot.slane %v851_v3, %v6717_v63  ;;  %v964_v43 = vrot.slane %v851_v3, %v6718_v7 }
 0x476   :  { %1009 = vmatprep.mubr.bf16.mxu1 %v955_v50  ;;  %1251 = vmatpush1.bf16.msra.mxu1 %v4774_v11  ;;  %v6742_v11 = vld [vmem:[#allocation38_spill] sm:$0xff] }
 0x477   :  { %1252 = vmatprep.subr.bf16.mxu1 %v4776_v12  ;;  %v6744_v12 = vld [vmem:[#allocation43_spill] sm:$0xff] }
 0x47a   :  { %1253 = vmatpush1.bf16.msra.mxu1 %v4783_v14  ;;  %v6747_v14 = vld [vmem:[#allocation46_spill] sm:$0xff] }
 0x47b   :  { %1254 = vmatprep.subr.bf16.mxu1 %v4789_v16  ;;  %v6749_v16 = vld [vmem:[#allocation48_spill] sm:$0xff] }
 0x47d   :  { %1010 = vmatmul.mubr.bf16.gmra.mrb[12].mxu1 %v954_v1 }
 0x47e   :  { %1255 = vmatpush1.bf16.msra.mxu1 %v4795_v18  ;;  %v6751_v18 = vld [vmem:[#allocation50_spill] sm:$0xff] }
 0x47f   :  { %1256 = vmatprep.subr.bf16.mxu1 %v6741_v28 }
 0x482   :  { %1257 = vmatpush1.bf16.msra.mxu1 %v6742_v11 }
 0x483   :  { %1258 = vmatprep.subr.bf16.mxu1 %v6743_v5 }
 0x486   :  { %1259 = vmatpush1.bf16.msra.mxu1 %v6744_v12 }
 0x487   :  { %1260 = vmatprep.subr.bf16.mxu1 %v6745_v23 }
 0x48a   :  { %1261 = vmatpush1.bf16.msra.mxu1 %v6746_v58 }
 0x48b   :  { %1262 = vmatprep.subr.bf16.mxu1 %v6747_v14 }
 0x48e   :  { %1263 = vmatpush1.bf16.msra.mxu1 %v6748_v41 }
 0x48f   :  { %1264 = vmatprep.subr.bf16.mxu1 %v6749_v16 }
 0x492   :  { %1265 = vmatpush1.bf16.msra.mxu1 %v6750_v39 }
 0x493   :  { %1266 = vmatprep.subr.bf16.mxu1 %v6751_v18 }
 0x496   :  { %1267 = vmatpush1.bf16.msra.mxu1 %v6752_v29 }
 0x497   :  { %1268 = vmatprep.subr.bf16.mxu1 %v6753_v20 }
 0x49a   :  { %1269 = vmatpush1.bf16.msra.mxu1 %v6754_v24 }
 0x49b   :  { %1270 = vmatprep.subr.bf16.mxu1 %v6755_v56 }
 0x49e   :  { %1271 = vmatpush1.bf16.msra.mxu1 %v6756_v19 }
 0x49f   :  { %1272 = vmatprep.subr.bf16.mxu1 %v6757_v38 }
 0x4a2   :  { %1273 = vmatpush1.bf16.msra.mxu1 %v6758_v6 }
 0x4a3   :  { %1274 = vmatprep.subr.bf16.mxu1 %v6759_v26 }
 0x4a6   :  { %1275 = vmatpush1.bf16.msra.mxu1 %v6760_v8 }
 0x4a7   :  { %1276 = vmatprep.subr.bf16.mxu1 %v6761_v4 }
 0x4aa   :  { %1277 = vmatpush1.bf16.msra.mxu1 %v6762_v2 }
 0x4ab   :  { %1278 = vmatprep.subr.bf16.mxu1 %v6763_v37 }
 0x4ae   :  { %1279 = vmatpush1.bf16.msra.mxu1 %v6764_v49 }
 0x4af   :  { %1280 = vmatprep.subr.bf16.mxu1 %v6765_v46 }
 0x4b2   :  { %1281 = vmatpush1.bf16.msra.mxu1 %v6766_v35 }
 0x4b3   :  { %1533 = vmatprep.subr.bf16.mxu1 %v5152_v33 }
 0x548   :  { %v1001_v50 = vpop.f32.mrb[8].mxu1 }
 0x549   :  { %v1002_v42 = vadd.f32 %v1001_v50, %v960_v30  ;;  %v1003_v1 = vpop.f32.mrb[9].mxu1 }
 0x54a   :  { %v1004_v28 = vadd.f32 %v1003_v1, %v964_v43  ;;  %v1005_v11 = vpop.f32.mrb[10].mxu1 }
 0x54b   :  { %v1020_v5 = vmul.f32 0.5, %v1002_v42  ;;  %v1006_v12 = vadd.f32 %v1005_v11, %v960_v30  ;;  %v1007_v23 = vpop.f32.mrb[11].mxu1 }
 0x54c   :  { %v1021_v58 = vmul.f32 0.5, %v1004_v28  ;;  %v1008_v14 = vadd.f32 %v1007_v23, %v964_v43 }
 0x54d   :  { %3864 = vtanh.f32 %v1020_v5  ;;  %v1022_v41 = vmul.f32 0.5, %v1006_v12 }
 0x54e   :  { %3866 = vtanh.f32 %v1021_v58  ;;  %v1023_v16 = vmul.f32 0.5, %v1008_v14 }
 0x54f   :  { %3868 = vtanh.f32 %v1022_v41 }
 0x550   :  { %3870 = vtanh.f32 %v1023_v16  ;;  %v1011_v39 = vpop.f32.mrb[12].mxu1 }
 0x551   :  { %v1012_v18 = vadd.f32 %v1011_v39, %v960_v30  ;;  %v1013_v29 = vpop.f32.mrb[13].mxu1 }
 0x552   :  { %v1014_v20 = vadd.f32 %v1013_v29, %v964_v43  ;;  %v1015_v24 = vpop.f32.mrb[14].mxu1 }
 0x553   :  { %v1024_v56 = vmul.f32 0.5, %v1012_v18  ;;  %v1016_v19 = vadd.f32 %v1015_v24, %v960_v30  ;;  %v1017_v38 = vpop.f32.mrb[15].mxu1 }
 0x554   :  { %v1025_v6 = vmul.f32 0.5, %v1014_v20  ;;  %v1018_v26 = vadd.f32 %v1017_v38, %v964_v43 }
 0x555   :  { %3872 = vtanh.f32 %v1024_v56  ;;  %v1026_v8 = vmul.f32 0.5, %v1016_v19 }
 0x556   :  { %3874 = vtanh.f32 %v1025_v6  ;;  %v1027_v4 = vmul.f32 0.5, %v1018_v26 }
 0x557   :  { %v3865_v2 = vpop.eup %3864  ;;  %3876 = vtanh.f32 %v1026_v8 }
 0x558   :  { %v3867_v37 = vpop.eup %3866  ;;  %v1036_v49 = vmul.f32 0.5, %v3865_v2  ;;  %3878 = vtanh.f32 %v1027_v4 }
 0x559   :  { %v3869_v46 = vpop.eup %3868  ;;  %v1037_v35 = vmul.f32 0.5, %v3867_v37 }
 0x55a   :  { %v3871_v3 = vpop.eup %3870  ;;  %v1038_v50 = vmul.f32 0.5, %v3869_v46  ;;  %v1044_v11 = vadd.f32 0.5, %v1036_v49 }
 0x55b   :  { %v1039_v1 = vmul.f32 0.5, %v3871_v3  ;;  %v1045_v5 = vadd.f32 0.5, %v1037_v35 }
 0x55c   :  { %v1046_v30 = vadd.f32 0.5, %v1038_v50  ;;  %v1052_v41 = vmul.f32 %v1044_v11, %v1002_v42 }
 0x55d   :  { %v1047_v58 = vadd.f32 0.5, %v1039_v1  ;;  %v1053_v29 = vmul.f32 %v1045_v5, %v1004_v28 }
 0x55e   :  { %v1054_v38 = vmul.f32 %v1046_v30, %v1006_v12  ;;  %v1060_v46 = vadd.f32 %v1052_v41, %v5102_v40 }
 0x55f   :  { %v3873_v23 = vpop.eup %3872  ;;  %v1055_v4 = vmul.f32 %v1047_v58, %v1008_v14  ;;  %v1061_v3 = vadd.f32 %v1053_v29, %v5098_v44 }
 0x560   :  { %v3875_v43 = vpop.eup %3874  ;;  %v1040_v16 = vmul.f32 0.5, %v3873_v23  ;;  %v1062_v42 = vadd.f32 %v1054_v38, %v5096_v47  ;;  %v1068_v30 = vmul.f32 0.062274102, %v1060_v46  ;;  %v5184_v38 = vld [vmem:[#allocation8 + $0x30] ss:$8 sps:$4 sm:$0xff]  }
 0x561   :  { %v3877_v39 = vpop.eup %3876  ;;  %v1041_v24 = vmul.f32 0.5, %v3875_v43  ;;  %v1063_v12 = vadd.f32 %v1055_v4, %v5100_v34  ;;  %v5193_v4 = vld [vmem:[#allocation8 + $0x54] ss:$8 sps:$4 sm:$0xff]   ;;  %v5202_v46 = vld [vmem:[#allocation8 + $0x60] ss:$8 sps:$4 sm:$0xff]  }
 0x562   :  { %v3879_v56 = vpop.eup %3878  ;;  %v1048_v6 = vadd.f32 0.5, %v1040_v16  ;;  %v1042_v8 = vmul.f32 0.5, %v3877_v39 }
 0x563   :  { %v1049_v2 = vadd.f32 0.5, %v1041_v24  ;;  %v1043_v37 = vmul.f32 0.5, %v3879_v56  ;;  %v1071_v47 = vmul.f32 0.062274102, %v1063_v12  ;;  %v5178_v24 = vld [vmem:[#allocation8 + $0x20] ss:$8 sps:$4 sm:$0xff]  }
 0x564   :  { %v1056_v49 = vmul.f32 %v1048_v6, %v1012_v18  ;;  %v1050_v35 = vadd.f32 0.5, %v1042_v8  ;;  %v1069_v18 = vmul.f32 0.062274102, %v1061_v3  ;;  %v5181_v56 = vld [vmem:[#allocation8 + $0x34] ss:$8 sps:$4 sm:$0xff]  }
 0x565   :  { %v1057_v50 = vmul.f32 %v1049_v2, %v1014_v20  ;;  %v1051_v1 = vadd.f32 0.5, %v1043_v37  ;;  %v1070_v20 = vmul.f32 0.062274102, %v1062_v42  ;;  %v5187_v6 = vld [vmem:[#allocation8 + $0x44] ss:$8 sps:$4 sm:$0xff]  }
 0x566   :  { %v1064_v28 = vadd.f32 %v1056_v49, %v5119_v36  ;;  %v1058_v11 = vmul.f32 %v1050_v35, %v1016_v19  ;;  %v5190_v8 = vld [vmem:[#allocation8 + $0x40] ss:$8 sps:$4 sm:$0xff]   ;;  %v5196_v2 = vld [vmem:[#allocation8 + $0x50] ss:$8 sps:$4 sm:$0xff]   ;;  %v5199_v37 = vld [vmem:[#allocation8 + $0x64] ss:$8 sps:$4 sm:$0xff]  }
 0x567   :  { %v1065_v5 = vadd.f32 %v1057_v50, %v5106_v51  ;;  %v1059_v14 = vmul.f32 %v1051_v1, %v1018_v26  ;;  %v5165_v51 = vld [vmem:[#allocation8] ss:$8 sps:$4 sm:$0xff]   ;;  %v5175_v26 = vld [vmem:[#allocation8 + $0x24] ss:$8 sps:$4 sm:$0xff]   ;;  %v5205_v49 = vld [vmem:[#allocation8 + $0x74] ss:$8 sps:$4 sm:$0xff]  }
 0x568   :  { %v1072_v23 = vmul.f32 0.025642278, %v1064_v28  ;;  %v1066_v40 = vadd.f32 %v1058_v11, %v5115_v54  ;;  %v5169_v54 = vld [vmem:[#allocation8 + $0x14] ss:$8 sps:$4 sm:$0xff]   ;;  %v5208_v35 = vld [vmem:[#allocation8 + $0x70] ss:$8 sps:$4 sm:$0xff]  }
 0x569   :  { %v1073_v58 = vmul.f32 0.025642278, %v1065_v5  ;;  %v1067_v44 = vadd.f32 %v1059_v14, %v5104_v32  ;;  %v5172_v32 = vld [vmem:[#allocation8 + $0x10] ss:$8 sps:$4 sm:$0xff]   ;;  %v3483_v50 = vld [vmem:[%s6425_s8 + $0x1] ss:$0 sm:$0xff] }
 0x56a   :  { %v1076_v43 = vsub.f32 %v1068_v30, %v1072_v23  ;;  %v1074_v41 = vmul.f32 0.025642278, %v1066_v40 }
 0x56b   :  { %v1075_v16 = vmul.f32 0.025642278, %v1067_v44  ;;  %v1077_v36 = vsub.f32 %v1069_v18, %v1073_v58  ;;  %v5256_v44 = vld [vmem:[#allocation7 + $0x10] sm:$0xff] }
 0x56c   :  { %v1078_v19 = vsub.f32 %v1070_v20, %v1074_v41  ;;  %6771 = vst [vmem:[#allocation27_spill] sm:$0xff] %v5256_v44 }
 0x56d   :  { %v1079_v39 = vsub.f32 %v1071_v47, %v1075_v16  ;;  %v5261_v47 = vld [vmem:[#allocation7 + $0x18] sm:$0xff] }
 0x56e   :  { %v1080_v34 = vpack.c.bf16 %v1078_v19, %v1076_v43  ;;  %6772 = vst [vmem:[#allocation28_spill] sm:$0xff] %v5261_v47 }
 0x56f   :  { %v1081_v29 = vpack.c.bf16 %v1079_v39, %v1077_v36 }
 0x571   :  { %1118 = vmatprep.mubr.bf16.mxu0 %v1081_v29 }
 0x572   :  { %1119 = vmatmul.mubr.bf16.vlgmr.msra.gmra.mrb[12].mxu0 %v1080_v34 }
 0x573   :  { %1149 = vmatpush1.bf16.msra.mxu0 %v5165_v51  ;;  %1180 = vmatprep.mubr.bf16.mxu0 %v6720_v25 }
 0x574   :  { %1150 = vmatprep.subr.bf16.mxu0 %v5169_v54 }
 0x577   :  { %1151 = vmatpush1.bf16.msra.mxu0 %v5172_v32 }
 0x578   :  { %1152 = vmatprep.subr.bf16.mxu0 %v5175_v26 }
 0x57b   :  { %1153 = vmatpush1.bf16.msra.mxu0 %v5178_v24 }
 0x57c   :  { %1154 = vmatprep.subr.bf16.mxu0 %v5181_v56 }
 0x57f   :  { %1155 = vmatpush1.bf16.msra.mxu0 %v5184_v38 }
 0x580   :  { %1156 = vmatprep.subr.bf16.mxu0 %v5187_v6 }
 0x583   :  { %1157 = vmatpush1.bf16.msra.mxu0 %v5190_v8 }
 0x584   :  { %1158 = vmatprep.subr.bf16.mxu0 %v5193_v4 }
 0x587   :  { %1159 = vmatpush1.bf16.msra.mxu0 %v5196_v2 }
 0x588   :  { %1160 = vmatprep.subr.bf16.mxu0 %v5199_v37 }
 0x58b   :  { %1161 = vmatpush1.bf16.msra.mxu0 %v5202_v46 }
 0x58c   :  { %1162 = vmatprep.subr.bf16.mxu0 %v5205_v49 }
 0x58f   :  { %1163 = vmatpush1.bf16.msra.mxu0 %v5208_v35 }
 0x590   :  { %3536 = vmatprep.subr.bf16.mxu0 %v4977_v21 }
 0x645   :  { %v3530_v3 = vpop.f32.mrb[12].mxu0 }
 0x646   :  { %v3531_v1 = vpop.f32.mrb[13].mxu0 }
 0x647   :  { %v3532_v42 = vadd.f32 %v3531_v1, %v3530_v3  ;;  %v3533_v28 = vpop.f32.mrb[14].mxu0 }
 0x648   :  { %v3534_v11 = vpop.f32.mrb[15].mxu0 }
 0x649   :  { %v1121_v12 = vadd.f32 %v3532_v42, %v3483_v50  ;;  %v3535_v5 = vadd.f32 %v3534_v11, %v3533_v28 }
 0x64b   :  { %v1127_v14 = vmul.f32 %v1121_v12, %v5056_v48  ;;  %v1124_v30 = vadd.f32 %v3535_v5, %v3483_v50 }
 0x64d   :  { %v1128_v23 = vmul.f32 %v1124_v30, %v5058_v45  ;;  %v5218_v40 = vadd.f32 %v1127_v14, %v5063_v0 }
 0x64f   :  { %v5221_v21 = vadd.f32 %v1128_v23, %v5066_v52 }
 0x651   :  { %v1136_v18 = vpack.c.bf16 %v5221_v21, %v5218_v40 }
 0x653   :  { %1181 = vmatmul.mubr.bf16.vlgmr.msra.gmra.mrb[16].mxu0 %v1136_v18 }
 0x654   :  { %3537 = vmatpush3.bf16.msra.mxu0 %v4979_v22  ;;  %v5240_v22 = vld [vmem:[#allocation8 + $0x4] ss:$8 sps:$4 sm:$0xff]  }
 0x655   :  { %3538 = vmatprep.subr.bf16.mxu0 %v4983_v27  ;;  %6768 = vst [vmem:[#allocation24_spill] sm:$0xff] %v5240_v22  ;;  %v1132_v27 = vld [vmem:[#allocation13 + $0x2] ss:$8 sm:$0x3] }
 0x658   :  { %3539 = vmatpush3.bf16.msra.mxu0 %v4985_v59  ;;  %v1141_v59 = vrot.slane %v1132_v27, %v6717_v63 }
 0x659   :  { %3540 = vmatprep.subr.bf16.mxu0 %v4989_v61  ;;  %v1145_v61 = vrot.slane %v1132_v27, %v6718_v7 }
 0x65c   :  { %3541 = vmatpush3.bf16.msra.mxu0 %v4991_v31 }
 0x65d   :  { %3542 = vmatprep.subr.bf16.mxu0 %v4995_v10 }
 0x660   :  { %3543 = vmatpush3.bf16.msra.mxu0 %v4997_v53 }
 0x661   :  { %3544 = vmatprep.subr.bf16.mxu0 %v5001_v62 }
 0x664   :  { %3545 = vmatpush3.bf16.msra.mxu0 %v5003_v60 }
 0x665   :  { %3546 = vmatprep.subr.bf16.mxu0 %v5007_v55  ;;  %v5247_v55 = vld [vmem:[#allocation7] sm:$0xff] }
 0x666   :  { %6769 = vst [vmem:[#allocation25_spill] sm:$0xff] %v5247_v55 }
 0x668   :  { %3547 = vmatpush3.bf16.msra.mxu0 %v5009_v15 }
 0x669   :  { %3548 = vmatprep.subr.bf16.mxu0 %v5013_v17 }
 0x66c   :  { %3549 = vmatpush3.bf16.msra.mxu0 %v5015_v13 }
 0x66d   :  { %3550 = vmatprep.subr.bf16.mxu0 %v5019_v9  ;;  %v5253_v9 = vld [vmem:[#allocation7 + $0x8] sm:$0xff] }
 0x66e   :  { %6770 = vst [vmem:[#allocation26_spill] sm:$0xff] %v5253_v9 }
 0x670   :  { %3551 = vmatpush3.bf16.msra.mxu0 %v5021_v57 }
 0x671   :  { %1431 = vmatprep.subr.bf16.mxu0 %v5240_v22 }
 0x726   :  { %v1182_v31 = vpop.f32.mrb[16].mxu0 }
 0x727   :  { %v5245_v10 = vadd.f32 %v1182_v31, %v1141_v59  ;;  %v1184_v53 = vpop.f32.mrb[17].mxu0 }
 0x728   :  { %v1185_v62 = vadd.f32 %v1184_v53, %v1145_v61  ;;  %v1186_v60 = vpop.f32.mrb[18].mxu0 }
 0x729   :  { %v1191_v15 = vadd.f32 %v5247_v55, %v5245_v10  ;;  %v5251_v17 = vadd.f32 %v1186_v60, %v1141_v59  ;;  %v1188_v13 = vpop.f32.mrb[19].mxu0  ;;  %v1215_v34 = vmul.f32 0.5, %v5245_v10 }
 0x72a   :  { %v1192_v57 = vadd.f32 %v5253_v9, %v1185_v62  ;;  %v1216_v0 = vmul.f32 0.5, %v1185_v62  ;;  %v1189_v52 = vadd.f32 %v1188_v13, %v1145_v61 }
 0x72b   :  { %v1195_v58 = vmul.f32 0.5, %v1191_v15  ;;  %v1193_v20 = vadd.f32 %v5256_v44, %v5251_v17  ;;  %v1217_v41 = vmul.f32 0.5, %v5251_v17 }
 0x72c   :  { %v1196_v43 = vmul.f32 0.5, %v1192_v57  ;;  %3880 = vtanh.f32 %v1216_v0  ;;  %v1194_v16 = vadd.f32 %v5261_v47, %v1189_v52  ;;  %v1218_v39 = vmul.f32 0.5, %v1189_v52 }
 0x72d   :  { %3882 = vtanh.f32 %v1195_v58  ;;  %v1197_v36 = vmul.f32 0.5, %v1193_v20 }
 0x72e   :  { %3884 = vtanh.f32 %v1196_v43  ;;  %v1198_v19 = vmul.f32 0.5, %v1194_v16 }
 0x72f   :  { %3886 = vtanh.f32 %v1197_v36 }
 0x730   :  { %3888 = vtanh.f32 %v1217_v41 }
 0x731   :  { %3890 = vtanh.f32 %v1198_v19 }
 0x732   :  { %3892 = vtanh.f32 %v1218_v39 }
 0x733   :  { %3894 = vtanh.f32 %v1215_v34 }
 0x736   :  { %v3881_v29 = vpop.eup %3880 }
 0x737   :  { %v3883_v3 = vpop.eup %3882  ;;  %v1224_v12 = vmul.f32 0.5, %v3881_v29 }
 0x738   :  { %v3885_v50 = vpop.eup %3884  ;;  %v1203_v42 = vmul.f32 0.5, %v3883_v3 }
 0x739   :  { %v3887_v1 = vpop.eup %3886  ;;  %v1204_v28 = vmul.f32 0.5, %v3885_v50  ;;  %v1228_v53 = vadd.f32 0.5, %v1224_v12  ;;  %v5312_v12 = vld [vmem:[#allocation10 + $0x44] ss:$8 sps:$4 sm:$0xff]  }
 0x73a   :  { %v3889_v11 = vpop.eup %3888  ;;  %v1205_v5 = vmul.f32 0.5, %v3887_v1  ;;  %v1207_v59 = vadd.f32 0.5, %v1203_v42  ;;  %v5295_v1 = vld [vmem:[#allocation10 + $0x10] ss:$8 sps:$4 sm:$0xff]   ;;  %6780 = vst [vmem:[#allocation37_spill] sm:$0xff] %v5312_v12 }
 0x73b   :  { %v3891_v14 = vpop.eup %3890  ;;  %v1208_v27 = vadd.f32 0.5, %v1204_v28  ;;  %v1225_v0 = vmul.f32 0.5, %v3889_v11  ;;  %v5275_v34 = vmul.f32 %v1228_v53, %v1185_v62  ;;  %6775 = vst [vmem:[#allocation31_spill] sm:$0xff] %v5295_v1  ;;  %v5300_v28 = vld [vmem:[#allocation10 + $0x24] ss:$8 sps:$4 sm:$0xff]  }
 0x73c   :  { %v3893_v30 = vpop.eup %3892  ;;  %v1209_v23 = vadd.f32 0.5, %v1205_v5  ;;  %v1206_v18 = vmul.f32 0.5, %v3891_v14  ;;  %v5271_v36 = vmul.f32 %v1207_v59, %v1191_v15  ;;  %v5283_v15 = vld [vmem:[#allocation10] ss:$8 sps:$4 sm:$0xff]   ;;  %6776 = vst [vmem:[#allocation32_spill] sm:$0xff] %v5300_v28 }
 0x73d   :  { %v1226_v61 = vmul.f32 0.5, %v3893_v30  ;;  %v3895_v31 = vpop.eup %3894  ;;  %v5267_v43 = vmul.f32 %v1208_v27, %v1192_v57  ;;  %v1229_v3 = vadd.f32 0.5, %v1225_v0  ;;  %6773 = vst [vmem:[#allocation29_spill] sm:$0xff] %v5283_v15  ;;  %v5306_v11 = vld [vmem:[#allocation10 + $0x34] ss:$8 sps:$4 sm:$0xff]  }
 0x73e   :  { %v1210_v60 = vadd.f32 0.5, %v1206_v18  ;;  %v5265_v13 = vmul.f32 %v1209_v23, %v1193_v20  ;;  %v1223_v19 = vmul.f32 0.5, %v3895_v31  ;;  %6778 = vst [vmem:[#allocation34_spill] sm:$0xff] %v5306_v11  ;;  %v5315_v5 = vld [vmem:[#allocation10 + $0x40] ss:$8 sps:$4 sm:$0xff]  }
 0x73f   :  { %v1230_v58 = vadd.f32 0.5, %v1226_v61  ;;  %v5287_v62 = vmul.f32 %v1229_v3, %v5251_v17  ;;  %v5303_v17 = vld [vmem:[#allocation10 + $0x20] ss:$8 sps:$4 sm:$0xff]   ;;  %6781 = vst [vmem:[#allocation40_spill] sm:$0xff] %v5315_v5  ;;  %v5318_v14 = vld [vmem:[#allocation10 + $0x54] ss:$8 sps:$4 sm:$0xff]  }
 0x740   :  { %v5269_v41 = vmul.f32 %v1210_v60, %v1194_v16  ;;  %v1235_v20 = vpack.c.bf16 %v5265_v13, %v5271_v36  ;;  %v1227_v16 = vadd.f32 0.5, %v1223_v19  ;;  %6777 = vst [vmem:[#allocation33_spill] sm:$0xff] %v5303_v17  ;;  %6782 = vst [vmem:[#allocation41_spill] sm:$0xff] %v5318_v14  ;;  %v5321_v30 = vld [vmem:[#allocation10 + $0x50] ss:$8 sps:$4 sm:$0xff]  }
 0x741   :  { %v5273_v39 = vmul.f32 %v1230_v58, %v1189_v52  ;;  %v5289_v52 = vld [vmem:[#allocation10 + $0x14] ss:$8 sps:$4 sm:$0xff]   ;;  %6783 = vst [vmem:[#allocation42_spill] sm:$0xff] %v5321_v30  ;;  %v5324_v23 = vld [vmem:[#allocation10 + $0x64] ss:$8 sps:$4 sm:$0xff]  }
 0x742   :  { %v1236_v29 = vpack.c.bf16 %v5269_v41, %v5267_v43  ;;  %6774 = vst [vmem:[#allocation30_spill] sm:$0xff] %v5289_v52  ;;  %v5293_v50 = vmul.f32 %v1227_v16, %v5245_v10  ;;  %v5309_v10 = vld [vmem:[#allocation10 + $0x30] ss:$8 sps:$4 sm:$0xff]   ;;  %6784 = vst [vmem:[#allocation68_spill] sm:$0xff] %v5324_v23  ;;  %v5327_v18 = vld [vmem:[#allocation10 + $0x60] ss:$8 sps:$4 sm:$0xff]  }
 0x743   :  { %v1238_v57 = vpack.c.bf16 %v5273_v39, %v5275_v34  ;;  %6779 = vst [vmem:[#allocation36_spill] sm:$0xff] %v5309_v10  ;;  %6785 = vst [vmem:[#allocation69_spill] sm:$0xff] %v5327_v18  ;;  %v5330_v27 = vld [vmem:[#allocation10 + $0x74] ss:$8 sps:$4 sm:$0xff]   ;;  %v5333_v59 = vld [vmem:[#allocation10 + $0x70] ss:$8 sps:$4 sm:$0xff]  }
 0x744   :  { %1282 = vmatprep.mubr.bf16.mxu1 %v1236_v29  ;;  %v1237_v42 = vpack.c.bf16 %v5287_v62, %v5293_v50  ;;  %6786 = vst [vmem:[#allocation70_spill] sm:$0xff] %v5330_v27  ;;  %6787 = vst [vmem:[#allocation71_spill] sm:$0xff] %v5333_v59  ;;  %v5336_v61 = vld [vmem:[#allocation10 + $0x84] ss:$8 sps:$4 sm:$0xff]   ;;  %v5339_v31 = vld [vmem:[#allocation10 + $0x80] ss:$8 sps:$4 sm:$0xff]  }
 0x745   :  { %1283 = vmatmul.mubr.bf16.vlgmr.msra.gmra.mrb[16].mxu1 %v1235_v20  ;;  %6788 = vst [vmem:[#allocation35_spill] sm:$0xff] %v5336_v61  ;;  %6789 = vst [vmem:[#allocation38_spill] sm:$0xff] %v5339_v31  ;;  %v5342_v53 = vld [vmem:[#allocation10 + $0x94] ss:$8 sps:$4 sm:$0xff]   ;;  %v5345_v60 = vld [vmem:[#allocation10 + $0x90] ss:$8 sps:$4 sm:$0xff]  }
 0x746   :  { %1292 = vmatprep.mubr.bf16.mxu1 %v1238_v57  ;;  %1534 = vmatpush1.bf16.msra.mxu1 %v5283_v15  ;;  %6790 = vst [vmem:[#allocation39_spill] sm:$0xff] %v5342_v53  ;;  %6791 = vst [vmem:[#allocation43_spill] sm:$0xff] %v5345_v60  ;;  %v5348_v0 = vld [vmem:[#allocation10 + $0xa4] ss:$8 sps:$4 sm:$0xff]   ;;  %v5351_v58 = vld [vmem:[#allocation10 + $0xa0] ss:$8 sps:$4 sm:$0xff]  }
 0x747   :  { %1535 = vmatprep.subr.bf16.mxu1 %v5289_v52  ;;  %6792 = vst [vmem:[#allocation44_spill] sm:$0xff] %v5348_v0  ;;  %6793 = vst [vmem:[#allocation45_spill] sm:$0xff] %v5351_v58  ;;  %v5354_v19 = vld [vmem:[#allocation10 + $0xb4] ss:$8 sps:$4 sm:$0xff]   ;;  %v5357_v29 = vld [vmem:[#allocation10 + $0xb0] ss:$8 sps:$4 sm:$0xff]  }
 0x748   :  { %6794 = vst [vmem:[#allocation46_spill] sm:$0xff] %v5354_v19  ;;  %6795 = vst [vmem:[#allocation47_spill] sm:$0xff] %v5357_v29  ;;  %v5360_v3 = vld [vmem:[#allocation10 + $0xc4] ss:$8 sps:$4 sm:$0xff]   ;;  %v5363_v20 = vld [vmem:[#allocation10 + $0xc0] ss:$8 sps:$4 sm:$0xff]  }
 0x749   :  { %6796 = vst [vmem:[#allocation48_spill] sm:$0xff] %v5360_v3  ;;  %6797 = vst [vmem:[#allocation49_spill] sm:$0xff] %v5363_v20  ;;  %v5366_v57 = vld [vmem:[#allocation10 + $0xd4] ss:$8 sps:$4 sm:$0xff]   ;;  %v5369_v16 = vld [vmem:[#allocation10 + $0xd0] ss:$8 sps:$4 sm:$0xff]  }
 0x74a   :  { %1536 = vmatpush1.bf16.msra.mxu1 %v5295_v1  ;;  %6798 = vst [vmem:[#allocation50_spill] sm:$0xff] %v5366_v57  ;;  %6799 = vst [vmem:[#allocation51_spill] sm:$0xff] %v5369_v16 }
 0x74b   :  { %1537 = vmatprep.subr.bf16.mxu1 %v5300_v28 }
 0x74d   :  { %1293 = vmatmul.mubr.bf16.gmra.mrb[20].mxu1 %v1237_v42  ;;  %v5372_v42 = vld [vmem:[#allocation10 + $0xe4] ss:$8 sps:$4 sm:$0xff]  }
 0x74e   :  { %1538 = vmatpush1.bf16.msra.mxu1 %v5303_v17  ;;  %6800 = vst [vmem:[#allocation52_spill] sm:$0xff] %v5372_v42 }
 0x74f   :  { %1539 = vmatprep.subr.bf16.mxu1 %v5306_v11 }
 0x752   :  { %1540 = vmatpush1.bf16.msra.mxu1 %v5309_v10 }
 0x753   :  { %1541 = vmatprep.subr.bf16.mxu1 %v5312_v12 }
 0x756   :  { %1542 = vmatpush1.bf16.msra.mxu1 %v5315_v5 }
 0x757   :  { %1543 = vmatprep.subr.bf16.mxu1 %v5318_v14 }
 0x75a   :  { %1544 = vmatpush1.bf16.msra.mxu1 %v5321_v30 }
 0x75b   :  { %1545 = vmatprep.subr.bf16.mxu1 %v5324_v23 }
 0x75e   :  { %1546 = vmatpush1.bf16.msra.mxu1 %v5327_v18 }
 0x75f   :  { %1547 = vmatprep.subr.bf16.mxu1 %v5330_v27 }
 0x762   :  { %1548 = vmatpush1.bf16.msra.mxu1 %v5333_v59 }
 0x763   :  { %1549 = vmatprep.subr.bf16.mxu1 %v5336_v61 }
 0x766   :  { %1550 = vmatpush1.bf16.msra.mxu1 %v5339_v31 }
 0x767   :  { %1551 = vmatprep.subr.bf16.mxu1 %v5342_v53 }
 0x76a   :  { %1552 = vmatpush1.bf16.msra.mxu1 %v5345_v60 }
 0x76b   :  { %1553 = vmatprep.subr.bf16.mxu1 %v5348_v0 }
 0x76e   :  { %1554 = vmatpush1.bf16.msra.mxu1 %v5351_v58 }
 0x76f   :  { %1555 = vmatprep.subr.bf16.mxu1 %v5354_v19 }
 0x772   :  { %1556 = vmatpush1.bf16.msra.mxu1 %v5357_v29  ;;  %v5375_v29 = vld [vmem:[#allocation10 + $0xe0] ss:$8 sps:$4 sm:$0xff]  }
 0x773   :  { %1557 = vmatprep.subr.bf16.mxu1 %v5360_v3  ;;  %6801 = vst [vmem:[#allocation53_spill] sm:$0xff] %v5375_v29  ;;  %v5378_v3 = vld [vmem:[#allocation10 + $0xf4] ss:$8 sps:$4 sm:$0xff]  }
 0x774   :  { %6802 = vst [vmem:[#allocation54_spill] sm:$0xff] %v5378_v3 }
 0x776   :  { %1558 = vmatpush1.bf16.msra.mxu1 %v5363_v20  ;;  %v5381_v20 = vld [vmem:[#allocation10 + $0xf0] ss:$8 sps:$4 sm:$0xff]  }
 0x777   :  { %1559 = vmatprep.subr.bf16.mxu1 %v5366_v57  ;;  %6803 = vst [vmem:[#allocation55_spill] sm:$0xff] %v5381_v20  ;;  %v1134_v57 = vld [vmem:[#allocation14 + $0x2] ss:$8 sm:$0x3] }
 0x778   :  { %v1247_v19 = vrot.slane %v1134_v57, %v6718_v7 }
 0x77a   :  { %1560 = vmatpush1.bf16.msra.mxu1 %v5369_v16  ;;  %v1243_v16 = vrot.slane %v1134_v57, %v6717_v63 }
 0x77b   :  { %1561 = vmatprep.subr.bf16.mxu1 %v5372_v42 }
 0x77e   :  { %1562 = vmatpush1.bf16.msra.mxu1 %v5375_v29 }
 0x77f   :  { %1563 = vmatprep.subr.bf16.mxu1 %v5378_v3 }
 0x782   :  { %1564 = vmatpush1.bf16.msra.mxu1 %v5381_v20 }
 0x783   :  { %1816 = vmatprep.subr.bf16.mxu1 %v5152_v33 }
 0x818   :  { %v1284_v42 = vpop.f32.mrb[16].mxu1 }
 0x819   :  { %v1285_v58 = vadd.f32 %v1284_v42, %v1243_v16  ;;  %v1286_v0 = vpop.f32.mrb[17].mxu1 }
 0x81a   :  { %v1287_v60 = vadd.f32 %v1286_v0, %v1247_v19  ;;  %v1288_v29 = vpop.f32.mrb[18].mxu1 }
 0x81b   :  { %v1303_v53 = vmul.f32 0.5, %v1285_v58  ;;  %v1289_v31 = vadd.f32 %v1288_v29, %v1243_v16  ;;  %v1290_v61 = vpop.f32.mrb[19].mxu1 }
 0x81c   :  { %v1304_v3 = vmul.f32 0.5, %v1287_v60  ;;  %v1291_v59 = vadd.f32 %v1290_v61, %v1247_v19 }
 0x81d   :  { %3896 = vtanh.f32 %v1303_v53  ;;  %v1305_v27 = vmul.f32 0.5, %v1289_v31 }
 0x81e   :  { %3898 = vtanh.f32 %v1304_v3  ;;  %v1306_v20 = vmul.f32 0.5, %v1291_v59 }
 0x81f   :  { %3900 = vtanh.f32 %v1305_v27 }
 0x820   :  { %3902 = vtanh.f32 %v1306_v20  ;;  %v1294_v33 = vpop.f32.mrb[20].mxu1 }
 0x821   :  { %v1295_v18 = vadd.f32 %v1294_v33, %v1243_v16  ;;  %v1296_v23 = vpop.f32.mrb[21].mxu1 }
 0x822   :  { %v1297_v57 = vadd.f32 %v1296_v23, %v1247_v19  ;;  %v1298_v30 = vpop.f32.mrb[22].mxu1 }
 0x823   :  { %v1307_v42 = vmul.f32 0.5, %v1295_v18  ;;  %v1299_v14 = vadd.f32 %v1298_v30, %v1243_v16  ;;  %v1300_v0 = vpop.f32.mrb[23].mxu1 }
 0x824   :  { %v1308_v5 = vmul.f32 0.5, %v1297_v57  ;;  %v1301_v12 = vadd.f32 %v1300_v0, %v1247_v19 }
 0x825   :  { %3904 = vtanh.f32 %v1307_v42  ;;  %v1309_v29 = vmul.f32 0.5, %v1299_v14 }
 0x826   :  { %3906 = vtanh.f32 %v1308_v5  ;;  %v1310_v61 = vmul.f32 0.5, %v1301_v12 }
 0x827   :  { %v3897_v53 = vpop.eup %3896  ;;  %3908 = vtanh.f32 %v1309_v29 }
 0x828   :  { %v3899_v3 = vpop.eup %3898  ;;  %v1319_v10 = vmul.f32 0.5, %v3897_v53  ;;  %3910 = vtanh.f32 %v1310_v61 }
 0x829   :  { %v3901_v27 = vpop.eup %3900  ;;  %v1320_v20 = vmul.f32 0.5, %v3899_v3 }
 0x82a   :  { %v3903_v33 = vpop.eup %3902  ;;  %v1321_v11 = vmul.f32 0.5, %v3901_v27  ;;  %v1327_v17 = vadd.f32 0.5, %v1319_v10 }
 0x82b   :  { %v1322_v23 = vmul.f32 0.5, %v3903_v33  ;;  %v1328_v28 = vadd.f32 0.5, %v1320_v20 }
 0x82c   :  { %v1329_v30 = vadd.f32 0.5, %v1321_v11  ;;  %v1335_v42 = vmul.f32 %v1327_v17, %v1285_v58 }
 0x82d   :  { %v1330_v1 = vadd.f32 0.5, %v1322_v23  ;;  %v1336_v52 = vmul.f32 %v1328_v28, %v1287_v60 }
 0x82e   :  { %v1337_v47 = vmul.f32 %v1329_v30, %v1289_v31  ;;  %v1343_v27 = vadd.f32 %v1335_v42, %v5271_v36 }
 0x82f   :  { %v3905_v16 = vpop.eup %3904  ;;  %v1338_v44 = vmul.f32 %v1330_v1, %v1291_v59  ;;  %v1344_v11 = vadd.f32 %v1336_v52, %v5267_v43 }
 0x830   :  { %v3907_v19 = vpop.eup %3906  ;;  %v1323_v0 = vmul.f32 0.5, %v3905_v16  ;;  %v1345_v17 = vadd.f32 %v1337_v47, %v5265_v13 }
 0x831   :  { %v3909_v5 = vpop.eup %3908  ;;  %v1324_v15 = vmul.f32 0.5, %v3907_v19  ;;  %v1346_v31 = vadd.f32 %v1338_v44, %v5269_v41 }
 0x832   :  { %v3911_v29 = vpop.eup %3910  ;;  %v1331_v53 = vadd.f32 0.5, %v1323_v0  ;;  %v1325_v61 = vmul.f32 0.5, %v3909_v5  ;;  %v1353_v52 = vmul.f32 0.10208499, %v1345_v17  ;;  %v5448_v17 = vld [vmem:[#allocation11 + $0x60] sm:$0xff]  }
 0x833   :  { %v1332_v3 = vadd.f32 0.5, %v1324_v15  ;;  %v1326_v9 = vmul.f32 0.5, %v3911_v29  ;;  %v1351_v15 = vmul.f32 0.10208499, %v1343_v27  ;;  %v1354_v47 = vmul.f32 0.10208499, %v1346_v31 }
 0x834   :  { %v1339_v10 = vmul.f32 %v1331_v53, %v1295_v18  ;;  %v1333_v20 = vadd.f32 0.5, %v1325_v61  ;;  %v1352_v18 = vmul.f32 0.10208499, %v1344_v11  ;;  %v5427_v11 = vld [vmem:[#allocation11] sm:$0xff]   ;;  %6806 = vst [vmem:[#allocation58_spill] sm:$0xff] %v5448_v17  ;;  %v5457_v31 = vld [vmem:[#allocation11 + $0x28] sm:$0xff]  }
 0x835   :  { %v1340_v33 = vmul.f32 %v1332_v3, %v1297_v57  ;;  %v1334_v23 = vadd.f32 0.5, %v1326_v9  ;;  %6809 = vst [vmem:[#allocation61_spill] sm:$0xff] %v5457_v31 }
 0x836   :  { %v1347_v28 = vadd.f32 %v1339_v10, %v5293_v50  ;;  %v1341_v60 = vmul.f32 %v1333_v20, %v1299_v14 }
 0x837   :  { %v1348_v58 = vadd.f32 %v1340_v33, %v5275_v34  ;;  %v1342_v1 = vmul.f32 %v1334_v23, %v1301_v12  ;;  %v5430_v33 = vld [vmem:[#allocation11 + $0x48] sm:$0xff]   ;;  %v5445_v23 = vld [vmem:[#allocation11 + $0x18] sm:$0xff]  }
 0x838   :  { %v1355_v59 = vmul.f32 0.042034995, %v1347_v28  ;;  %v1349_v36 = vadd.f32 %v1341_v60, %v5287_v62  ;;  %v3484_v62 = vld [vmem:[%s6425_s8 + $0x2] ss:$0 sm:$0xff]  ;;  %6805 = vst [vmem:[#allocation57_spill] sm:$0xff] %v5445_v23  ;;  %v5454_v60 = vld [vmem:[#allocation11 + $0x68] sm:$0xff]  }
 0x839   :  { %v1356_v30 = vmul.f32 0.042034995, %v1348_v58  ;;  %v1350_v43 = vadd.f32 %v1342_v1, %v5273_v39  ;;  %v5411_v39 = vld [vmem:[#allocation11 + $0x40] sm:$0xff]   ;;  %6808 = vst [vmem:[#allocation60_spill] sm:$0xff] %v5454_v60  ;;  %v5460_v58 = vld [vmem:[#allocation11 + $0x70] sm:$0xff]  }
 0x83a   :  { %v1359_v9 = vsub.f32 %v1351_v15, %v1355_v59  ;;  %v1357_v57 = vmul.f32 0.042034995, %v1349_v36  ;;  %v5451_v28 = vld [vmem:[#allocation11 + $0x20] sm:$0xff]   ;;  %6810 = vst [vmem:[#allocation62_spill] sm:$0xff] %v5460_v58  ;;  %v5463_v1 = vld [vmem:[#allocation11 + $0x30] sm:$0xff]   ;;  %v5466_v15 = vld [vmem:[#allocation11 + $0x78] sm:$0xff]  }
 0x83b   :  { %v1358_v13 = vmul.f32 0.042034995, %v1350_v43  ;;  %v1360_v50 = vsub.f32 %v1352_v18, %v1356_v30  ;;  %6807 = vst [vmem:[#allocation59_spill] sm:$0xff] %v5451_v28  ;;  %6811 = vst [vmem:[#allocation63_spill] sm:$0xff] %v5463_v1  ;;  %v5469_v59 = vld [vmem:[#allocation11 + $0x38] sm:$0xff]  }
 0x83c   :  { %v1361_v14 = vsub.f32 %v1353_v52, %v1357_v57  ;;  %6812 = vst [vmem:[#allocation64_spill] sm:$0xff] %v5466_v15  ;;  %6813 = vst [vmem:[#allocation65_spill] sm:$0xff] %v5469_v59  ;;  %v1415_v36 = vld [vmem:[#allocation13 + $0x3] ss:$8 sm:$0x3] }
 0x83d   :  { %v1362_v16 = vsub.f32 %v1354_v47, %v1358_v13  ;;  %v1424_v18 = vrot.slane %v1415_v36, %v6717_v63  ;;  %v1428_v30 = vrot.slane %v1415_v36, %v6718_v7 }
 0x83e   :  { %v1363_v44 = vpack.c.bf16 %v1361_v14, %v1359_v9 }
 0x83f   :  { %v1364_v41 = vpack.c.bf16 %v1362_v16, %v1360_v50  ;;  %v6814_v16 = vld [vmem:[#allocation26_spill] sm:$0xff] }
 0x841   :  { %1401 = vmatprep.mubr.bf16.mxu0 %v1364_v41 }
 0x842   :  { %1402 = vmatmul.mubr.bf16.vlgmr.msra.gmra.mrb[20].mxu0 %v1363_v44 }
 0x843   :  { %1432 = vmatpush1.bf16.msra.mxu0 %v5165_v51  ;;  %1463 = vmatprep.mubr.bf16.mxu0 %v6720_v25 }
 0x844   :  { %1433 = vmatprep.subr.bf16.mxu0 %v5169_v54 }
 0x847   :  { %1434 = vmatpush1.bf16.msra.mxu0 %v5172_v32 }
 0x848   :  { %1435 = vmatprep.subr.bf16.mxu0 %v5175_v26 }
 0x84b   :  { %1436 = vmatpush1.bf16.msra.mxu0 %v5178_v24 }
 0x84c   :  { %1437 = vmatprep.subr.bf16.mxu0 %v5181_v56 }
 0x84f   :  { %1438 = vmatpush1.bf16.msra.mxu0 %v5184_v38 }
 0x850   :  { %1439 = vmatprep.subr.bf16.mxu0 %v5187_v6 }
 0x853   :  { %1440 = vmatpush1.bf16.msra.mxu0 %v5190_v8 }
 0x854   :  { %1441 = vmatprep.subr.bf16.mxu0 %v5193_v4 }
 0x857   :  { %1442 = vmatpush1.bf16.msra.mxu0 %v5196_v2 }
 0x858   :  { %1443 = vmatprep.subr.bf16.mxu0 %v5199_v37 }
 0x85b   :  { %1444 = vmatpush1.bf16.msra.mxu0 %v5202_v46 }
 0x85c   :  { %1445 = vmatprep.subr.bf16.mxu0 %v5205_v49 }
 0x85f   :  { %1446 = vmatpush1.bf16.msra.mxu0 %v5208_v35 }
 0x860   :  { %3558 = vmatprep.subr.bf16.mxu0 %v5411_v39 }
 0x915   :  { %v3552_v34 = vpop.f32.mrb[20].mxu0 }
 0x916   :  { %v3553_v12 = vpop.f32.mrb[21].mxu0 }
 0x917   :  { %v3554_v19 = vadd.f32 %v3553_v12, %v3552_v34  ;;  %v3555_v42 = vpop.f32.mrb[22].mxu0  ;;  %v6815_v12 = vld [vmem:[#allocation27_spill] sm:$0xff] }
 0x918   :  { %v3556_v0 = vpop.f32.mrb[23].mxu0 }
 0x919   :  { %v1404_v5 = vadd.f32 %v3554_v19, %v3484_v62  ;;  %v3557_v29 = vadd.f32 %v3556_v0, %v3555_v42 }
 0x91b   :  { %v1410_v53 = vmul.f32 %v1404_v5, %v5056_v48  ;;  %v1407_v61 = vadd.f32 %v3557_v29, %v3484_v62  ;;  %v5433_v48 = vld [vmem:[#allocation11 + $0x8] sm:$0xff]   ;;  %v6816_v5 = vld [vmem:[#allocation28_spill] sm:$0xff] }
 0x91d   :  { %v1411_v3 = vmul.f32 %v1407_v61, %v5058_v45  ;;  %v5420_v27 = vadd.f32 %v1410_v53, %v5218_v40  ;;  %v5436_v45 = vld [vmem:[#allocation11 + $0x50] sm:$0xff]  }
 0x91e   :  { %v5439_v40 = vld [vmem:[#allocation11 + $0x10] sm:$0xff]  }
 0x91f   :  { %v5423_v10 = vadd.f32 %v1411_v3, %v5221_v21  ;;  %v5442_v21 = vld [vmem:[#allocation11 + $0x58] sm:$0xff]  }
 0x920   :  { %6804 = vst [vmem:[#allocation56_spill] sm:$0xff] %v5442_v21 }
 0x921   :  { %v1419_v20 = vpack.c.bf16 %v5423_v10, %v5420_v27 }
 0x923   :  { %1464 = vmatmul.mubr.bf16.vlgmr.msra.gmra.mrb[24].mxu0 %v1419_v20 }
 0x924   :  { %3559 = vmatpush3.bf16.msra.mxu0 %v5427_v11 }
 0x925   :  { %3560 = vmatprep.subr.bf16.mxu0 %v5430_v33 }
 0x928   :  { %3561 = vmatpush3.bf16.msra.mxu0 %v5433_v48 }
 0x929   :  { %3562 = vmatprep.subr.bf16.mxu0 %v5436_v45 }
 0x92c   :  { %3563 = vmatpush3.bf16.msra.mxu0 %v5439_v40 }
 0x92d   :  { %3564 = vmatprep.subr.bf16.mxu0 %v5442_v21 }
 0x930   :  { %3565 = vmatpush3.bf16.msra.mxu0 %v5445_v23 }
 0x931   :  { %3566 = vmatprep.subr.bf16.mxu0 %v5448_v17 }
 0x934   :  { %3567 = vmatpush3.bf16.msra.mxu0 %v5451_v28 }
 0x935   :  { %3568 = vmatprep.subr.bf16.mxu0 %v5454_v60 }
 0x938   :  { %3569 = vmatpush3.bf16.msra.mxu0 %v5457_v31 }
 0x939   :  { %3570 = vmatprep.subr.bf16.mxu0 %v5460_v58 }
 0x93c   :  { %3571 = vmatpush3.bf16.msra.mxu0 %v5463_v1 }
 0x93d   :  { %3572 = vmatprep.subr.bf16.mxu0 %v5466_v15 }
 0x940   :  { %3573 = vmatpush3.bf16.msra.mxu0 %v5469_v59 }
 0x941   :  { %1714 = vmatprep.subr.bf16.mxu0 %v5240_v22 }
 0x9f6   :  { %v1465_v43 = vpop.f32.mrb[24].mxu0 }
 0x9f7   :  { %v5475_v52 = vadd.f32 %v1465_v43, %v1424_v18  ;;  %v1467_v9 = vpop.f32.mrb[25].mxu0 }
 0x9f8   :  { %v1468_v57 = vadd.f32 %v1467_v9, %v1428_v30  ;;  %v1469_v47 = vpop.f32.mrb[26].mxu0 }
 0x9f9   :  { %v1474_v13 = vadd.f32 %v5247_v55, %v5475_v52  ;;  %v1470_v50 = vadd.f32 %v1469_v47, %v1424_v18  ;;  %v1471_v14 = vpop.f32.mrb[27].mxu0  ;;  %v1498_v20 = vmul.f32 0.5, %v5475_v52 }
 0x9fa   :  { %v1475_v44 = vadd.f32 %v6814_v16, %v1468_v57  ;;  %v1499_v41 = vmul.f32 0.5, %v1468_v57  ;;  %v1472_v34 = vadd.f32 %v1471_v14, %v1428_v30 }
 0x9fb   :  { %v1478_v62 = vmul.f32 0.5, %v1474_v13  ;;  %v1476_v19 = vadd.f32 %v6815_v12, %v1470_v50  ;;  %v1500_v0 = vmul.f32 0.5, %v1470_v50 }
 0x9fc   :  { %v1479_v42 = vmul.f32 0.5, %v1475_v44  ;;  %3912 = vtanh.f32 %v1499_v41  ;;  %v1477_v29 = vadd.f32 %v6816_v5, %v1472_v34  ;;  %v1501_v3 = vmul.f32 0.5, %v1472_v34 }
 0x9fd   :  { %3914 = vtanh.f32 %v1478_v62  ;;  %v1480_v53 = vmul.f32 0.5, %v1476_v19 }
 0x9fe   :  { %3916 = vtanh.f32 %v1479_v42  ;;  %v1481_v61 = vmul.f32 0.5, %v1477_v29 }
 0x9ff   :  { %3918 = vtanh.f32 %v1480_v53 }
 0xa00   :  { %3920 = vtanh.f32 %v1500_v0 }
 0xa01   :  { %3922 = vtanh.f32 %v1481_v61 }
 0xa02   :  { %3924 = vtanh.f32 %v1501_v3 }
 0xa03   :  { %3926 = vtanh.f32 %v1498_v20 }
 0xa06   :  { %v3913_v36 = vpop.eup %3912 }
 0xa07   :  { %v3915_v18 = vpop.eup %3914  ;;  %v1507_v41 = vmul.f32 0.5, %v3913_v36 }
 0xa08   :  { %v3917_v30 = vpop.eup %3916  ;;  %v1486_v9 = vmul.f32 0.5, %v3915_v18 }
 0xa09   :  { %v3919_v43 = vpop.eup %3918  ;;  %v1487_v47 = vmul.f32 0.5, %v3917_v30  ;;  %v1511_v61 = vadd.f32 0.5, %v1507_v41  ;;  %v6825_v41 = vld [vmem:[#allocation40_spill] sm:$0xff] }
 0xa0a   :  { %v3921_v14 = vpop.eup %3920  ;;  %v1488_v62 = vmul.f32 0.5, %v3919_v43  ;;  %v1490_v55 = vadd.f32 0.5, %v1486_v9 }
 0xa0b   :  { %v3923_v5 = vpop.eup %3922  ;;  %v1491_v53 = vadd.f32 0.5, %v1487_v47  ;;  %v1508_v59 = vmul.f32 0.5, %v3921_v14  ;;  %v6823_v14 = vld [vmem:[#allocation36_spill] sm:$0xff] }
 0xa0c   :  { %v3925_v42 = vpop.eup %3924  ;;  %v1492_v12 = vadd.f32 0.5, %v1488_v62  ;;  %v1489_v16 = vmul.f32 0.5, %v3923_v5  ;;  %v5489_v36 = vmul.f32 %v1490_v55, %v1474_v13  ;;  %v5493_v5 = vmul.f32 %v1511_v61, %v1468_v57  ;;  %v6817_v55 = vld [vmem:[#allocation29_spill] sm:$0xff]  ;;  %v6818_v57 = vld [vmem:[#allocation30_spill] sm:$0xff]  ;;  %v6831_v61 = vld [vmem:[#allocation71_spill] sm:$0xff] }
 0xa0d   :  { %v1509_v22 = vmul.f32 0.5, %v3925_v42  ;;  %v3927_v0 = vpop.eup %3926  ;;  %v5485_v1 = vmul.f32 %v1491_v53, %v1475_v44  ;;  %v1512_v47 = vadd.f32 0.5, %v1508_v59  ;;  %v6819_v59 = vld [vmem:[#allocation31_spill] sm:$0xff]  ;;  %v6827_v62 = vld [vmem:[#allocation42_spill] sm:$0xff]  ;;  %v6828_v42 = vld [vmem:[#allocation68_spill] sm:$0xff] }
 0xa0e   :  { %v1493_v3 = vadd.f32 0.5, %v1489_v16  ;;  %v5483_v20 = vmul.f32 %v1492_v12, %v1476_v19  ;;  %v1506_v30 = vmul.f32 0.5, %v3927_v0  ;;  %v6820_v12 = vld [vmem:[#allocation32_spill] sm:$0xff]  ;;  %v6821_v19 = vld [vmem:[#allocation33_spill] sm:$0xff]  ;;  %v6830_v0 = vld [vmem:[#allocation70_spill] sm:$0xff] }
 0xa0f   :  { %v1513_v15 = vadd.f32 0.5, %v1509_v22  ;;  %v6829_v53 = vld [vmem:[#allocation69_spill] sm:$0xff] }
 0xa10   :  { %v5487_v18 = vmul.f32 %v1493_v3, %v1477_v29  ;;  %v1518_v16 = vpack.c.bf16 %v5483_v20, %v5489_v36  ;;  %v1510_v44 = vadd.f32 0.5, %v1506_v30  ;;  %v6822_v29 = vld [vmem:[#allocation34_spill] sm:$0xff]  ;;  %v6832_v3 = vld [vmem:[#allocation35_spill] sm:$0xff] }
 0xa11   :  { %v5491_v43 = vmul.f32 %v1513_v15, %v1472_v34  ;;  %v5502_v15 = vmul.f32 %v1512_v47, %v1470_v50  ;;  %v6824_v50 = vld [vmem:[#allocation37_spill] sm:$0xff]  ;;  %v6833_v30 = vld [vmem:[#allocation38_spill] sm:$0xff]  ;;  %v6835_v47 = vld [vmem:[#allocation43_spill] sm:$0xff] }
 0xa12   :  { %v1519_v9 = vpack.c.bf16 %v5487_v18, %v5485_v1  ;;  %v5506_v13 = vmul.f32 %v1510_v44, %v5475_v52  ;;  %v6826_v52 = vld [vmem:[#allocation41_spill] sm:$0xff]  ;;  %v6838_v44 = vld [vmem:[#allocation46_spill] sm:$0xff] }
 0xa13   :  { %v1521_v22 = vpack.c.bf16 %v5491_v43, %v5493_v5 }
 0xa14   :  { %1565 = vmatprep.mubr.bf16.mxu1 %v1519_v9  ;;  %v1520_v34 = vpack.c.bf16 %v5502_v15, %v5506_v13  ;;  %v6834_v9 = vld [vmem:[#allocation39_spill] sm:$0xff] }
 0xa15   :  { %1566 = vmatmul.mubr.bf16.vlgmr.msra.gmra.mrb[24].mxu1 %v1518_v16  ;;  %v6836_v16 = vld [vmem:[#allocation44_spill] sm:$0xff] }
 0xa16   :  { %1575 = vmatprep.mubr.bf16.mxu1 %v1521_v22  ;;  %1817 = vmatpush1.bf16.msra.mxu1 %v6817_v55  ;;  %v6837_v22 = vld [vmem:[#allocation45_spill] sm:$0xff] }
 0xa17   :  { %1818 = vmatprep.subr.bf16.mxu1 %v6818_v57 }
 0xa1a   :  { %1819 = vmatpush1.bf16.msra.mxu1 %v6819_v59 }
 0xa1b   :  { %1820 = vmatprep.subr.bf16.mxu1 %v6820_v12 }
 0xa1d   :  { %1576 = vmatmul.mubr.bf16.gmra.mrb[28].mxu1 %v1520_v34  ;;  %v6839_v34 = vld [vmem:[#allocation47_spill] sm:$0xff] }
 0xa1e   :  { %1821 = vmatpush1.bf16.msra.mxu1 %v6821_v19 }
 0xa1f   :  { %1822 = vmatprep.subr.bf16.mxu1 %v6822_v29 }
 0xa22   :  { %1823 = vmatpush1.bf16.msra.mxu1 %v6823_v14 }
 0xa23   :  { %1824 = vmatprep.subr.bf16.mxu1 %v6824_v50 }
 0xa26   :  { %1825 = vmatpush1.bf16.msra.mxu1 %v6825_v41 }
 0xa27   :  { %1826 = vmatprep.subr.bf16.mxu1 %v6826_v52 }
 0xa2a   :  { %1827 = vmatpush1.bf16.msra.mxu1 %v6827_v62 }
 0xa2b   :  { %1828 = vmatprep.subr.bf16.mxu1 %v6828_v42 }
 0xa2e   :  { %1829 = vmatpush1.bf16.msra.mxu1 %v6829_v53  ;;  %v6840_v53 = vld [vmem:[#allocation48_spill] sm:$0xff] }
 0xa2f   :  { %1830 = vmatprep.subr.bf16.mxu1 %v6830_v0  ;;  %v6841_v0 = vld [vmem:[#allocation49_spill] sm:$0xff] }
 0xa32   :  { %1831 = vmatpush1.bf16.msra.mxu1 %v6831_v61  ;;  %v6842_v61 = vld [vmem:[#allocation50_spill] sm:$0xff] }
 0xa33   :  { %1832 = vmatprep.subr.bf16.mxu1 %v6832_v3  ;;  %v6843_v3 = vld [vmem:[#allocation51_spill] sm:$0xff] }
 0xa36   :  { %1833 = vmatpush1.bf16.msra.mxu1 %v6833_v30  ;;  %v6844_v30 = vld [vmem:[#allocation52_spill] sm:$0xff] }
 0xa37   :  { %1834 = vmatprep.subr.bf16.mxu1 %v6834_v9  ;;  %v6845_v9 = vld [vmem:[#allocation53_spill] sm:$0xff] }
 0xa3a   :  { %1835 = vmatpush1.bf16.msra.mxu1 %v6835_v47  ;;  %v6846_v47 = vld [vmem:[#allocation54_spill] sm:$0xff] }
 0xa3b   :  { %1836 = vmatprep.subr.bf16.mxu1 %v6836_v16  ;;  %v6847_v16 = vld [vmem:[#allocation55_spill] sm:$0xff] }
 0xa3e   :  { %1837 = vmatpush1.bf16.msra.mxu1 %v6837_v22  ;;  %v6848_v22 = vld [vmem:[#allocation23_spill] sm:$0xff] }
 0xa3f   :  { %1838 = vmatprep.subr.bf16.mxu1 %v6838_v44  ;;  %v1417_v44 = vld [vmem:[#allocation14 + $0x3] ss:$8 sm:$0x3] }
 0xa42   :  { %1839 = vmatpush1.bf16.msra.mxu1 %v6839_v34  ;;  %v1526_v34 = vrot.slane %v1417_v44, %v6717_v63 }
 0xa43   :  { %1840 = vmatprep.subr.bf16.mxu1 %v6840_v53  ;;  %v1530_v53 = vrot.slane %v1417_v44, %v6718_v7 }
 0xa46   :  { %1841 = vmatpush1.bf16.msra.mxu1 %v6841_v0 }
 0xa47   :  { %1842 = vmatprep.subr.bf16.mxu1 %v6842_v61 }
 0xa4a   :  { %1843 = vmatpush1.bf16.msra.mxu1 %v6843_v3 }
 0xa4b   :  { %1844 = vmatprep.subr.bf16.mxu1 %v6844_v30 }
 0xa4e   :  { %1845 = vmatpush1.bf16.msra.mxu1 %v6845_v9 }
 0xa4f   :  { %1846 = vmatprep.subr.bf16.mxu1 %v6846_v47 }
 0xa52   :  { %1847 = vmatpush1.bf16.msra.mxu1 %v6847_v16 }
 0xa53   :  { %2099 = vmatprep.subr.bf16.mxu1 %v6848_v22 }
 0xae8   :  { %v1567_v0 = vpop.f32.mrb[24].mxu1 }
 0xae9   :  { %v1568_v42 = vadd.f32 %v1567_v0, %v1526_v34  ;;  %v1569_v61 = vpop.f32.mrb[25].mxu1 }
 0xaea   :  { %v1570_v62 = vadd.f32 %v1569_v61, %v1530_v53  ;;  %v1571_v3 = vpop.f32.mrb[26].mxu1 }
 0xaeb   :  { %v1586_v52 = vmul.f32 0.5, %v1568_v42  ;;  %v1572_v30 = vadd.f32 %v1571_v3, %v1526_v34  ;;  %v1573_v41 = vpop.f32.mrb[27].mxu1 }
 0xaec   :  { %v1587_v9 = vmul.f32 0.5, %v1570_v62  ;;  %v1574_v50 = vadd.f32 %v1573_v41, %v1530_v53 }
 0xaed   :  { %3928 = vtanh.f32 %v1586_v52  ;;  %v1588_v47 = vmul.f32 0.5, %v1572_v30 }
 0xaee   :  { %3930 = vtanh.f32 %v1587_v9  ;;  %v1589_v16 = vmul.f32 0.5, %v1574_v50 }
 0xaef   :  { %3932 = vtanh.f32 %v1588_v47 }
 0xaf0   :  { %3934 = vtanh.f32 %v1589_v16  ;;  %v1577_v22 = vpop.f32.mrb[28].mxu1 }
 0xaf1   :  { %v1578_v14 = vadd.f32 %v1577_v22, %v1526_v34  ;;  %v1579_v29 = vpop.f32.mrb[29].mxu1 }
 0xaf2   :  { %v1580_v44 = vadd.f32 %v1579_v29, %v1530_v53  ;;  %v1581_v19 = vpop.f32.mrb[30].mxu1 }
 0xaf3   :  { %v1590_v0 = vmul.f32 0.5, %v1578_v14  ;;  %v1582_v12 = vadd.f32 %v1581_v19, %v1526_v34  ;;  %v1583_v61 = vpop.f32.mrb[31].mxu1 }
 0xaf4   :  { %v1591_v59 = vmul.f32 0.5, %v1580_v44  ;;  %v1584_v57 = vadd.f32 %v1583_v61, %v1530_v53 }
 0xaf5   :  { %3936 = vtanh.f32 %v1590_v0  ;;  %v1592_v3 = vmul.f32 0.5, %v1582_v12 }
 0xaf6   :  { %3938 = vtanh.f32 %v1591_v59  ;;  %v1593_v41 = vmul.f32 0.5, %v1584_v57 }
 0xaf7   :  { %v3929_v52 = vpop.eup %3928  ;;  %3940 = vtanh.f32 %v1592_v3 }
 0xaf8   :  { %v3931_v9 = vpop.eup %3930  ;;  %v1602_v55 = vmul.f32 0.5, %v3929_v52  ;;  %3942 = vtanh.f32 %v1593_v41 }
 0xaf9   :  { %v3933_v47 = vpop.eup %3932  ;;  %v1603_v16 = vmul.f32 0.5, %v3931_v9 }
 0xafa   :  { %v3935_v22 = vpop.eup %3934  ;;  %v1604_v7 = vmul.f32 0.5, %v3933_v47  ;;  %v1610_v63 = vadd.f32 0.5, %v1602_v55 }
 0xafb   :  { %v1605_v29 = vmul.f32 0.5, %v3935_v22  ;;  %v1611_v58 = vadd.f32 0.5, %v1603_v16 }
 0xafc   :  { %v1612_v19 = vadd.f32 0.5, %v1604_v7  ;;  %v1618_v0 = vmul.f32 %v1610_v63, %v1568_v42 }
 0xafd   :  { %v1613_v31 = vadd.f32 0.5, %v1605_v29  ;;  %v1619_v60 = vmul.f32 %v1611_v58, %v1570_v62 }
 0xafe   :  { %v1620_v17 = vmul.f32 %v1612_v19, %v1572_v30  ;;  %v1626_v47 = vadd.f32 %v1618_v0, %v5489_v36  ;;  %v6855_v0 = vld [vmem:[#allocation62_spill] sm:$0xff] }
 0xaff   :  { %v3937_v34 = vpop.eup %3936  ;;  %v1621_v23 = vmul.f32 %v1613_v31, %v1574_v50  ;;  %v1627_v7 = vadd.f32 %v1619_v60, %v5485_v1 }
 0xb00   :  { %v3939_v53 = vpop.eup %3938  ;;  %v1606_v61 = vmul.f32 0.5, %v3937_v34  ;;  %v1628_v63 = vadd.f32 %v1620_v17, %v5483_v20 }
 0xb01   :  { %v3941_v59 = vpop.eup %3940  ;;  %v1607_v28 = vmul.f32 0.5, %v3939_v53  ;;  %v1629_v42 = vadd.f32 %v1621_v23, %v5487_v18  ;;  %v6854_v53 = vld [vmem:[#allocation61_spill] sm:$0xff] }
 0xb02   :  { %v3943_v3 = vpop.eup %3942  ;;  %v1614_v52 = vadd.f32 0.5, %v1606_v61  ;;  %v1608_v41 = vmul.f32 0.5, %v3941_v59  ;;  %v1636_v1 = vmul.f32 0.1393822, %v1628_v63  ;;  %v6856_v61 = vld [vmem:[#allocation63_spill] sm:$0xff]  ;;  %v6857_v59 = vld [vmem:[#allocation64_spill] sm:$0xff] }
 0xb03   :  { %v1615_v9 = vadd.f32 0.5, %v1607_v28  ;;  %v1609_v21 = vmul.f32 0.5, %v3943_v3  ;;  %v1634_v28 = vmul.f32 0.1393822, %v1626_v47  ;;  %v1637_v17 = vmul.f32 0.1393822, %v1629_v42 }
 0xb04   :  { %v1622_v55 = vmul.f32 %v1614_v52, %v1578_v14  ;;  %v1616_v16 = vadd.f32 0.5, %v1608_v41  ;;  %v1635_v14 = vmul.f32 0.1393822, %v1627_v7  ;;  %v6858_v3 = vld [vmem:[#allocation65_spill] sm:$0xff]  ;;  %v6859_v52 = vld [vmem:[#allocation24_spill] sm:$0xff] }
 0xb05   :  { %v1623_v22 = vmul.f32 %v1615_v9, %v1580_v44  ;;  %v1617_v29 = vadd.f32 0.5, %v1609_v21  ;;  %v1698_v41 = vld [vmem:[#allocation13 + $0x4] ss:$8 sm:$0x3] }
 0xb06   :  { %v1630_v58 = vadd.f32 %v1622_v55, %v5506_v13  ;;  %v1624_v62 = vmul.f32 %v1616_v16, %v1582_v12  ;;  %v6860_v9 = vld [vmem:[#allocation66_spill] sm:$0xff]  ;;  %v6861_v55 = vld [vmem:[#allocation67_spill] sm:$0xff] }
 0xb07   :  { %v1631_v30 = vadd.f32 %v1623_v22, %v5493_v5  ;;  %v1625_v31 = vmul.f32 %v1617_v29, %v1584_v57  ;;  %v6849_v5 = vld [vmem:[#allocation56_spill] sm:$0xff]  ;;  %v1707_v47 = vrot.slane %v1698_v41, %v6860_v9  ;;  %v1711_v16 = vrot.slane %v1698_v41, %v6861_v55 }
 0xb08   :  { %v1638_v50 = vmul.f32 0.05739267, %v1630_v58  ;;  %v1632_v36 = vadd.f32 %v1624_v62, %v5502_v15  ;;  %v6852_v15 = vld [vmem:[#allocation59_spill] sm:$0xff]  ;;  %v6853_v57 = vld [vmem:[#allocation60_spill] sm:$0xff]  ;;  %v6862_v62 = vld [vmem:[#allocation25_spill] sm:$0xff] }
 0xb09   :  { %v1639_v19 = vmul.f32 0.05739267, %v1631_v30  ;;  %v1633_v60 = vadd.f32 %v1625_v31, %v5491_v43 }
 0xb0a   :  { %v1642_v21 = vsub.f32 %v1634_v28, %v1638_v50  ;;  %v1640_v44 = vmul.f32 0.05739267, %v1632_v36  ;;  %v6863_v28 = vld [vmem:[#allocation26_spill] sm:$0xff] }
 0xb0b   :  { %v1641_v20 = vmul.f32 0.05739267, %v1633_v60  ;;  %v1643_v13 = vsub.f32 %v1635_v14, %v1639_v19  ;;  %v6864_v60 = vld [vmem:[#allocation27_spill] sm:$0xff] }
 0xb0c   :  { %v1644_v12 = vsub.f32 %v1636_v1, %v1640_v44 }
 0xb0d   :  { %v1645_v34 = vsub.f32 %v1637_v17, %v1641_v20  ;;  %v6865_v17 = vld [vmem:[#allocation28_spill] sm:$0xff] }
 0xb0e   :  { %v1646_v23 = vpack.c.bf16 %v1644_v12, %v1642_v21 }
 0xb0f   :  { %v1647_v18 = vpack.c.bf16 %v1645_v34, %v1643_v13 }
 0xb11   :  { %1684 = vmatprep.mubr.bf16.mxu0 %v1647_v18 }
 0xb12   :  { %1685 = vmatmul.mubr.bf16.vlgmr.msra.gmra.mrb[28].mxu0 %v1646_v23 }
 0xb13   :  { %1715 = vmatpush1.bf16.msra.mxu0 %v5165_v51  ;;  %1746 = vmatprep.mubr.bf16.mxu0 %v6720_v25 }
 0xb14   :  { %1716 = vmatprep.subr.bf16.mxu0 %v5169_v54  ;;  %v3485_v54 = vld [vmem:[%s6425_s8 + $0x3] ss:$0 sm:$0xff] }
 0xb17   :  { %1717 = vmatpush1.bf16.msra.mxu0 %v5172_v32 }
 0xb18   :  { %1718 = vmatprep.subr.bf16.mxu0 %v5175_v26 }
 0xb1b   :  { %1719 = vmatpush1.bf16.msra.mxu0 %v5178_v24 }
 0xb1c   :  { %1720 = vmatprep.subr.bf16.mxu0 %v5181_v56 }
 0xb1f   :  { %1721 = vmatpush1.bf16.msra.mxu0 %v5184_v38 }
 0xb20   :  { %1722 = vmatprep.subr.bf16.mxu0 %v5187_v6 }
 0xb23   :  { %1723 = vmatpush1.bf16.msra.mxu0 %v5190_v8  ;;  %v5570_v8 = vld [vmem:[#allocation5] sm:$0xff] }
 0xb24   :  { %1724 = vmatprep.subr.bf16.mxu0 %v5193_v4 }
 0xb27   :  { %1725 = vmatpush1.bf16.msra.mxu0 %v5196_v2 }
 0xb28   :  { %1726 = vmatprep.subr.bf16.mxu0 %v5199_v37  ;;  %v5573_v37 = vld [vmem:[#allocation5 + $0x8] sm:$0xff] }
 0xb2b   :  { %1727 = vmatpush1.bf16.msra.mxu0 %v5202_v46 }
 0xb2c   :  { %1728 = vmatprep.subr.bf16.mxu0 %v5205_v49 }
 0xb2f   :  { %1729 = vmatpush1.bf16.msra.mxu0 %v5208_v35 }
 0xb30   :  { %3580 = vmatprep.subr.bf16.mxu0 %v5411_v39 }
 0xbe5   :  { %v3574_v51 = vpop.f32.mrb[28].mxu0 }
 0xbe6   :  { %v3575_v32 = vpop.f32.mrb[29].mxu0 }
 0xbe7   :  { %v3576_v26 = vadd.f32 %v3575_v32, %v3574_v51  ;;  %v3577_v24 = vpop.f32.mrb[30].mxu0 }
 0xbe8   :  { %v3578_v56 = vpop.f32.mrb[31].mxu0 }
 0xbe9   :  { %v1687_v38 = vadd.f32 %v3576_v26, %v3485_v54  ;;  %v3579_v6 = vadd.f32 %v3578_v56, %v3577_v24 }
 0xbeb   :  { %v1693_v4 = vmul.f32 %v5570_v8, %v1687_v38  ;;  %v1690_v2 = vadd.f32 %v3579_v6, %v3485_v54 }
 0xbed   :  { %v1694_v46 = vmul.f32 %v5573_v37, %v1690_v2  ;;  %v5577_v49 = vadd.f32 %v1693_v4, %v5420_v27  ;;  %v6850_v27 = vld [vmem:[#allocation57_spill] sm:$0xff] }
 0xbef   :  { %v5580_v35 = vadd.f32 %v1694_v46, %v5423_v10  ;;  %v6851_v10 = vld [vmem:[#allocation58_spill] sm:$0xff] }
 0xbf1   :  { %v1702_v43 = vpack.c.bf16 %v5580_v35, %v5577_v49 }
 0xbf3   :  { %1747 = vmatmul.mubr.bf16.vlgmr.msra.gmra.mrb[32].mxu0 %v1702_v43 }
 0xbf4   :  { %3581 = vmatpush3.bf16.msra.mxu0 %v5427_v11 }
 0xbf5   :  { %3582 = vmatprep.subr.bf16.mxu0 %v5430_v33 }
 0xbf8   :  { %3583 = vmatpush3.bf16.msra.mxu0 %v5433_v48 }
 0xbf9   :  { %3584 = vmatprep.subr.bf16.mxu0 %v5436_v45 }
 0xbfc   :  { %3585 = vmatpush3.bf16.msra.mxu0 %v5439_v40 }
 0xbfd   :  { %3586 = vmatprep.subr.bf16.mxu0 %v6849_v5 }
 0xc00   :  { %3587 = vmatpush3.bf16.msra.mxu0 %v6850_v27 }
 0xc01   :  { %3588 = vmatprep.subr.bf16.mxu0 %v6851_v10 }
 0xc04   :  { %3589 = vmatpush3.bf16.msra.mxu0 %v6852_v15 }
 0xc05   :  { %3590 = vmatprep.subr.bf16.mxu0 %v6853_v57 }
 0xc08   :  { %3591 = vmatpush3.bf16.msra.mxu0 %v6854_v53 }
 0xc09   :  { %3592 = vmatprep.subr.bf16.mxu0 %v6855_v0 }
 0xc0c   :  { %3593 = vmatpush3.bf16.msra.mxu0 %v6856_v61 }
 0xc0d   :  { %3594 = vmatprep.subr.bf16.mxu0 %v6857_v59 }
 0xc10   :  { %3595 = vmatpush3.bf16.msra.mxu0 %v6858_v3 }
 0xc11   :  { %1997 = vmatprep.subr.bf16.mxu0 %v6859_v52 }
 0xcc6   :  { %v1748_v7 = vpop.f32.mrb[32].mxu0 }
 0xcc7   :  { %v5602_v22 = vadd.f32 %v1748_v7, %v1707_v47  ;;  %v1750_v29 = vpop.f32.mrb[33].mxu0 }
 0xcc8   :  { %v1751_v63 = vadd.f32 %v1750_v29, %v1711_v16  ;;  %v1752_v58 = vpop.f32.mrb[34].mxu0 }
 0xcc9   :  { %v1757_v42 = vadd.f32 %v6862_v62, %v5602_v22  ;;  %v1753_v30 = vadd.f32 %v1752_v58, %v1707_v47  ;;  %v1754_v31 = vpop.f32.mrb[35].mxu0  ;;  %v1781_v23 = vmul.f32 0.5, %v5602_v22 }
 0xcca   :  { %v1758_v50 = vadd.f32 %v6863_v28, %v1751_v63  ;;  %v1782_v36 = vmul.f32 0.5, %v1751_v63  ;;  %v1755_v14 = vadd.f32 %v1754_v31, %v1711_v16 }
 0xccb   :  { %v1761_v19 = vmul.f32 0.5, %v1757_v42  ;;  %v1759_v1 = vadd.f32 %v6864_v60, %v1753_v30  ;;  %v1783_v44 = vmul.f32 0.5, %v1753_v30 }
 0xccc   :  { %v1762_v21 = vmul.f32 0.5, %v1758_v50  ;;  %3944 = vtanh.f32 %v1782_v36  ;;  %v1760_v20 = vadd.f32 %v6865_v17, %v1755_v14  ;;  %v1784_v34 = vmul.f32 0.5, %v1755_v14 }
 0xccd   :  { %3946 = vtanh.f32 %v1761_v19  ;;  %v1763_v13 = vmul.f32 0.5, %v1759_v1 }
 0xcce   :  { %3948 = vtanh.f32 %v1762_v21  ;;  %v1764_v12 = vmul.f32 0.5, %v1760_v20 }
 0xccf   :  { %3950 = vtanh.f32 %v1763_v13 }
 0xcd0   :  { %3952 = vtanh.f32 %v1783_v44 }
 0xcd1   :  { %3954 = vtanh.f32 %v1764_v12 }
 0xcd2   :  { %3956 = vtanh.f32 %v1784_v34  ;;  %v6868_v34 = vld [vmem:[#allocation31_spill] sm:$0xff] }
 0xcd3   :  { %3958 = vtanh.f32 %v1781_v23 }
 0xcd6   :  { %v3945_v18 = vpop.eup %3944 }
 0xcd7   :  { %v3947_v51 = vpop.eup %3946  ;;  %v1790_v38 = vmul.f32 0.5, %v3945_v18  ;;  %v6869_v18 = vld [vmem:[#allocation32_spill] sm:$0xff] }
 0xcd8   :  { %v3949_v54 = vpop.eup %3948  ;;  %v1769_v26 = vmul.f32 0.5, %v3947_v51  ;;  %v6870_v51 = vld [vmem:[#allocation33_spill] sm:$0xff] }
 0xcd9   :  { %v3951_v32 = vpop.eup %3950  ;;  %v1770_v24 = vmul.f32 0.5, %v3949_v54  ;;  %v1794_v7 = vadd.f32 0.5, %v1790_v38  ;;  %v6871_v54 = vld [vmem:[#allocation34_spill] sm:$0xff]  ;;  %v6878_v38 = vld [vmem:[#allocation69_spill] sm:$0xff] }
 0xcda   :  { %v3953_v56 = vpop.eup %3952  ;;  %v1771_v6 = vmul.f32 0.5, %v3951_v32  ;;  %v1773_v41 = vadd.f32 0.5, %v1769_v26  ;;  %v6872_v32 = vld [vmem:[#allocation36_spill] sm:$0xff] }
 0xcdb   :  { %v3955_v4 = vpop.eup %3954  ;;  %v1774_v52 = vadd.f32 0.5, %v1770_v24  ;;  %v1791_v62 = vmul.f32 0.5, %v3953_v56  ;;  %v5620_v44 = vmul.f32 %v1794_v7, %v1751_v63  ;;  %v6867_v63 = vld [vmem:[#allocation30_spill] sm:$0xff]  ;;  %v6874_v26 = vld [vmem:[#allocation40_spill] sm:$0xff]  ;;  %v6888_v7 = vld [vmem:[#allocation47_spill] sm:$0xff] }
 0xcdc   :  { %v3957_v2 = vpop.eup %3956  ;;  %v1775_v46 = vadd.f32 0.5, %v1771_v6  ;;  %v1772_v43 = vmul.f32 0.5, %v3955_v4  ;;  %v5616_v19 = vmul.f32 %v1773_v41, %v1757_v42  ;;  %v6866_v42 = vld [vmem:[#allocation29_spill] sm:$0xff]  ;;  %v6876_v24 = vld [vmem:[#allocation42_spill] sm:$0xff]  ;;  %v6877_v56 = vld [vmem:[#allocation68_spill] sm:$0xff] }
 0xcdd   :  { %v1792_v47 = vmul.f32 0.5, %v3957_v2  ;;  %v3959_v16 = vpop.eup %3958  ;;  %v5612_v28 = vmul.f32 %v1774_v52, %v1758_v50  ;;  %v1795_v13 = vadd.f32 0.5, %v1791_v62  ;;  %v6879_v6 = vld [vmem:[#allocation70_spill] sm:$0xff]  ;;  %v6880_v4 = vld [vmem:[#allocation71_spill] sm:$0xff]  ;;  %v6885_v41 = vld [vmem:[#allocation44_spill] sm:$0xff] }
 0xcde   :  { %v1776_v29 = vadd.f32 0.5, %v1772_v43  ;;  %v5610_v58 = vmul.f32 %v1775_v46, %v1759_v1  ;;  %v1789_v60 = vmul.f32 0.5, %v3959_v16  ;;  %v6881_v2 = vld [vmem:[#allocation35_spill] sm:$0xff]  ;;  %v6882_v46 = vld [vmem:[#allocation38_spill] sm:$0xff]  ;;  %v6890_v62 = vld [vmem:[#allocation49_spill] sm:$0xff] }
 0xcdf   :  { %v1796_v31 = vadd.f32 0.5, %v1792_v47  ;;  %v6883_v43 = vld [vmem:[#allocation39_spill] sm:$0xff]  ;;  %v6886_v47 = vld [vmem:[#allocation45_spill] sm:$0xff]  ;;  %v6887_v16 = vld [vmem:[#allocation46_spill] sm:$0xff] }
 0xce0   :  { %v5614_v36 = vmul.f32 %v1776_v29, %v1760_v20  ;;  %v1801_v1 = vpack.c.bf16 %v5610_v58, %v5616_v19  ;;  %v1793_v20 = vadd.f32 0.5, %v1789_v60  ;;  %v6884_v52 = vld [vmem:[#allocation43_spill] sm:$0xff]  ;;  %v6889_v29 = vld [vmem:[#allocation48_spill] sm:$0xff] }
 0xce1   :  { %v5618_v21 = vmul.f32 %v1796_v31, %v1755_v14  ;;  %v5629_v14 = vmul.f32 %v1795_v13, %v1753_v30  ;;  %v6873_v30 = vld [vmem:[#allocation37_spill] sm:$0xff]  ;;  %v6891_v31 = vld [vmem:[#allocation50_spill] sm:$0xff]  ;;  %v6892_v60 = vld [vmem:[#allocation51_spill] sm:$0xff] }
 0xce2   :  { %v1802_v17 = vpack.c.bf16 %v5614_v36, %v5612_v28  ;;  %v5633_v12 = vmul.f32 %v1793_v20, %v5602_v22  ;;  %v6875_v22 = vld [vmem:[#allocation41_spill] sm:$0xff] }
 0xce3   :  { %v1804_v50 = vpack.c.bf16 %v5618_v21, %v5620_v44  ;;  %v6894_v13 = vld [vmem:[#allocation53_spill] sm:$0xff] }
 0xce4   :  { %1848 = vmatprep.mubr.bf16.mxu1 %v1802_v17  ;;  %v1803_v23 = vpack.c.bf16 %v5629_v14, %v5633_v12  ;;  %v6893_v17 = vld [vmem:[#allocation52_spill] sm:$0xff]  ;;  %v5666_v20 = vld [vmem:[#allocation10 + $0x4] ss:$8 sps:$4 sm:$0xff]  }
 0xce5   :  { %1849 = vmatmul.mubr.bf16.vlgmr.msra.gmra.mrb[32].mxu1 %v1801_v1  ;;  %v6895_v1 = vld [vmem:[#allocation54_spill] sm:$0xff]  ;;  %6897 = vst [vmem:[#allocation23_spill] sm:$0xff] %v5666_v20 }
 0xce6   :  { %1858 = vmatprep.mubr.bf16.mxu1 %v1804_v50  ;;  %2100 = vmatpush1.bf16.msra.mxu1 %v6866_v42  ;;  %v6896_v50 = vld [vmem:[#allocation55_spill] sm:$0xff]  ;;  %v1700_v42 = vld [vmem:[#allocation14 + $0x4] ss:$8 sm:$0x3] }
 0xce7   :  { %2101 = vmatprep.subr.bf16.mxu1 %v6867_v63  ;;  %v1809_v63 = vrot.slane %v1700_v42, %v6860_v9 }
 0xcea   :  { %2102 = vmatpush1.bf16.msra.mxu1 %v6868_v34  ;;  %v1813_v34 = vrot.slane %v1700_v42, %v6861_v55 }
 0xceb   :  { %2103 = vmatprep.subr.bf16.mxu1 %v6869_v18 }
 0xced   :  { %1859 = vmatmul.mubr.bf16.gmra.mrb[36].mxu1 %v1803_v23 }
 0xcee   :  { %2104 = vmatpush1.bf16.msra.mxu1 %v6870_v51 }
 0xcef   :  { %2105 = vmatprep.subr.bf16.mxu1 %v6871_v54 }
 0xcf2   :  { %2106 = vmatpush1.bf16.msra.mxu1 %v6872_v32 }
 0xcf3   :  { %2107 = vmatprep.subr.bf16.mxu1 %v6873_v30 }
 0xcf6   :  { %2108 = vmatpush1.bf16.msra.mxu1 %v6874_v26 }
 0xcf7   :  { %2109 = vmatprep.subr.bf16.mxu1 %v6875_v22 }
 0xcfa   :  { %2110 = vmatpush1.bf16.msra.mxu1 %v6876_v24 }
 0xcfb   :  { %2111 = vmatprep.subr.bf16.mxu1 %v6877_v56 }
 0xcfe   :  { %2112 = vmatpush1.bf16.msra.mxu1 %v6878_v38 }
 0xcff   :  { %2113 = vmatprep.subr.bf16.mxu1 %v6879_v6 }
 0xd02   :  { %2114 = vmatpush1.bf16.msra.mxu1 %v6880_v4 }
 0xd03   :  { %2115 = vmatprep.subr.bf16.mxu1 %v6881_v2 }
 0xd06   :  { %2116 = vmatpush1.bf16.msra.mxu1 %v6882_v46 }
 0xd07   :  { %2117 = vmatprep.subr.bf16.mxu1 %v6883_v43 }
 0xd0a   :  { %2118 = vmatpush1.bf16.msra.mxu1 %v6884_v52 }
 0xd0b   :  { %2119 = vmatprep.subr.bf16.mxu1 %v6885_v41 }
 0xd0e   :  { %2120 = vmatpush1.bf16.msra.mxu1 %v6886_v47 }
 0xd0f   :  { %2121 = vmatprep.subr.bf16.mxu1 %v6887_v16 }
 0xd12   :  { %2122 = vmatpush1.bf16.msra.mxu1 %v6888_v7 }
 0xd13   :  { %2123 = vmatprep.subr.bf16.mxu1 %v6889_v29 }
 0xd16   :  { %2124 = vmatpush1.bf16.msra.mxu1 %v6890_v62 }
 0xd17   :  { %2125 = vmatprep.subr.bf16.mxu1 %v6891_v31 }
 0xd1a   :  { %2126 = vmatpush1.bf16.msra.mxu1 %v6892_v60 }
 0xd1b   :  { %2127 = vmatprep.subr.bf16.mxu1 %v6893_v17 }
 0xd1e   :  { %2128 = vmatpush1.bf16.msra.mxu1 %v6894_v13 }
 0xd1f   :  { %2129 = vmatprep.subr.bf16.mxu1 %v6895_v1 }
 0xd22   :  { %2130 = vmatpush1.bf16.msra.mxu1 %v6896_v50 }
 0xd23   :  { %2382 = vmatprep.subr.bf16.mxu1 %v5666_v20 }
 0xdb8   :  { %v1850_v23 = vpop.f32.mrb[32].mxu1 }
 0xdb9   :  { %v1851_v18 = vadd.f32 %v1850_v23, %v1809_v63  ;;  %v1852_v51 = vpop.f32.mrb[33].mxu1 }
 0xdba   :  { %v1853_v54 = vadd.f32 %v1852_v51, %v1813_v34  ;;  %v1854_v32 = vpop.f32.mrb[34].mxu1 }
 0xdbb   :  { %v1869_v30 = vmul.f32 0.5, %v1851_v18  ;;  %v1855_v26 = vadd.f32 %v1854_v32, %v1809_v63  ;;  %v1856_v22 = vpop.f32.mrb[35].mxu1 }
 0xdbc   :  { %v1870_v24 = vmul.f32 0.5, %v1853_v54  ;;  %v1857_v56 = vadd.f32 %v1856_v22, %v1813_v34 }
 0xdbd   :  { %3960 = vtanh.f32 %v1869_v30  ;;  %v1871_v38 = vmul.f32 0.5, %v1855_v26 }
 0xdbe   :  { %3962 = vtanh.f32 %v1870_v24  ;;  %v1872_v6 = vmul.f32 0.5, %v1857_v56 }
 0xdbf   :  { %3964 = vtanh.f32 %v1871_v38 }
 0xdc0   :  { %3966 = vtanh.f32 %v1872_v6  ;;  %v1860_v4 = vpop.f32.mrb[36].mxu1 }
 0xdc1   :  { %v1861_v2 = vadd.f32 %v1860_v4, %v1809_v63  ;;  %v1862_v46 = vpop.f32.mrb[37].mxu1 }
 0xdc2   :  { %v1863_v43 = vadd.f32 %v1862_v46, %v1813_v34  ;;  %v1864_v52 = vpop.f32.mrb[38].mxu1 }
 0xdc3   :  { %v1873_v41 = vmul.f32 0.5, %v1861_v2  ;;  %v1865_v47 = vadd.f32 %v1864_v52, %v1809_v63  ;;  %v1866_v16 = vpop.f32.mrb[39].mxu1 }
 0xdc4   :  { %v1874_v7 = vmul.f32 0.5, %v1863_v43  ;;  %v1867_v29 = vadd.f32 %v1866_v16, %v1813_v34 }
 0xdc5   :  { %3968 = vtanh.f32 %v1873_v41  ;;  %v1875_v62 = vmul.f32 0.5, %v1865_v47 }
 0xdc6   :  { %3970 = vtanh.f32 %v1874_v7  ;;  %v1876_v31 = vmul.f32 0.5, %v1867_v29 }
 0xdc7   :  { %v3961_v60 = vpop.eup %3960  ;;  %3972 = vtanh.f32 %v1875_v62 }
 0xdc8   :  { %v3963_v17 = vpop.eup %3962  ;;  %v1885_v13 = vmul.f32 0.5, %v3961_v60  ;;  %3974 = vtanh.f32 %v1876_v31 }
 0xdc9   :  { %v3965_v1 = vpop.eup %3964  ;;  %v1886_v50 = vmul.f32 0.5, %v3963_v17 }
 0xdca   :  { %v3967_v42 = vpop.eup %3966  ;;  %v1887_v23 = vmul.f32 0.5, %v3965_v1  ;;  %v1893_v32 = vadd.f32 0.5, %v1885_v13 }
 0xdcb   :  { %v1888_v51 = vmul.f32 0.5, %v3967_v42  ;;  %v1894_v30 = vadd.f32 0.5, %v1886_v50 }
 0xdcc   :  { %v1895_v63 = vadd.f32 0.5, %v1887_v23  ;;  %v1901_v38 = vmul.f32 %v1893_v32, %v1851_v18 }
 0xdcd   :  { %v1896_v24 = vadd.f32 0.5, %v1888_v51  ;;  %v1902_v46 = vmul.f32 %v1894_v30, %v1853_v54 }
 0xdce   :  { %v1903_v16 = vmul.f32 %v1895_v63, %v1855_v26  ;;  %v1909_v1 = vadd.f32 %v1901_v38, %v5616_v19 }
 0xdcf   :  { %v3969_v22 = vpop.eup %3968  ;;  %v1904_v31 = vmul.f32 %v1896_v24, %v1857_v56  ;;  %v1910_v42 = vadd.f32 %v1902_v46, %v5612_v28 }
 0xdd0   :  { %v3971_v34 = vpop.eup %3970  ;;  %v1889_v6 = vmul.f32 0.5, %v3969_v22  ;;  %v1911_v18 = vadd.f32 %v1903_v16, %v5610_v58  ;;  %v1917_v63 = vmul.f32 0.17324737, %v1909_v1  ;;  %v5698_v16 = vld [vmem:[#allocation8 + $0x30] ss:$8 sps:$4 sm:$0xff]  }
 0xdd1   :  { %v3973_v4 = vpop.eup %3972  ;;  %v1890_v52 = vmul.f32 0.5, %v3971_v34  ;;  %v1912_v26 = vadd.f32 %v1904_v31, %v5614_v36  ;;  %v5707_v31 = vld [vmem:[#allocation8 + $0x54] ss:$8 sps:$4 sm:$0xff]   ;;  %v5716_v1 = vld [vmem:[#allocation8 + $0x60] ss:$8 sps:$4 sm:$0xff]  }
 0xdd2   :  { %v3975_v41 = vpop.eup %3974  ;;  %v1897_v7 = vadd.f32 0.5, %v1889_v6  ;;  %v1891_v62 = vmul.f32 0.5, %v3973_v4 }
 0xdd3   :  { %v1898_v60 = vadd.f32 0.5, %v1890_v52  ;;  %v1892_v17 = vmul.f32 0.5, %v3975_v41  ;;  %v1920_v58 = vmul.f32 0.17324737, %v1912_v26  ;;  %v5692_v52 = vld [vmem:[#allocation8 + $0x20] ss:$8 sps:$4 sm:$0xff]  }
 0xdd4   :  { %v1905_v13 = vmul.f32 %v1897_v7, %v1861_v2  ;;  %v1899_v50 = vadd.f32 0.5, %v1891_v62  ;;  %v1918_v2 = vmul.f32 0.17324737, %v1910_v42  ;;  %v5695_v41 = vld [vmem:[#allocation8 + $0x34] ss:$8 sps:$4 sm:$0xff]  }
 0xdd5   :  { %v1906_v23 = vmul.f32 %v1898_v60, %v1863_v43  ;;  %v1900_v51 = vadd.f32 0.5, %v1892_v17  ;;  %v1919_v43 = vmul.f32 0.17324737, %v1911_v18  ;;  %v5701_v7 = vld [vmem:[#allocation8 + $0x44] ss:$8 sps:$4 sm:$0xff]  }
 0xdd6   :  { %v1913_v54 = vadd.f32 %v1905_v13, %v5633_v12  ;;  %v1907_v32 = vmul.f32 %v1899_v50, %v1865_v47  ;;  %v5704_v62 = vld [vmem:[#allocation8 + $0x40] ss:$8 sps:$4 sm:$0xff]   ;;  %v5710_v60 = vld [vmem:[#allocation8 + $0x50] ss:$8 sps:$4 sm:$0xff]   ;;  %v5713_v17 = vld [vmem:[#allocation8 + $0x64] ss:$8 sps:$4 sm:$0xff]  }
 0xdd7   :  { %v1914_v30 = vadd.f32 %v1906_v23, %v5620_v44  ;;  %v1908_v56 = vmul.f32 %v1900_v51, %v1867_v29  ;;  %v5679_v44 = vld [vmem:[#allocation8] ss:$8 sps:$4 sm:$0xff]   ;;  %v5689_v29 = vld [vmem:[#allocation8 + $0x24] ss:$8 sps:$4 sm:$0xff]   ;;  %v5719_v13 = vld [vmem:[#allocation8 + $0x74] ss:$8 sps:$4 sm:$0xff]  }
 0xdd8   :  { %v1921_v22 = vmul.f32 0.07133715, %v1913_v54  ;;  %v1915_v19 = vadd.f32 %v1907_v32, %v5629_v14  ;;  %v5683_v14 = vld [vmem:[#allocation8 + $0x14] ss:$8 sps:$4 sm:$0xff]   ;;  %v5722_v50 = vld [vmem:[#allocation8 + $0x70] ss:$8 sps:$4 sm:$0xff]  }
 0xdd9   :  { %v1922_v24 = vmul.f32 0.07133715, %v1914_v30  ;;  %v1916_v28 = vadd.f32 %v1908_v56, %v5618_v21  ;;  %v5686_v21 = vld [vmem:[#allocation8 + $0x10] ss:$8 sps:$4 sm:$0xff]   ;;  %v3486_v23 = vld [vmem:[%s6425_s8 + $0x4] ss:$0 sm:$0xff] }
 0xdda   :  { %v1925_v34 = vsub.f32 %v1917_v63, %v1921_v22  ;;  %v1923_v38 = vmul.f32 0.07133715, %v1915_v19 }
 0xddb   :  { %v1924_v6 = vmul.f32 0.07133715, %v1916_v28  ;;  %v1926_v12 = vsub.f32 %v1918_v2, %v1922_v24  ;;  %v5770_v28 = vld [vmem:[#allocation7 + $0x10] sm:$0xff] }
 0xddc   :  { %v1927_v47 = vsub.f32 %v1919_v43, %v1923_v38  ;;  %6901 = vst [vmem:[#allocation59_spill] sm:$0xff] %v5770_v28 }
 0xddd   :  { %v1928_v4 = vsub.f32 %v1920_v58, %v1924_v6  ;;  %v5775_v58 = vld [vmem:[#allocation7 + $0x18] sm:$0xff] }
 0xdde   :  { %v1929_v36 = vpack.c.bf16 %v1927_v47, %v1925_v34  ;;  %6902 = vst [vmem:[#allocation60_spill] sm:$0xff] %v5775_v58 }
 0xddf   :  { %v1930_v46 = vpack.c.bf16 %v1928_v4, %v1926_v12 }
 0xde1   :  { %1967 = vmatprep.mubr.bf16.mxu0 %v1930_v46 }
 0xde2   :  { %1968 = vmatmul.mubr.bf16.vlgmr.msra.gmra.mrb[36].mxu0 %v1929_v36 }
 0xde3   :  { %1998 = vmatpush1.bf16.msra.mxu0 %v5679_v44  ;;  %2029 = vmatprep.mubr.bf16.mxu0 %v6720_v25 }
 0xde4   :  { %1999 = vmatprep.subr.bf16.mxu0 %v5683_v14 }
 0xde7   :  { %2000 = vmatpush1.bf16.msra.mxu0 %v5686_v21 }
 0xde8   :  { %2001 = vmatprep.subr.bf16.mxu0 %v5689_v29 }
 0xdeb   :  { %2002 = vmatpush1.bf16.msra.mxu0 %v5692_v52 }
 0xdec   :  { %2003 = vmatprep.subr.bf16.mxu0 %v5695_v41 }
 0xdef   :  { %2004 = vmatpush1.bf16.msra.mxu0 %v5698_v16 }
 0xdf0   :  { %2005 = vmatprep.subr.bf16.mxu0 %v5701_v7 }
 0xdf3   :  { %2006 = vmatpush1.bf16.msra.mxu0 %v5704_v62 }
 0xdf4   :  { %2007 = vmatprep.subr.bf16.mxu0 %v5707_v31 }
 0xdf7   :  { %2008 = vmatpush1.bf16.msra.mxu0 %v5710_v60 }
 0xdf8   :  { %2009 = vmatprep.subr.bf16.mxu0 %v5713_v17 }
 0xdfb   :  { %2010 = vmatpush1.bf16.msra.mxu0 %v5716_v1 }
 0xdfc   :  { %2011 = vmatprep.subr.bf16.mxu0 %v5719_v13 }
 0xdff   :  { %2012 = vmatpush1.bf16.msra.mxu0 %v5722_v50 }
 0xe00   :  { %3602 = vmatprep.subr.bf16.mxu0 %v5411_v39 }
 0xeb5   :  { %v3596_v42 = vpop.f32.mrb[36].mxu0 }
 0xeb6   :  { %v3597_v51 = vpop.f32.mrb[37].mxu0 }
 0xeb7   :  { %v3598_v18 = vadd.f32 %v3597_v51, %v3596_v42  ;;  %v3599_v54 = vpop.f32.mrb[38].mxu0 }
 0xeb8   :  { %v3600_v32 = vpop.f32.mrb[39].mxu0 }
 0xeb9   :  { %v1970_v26 = vadd.f32 %v3598_v18, %v3486_v23  ;;  %v3601_v30 = vadd.f32 %v3600_v32, %v3599_v54 }
 0xebb   :  { %v1976_v56 = vmul.f32 %v5570_v8, %v1970_v26  ;;  %v1973_v63 = vadd.f32 %v3601_v30, %v3486_v23 }
 0xebd   :  { %v1977_v22 = vmul.f32 %v5573_v37, %v1973_v63  ;;  %v5732_v19 = vadd.f32 %v1976_v56, %v5577_v49 }
 0xebf   :  { %v5735_v39 = vadd.f32 %v1977_v22, %v5580_v35 }
 0xec1   :  { %v1985_v2 = vpack.c.bf16 %v5735_v39, %v5732_v19 }
 0xec3   :  { %2030 = vmatmul.mubr.bf16.vlgmr.msra.gmra.mrb[40].mxu0 %v1985_v2 }
 0xec4   :  { %3603 = vmatpush3.bf16.msra.mxu0 %v5427_v11  ;;  %v5754_v11 = vld [vmem:[#allocation8 + $0x4] ss:$8 sps:$4 sm:$0xff]  }
 0xec5   :  { %3604 = vmatprep.subr.bf16.mxu0 %v5430_v33  ;;  %6898 = vst [vmem:[#allocation56_spill] sm:$0xff] %v5754_v11  ;;  %v1981_v33 = vld [vmem:[#allocation13 + $0x5] ss:$8 sm:$0x3] }
 0xec8   :  { %3605 = vmatpush3.bf16.msra.mxu0 %v5433_v48  ;;  %v1990_v48 = vrot.slane %v1981_v33, %v6860_v9 }
 0xec9   :  { %3606 = vmatprep.subr.bf16.mxu0 %v5436_v45  ;;  %v1994_v45 = vrot.slane %v1981_v33, %v6861_v55 }
 0xecc   :  { %3607 = vmatpush3.bf16.msra.mxu0 %v5439_v40 }
 0xecd   :  { %3608 = vmatprep.subr.bf16.mxu0 %v6849_v5 }
 0xed0   :  { %3609 = vmatpush3.bf16.msra.mxu0 %v6850_v27 }
 0xed1   :  { %3610 = vmatprep.subr.bf16.mxu0 %v6851_v10  ;;  %v5761_v10 = vld [vmem:[#allocation7] sm:$0xff] }
 0xed2   :  { %6899 = vst [vmem:[#allocation57_spill] sm:$0xff] %v5761_v10 }
 0xed4   :  { %3611 = vmatpush3.bf16.msra.mxu0 %v6852_v15 }
 0xed5   :  { %3612 = vmatprep.subr.bf16.mxu0 %v6853_v57 }
 0xed8   :  { %3613 = vmatpush3.bf16.msra.mxu0 %v6854_v53 }
 0xed9   :  { %3614 = vmatprep.subr.bf16.mxu0 %v6855_v0  ;;  %v5767_v0 = vld [vmem:[#allocation7 + $0x8] sm:$0xff] }
 0xeda   :  { %6900 = vst [vmem:[#allocation58_spill] sm:$0xff] %v5767_v0 }
 0xedc   :  { %3615 = vmatpush3.bf16.msra.mxu0 %v6856_v61 }
 0xedd   :  { %3616 = vmatprep.subr.bf16.mxu0 %v6857_v59 }
 0xee0   :  { %3617 = vmatpush3.bf16.msra.mxu0 %v6858_v3 }
 0xee1   :  { %2280 = vmatprep.subr.bf16.mxu0 %v5754_v11 }
 0xf96   :  { %v2031_v40 = vpop.f32.mrb[40].mxu0 }
 0xf97   :  { %v5759_v49 = vadd.f32 %v2031_v40, %v1990_v48  ;;  %v2033_v35 = vpop.f32.mrb[41].mxu0 }
 0xf98   :  { %v2034_v5 = vadd.f32 %v2033_v35, %v1994_v45  ;;  %v2035_v27 = vpop.f32.mrb[42].mxu0 }
 0xf99   :  { %v2040_v15 = vadd.f32 %v5761_v10, %v5759_v49  ;;  %v5765_v57 = vadd.f32 %v2035_v27, %v1990_v48  ;;  %v2037_v53 = vpop.f32.mrb[43].mxu0  ;;  %v2064_v36 = vmul.f32 0.5, %v5759_v49 }
 0xf9a   :  { %v2041_v61 = vadd.f32 %v5767_v0, %v2034_v5  ;;  %v2065_v59 = vmul.f32 0.5, %v2034_v5  ;;  %v2038_v3 = vadd.f32 %v2037_v53, %v1994_v45 }
 0xf9b   :  { %v2044_v24 = vmul.f32 0.5, %v2040_v15  ;;  %v2042_v43 = vadd.f32 %v5770_v28, %v5765_v57  ;;  %v2066_v38 = vmul.f32 0.5, %v5765_v57 }
 0xf9c   :  { %v2045_v34 = vmul.f32 0.5, %v2041_v61  ;;  %3976 = vtanh.f32 %v2065_v59  ;;  %v2043_v6 = vadd.f32 %v5775_v58, %v2038_v3  ;;  %v2067_v4 = vmul.f32 0.5, %v2038_v3 }
 0xf9d   :  { %3978 = vtanh.f32 %v2044_v24  ;;  %v2046_v12 = vmul.f32 0.5, %v2042_v43 }
 0xf9e   :  { %3980 = vtanh.f32 %v2045_v34  ;;  %v2047_v47 = vmul.f32 0.5, %v2043_v6 }
 0xf9f   :  { %3982 = vtanh.f32 %v2046_v12 }
 0xfa0   :  { %3984 = vtanh.f32 %v2066_v38 }
 0xfa1   :  { %3986 = vtanh.f32 %v2047_v47 }
 0xfa2   :  { %3988 = vtanh.f32 %v2067_v4 }
 0xfa3   :  { %3990 = vtanh.f32 %v2064_v36 }
 0xfa6   :  { %v3977_v46 = vpop.eup %3976 }
 0xfa7   :  { %v3979_v42 = vpop.eup %3978  ;;  %v2073_v26 = vmul.f32 0.5, %v3977_v46 }
 0xfa8   :  { %v3981_v23 = vpop.eup %3980  ;;  %v2052_v18 = vmul.f32 0.5, %v3979_v42 }
 0xfa9   :  { %v3983_v51 = vpop.eup %3982  ;;  %v2053_v54 = vmul.f32 0.5, %v3981_v23  ;;  %v2077_v35 = vadd.f32 0.5, %v2073_v26  ;;  %v5826_v26 = vld [vmem:[#allocation10 + $0x44] ss:$8 sps:$4 sm:$0xff]  }
 0xfaa   :  { %v3985_v32 = vpop.eup %3984  ;;  %v2054_v30 = vmul.f32 0.5, %v3983_v51  ;;  %v2056_v48 = vadd.f32 0.5, %v2052_v18  ;;  %v5809_v51 = vld [vmem:[#allocation10 + $0x10] ss:$8 sps:$4 sm:$0xff]   ;;  %6910 = vst [vmem:[#allocation26_spill] sm:$0xff] %v5826_v26 }
 0xfab   :  { %v3987_v56 = vpop.eup %3986  ;;  %v2057_v33 = vadd.f32 0.5, %v2053_v54  ;;  %v2074_v59 = vmul.f32 0.5, %v3985_v32  ;;  %v5789_v36 = vmul.f32 %v2077_v35, %v2034_v5  ;;  %6905 = vst [vmem:[#allocation63_spill] sm:$0xff] %v5809_v51  ;;  %v5814_v54 = vld [vmem:[#allocation10 + $0x24] ss:$8 sps:$4 sm:$0xff]  }
 0xfac   :  { %v3989_v63 = vpop.eup %3988  ;;  %v2058_v22 = vadd.f32 0.5, %v2054_v30  ;;  %v2055_v2 = vmul.f32 0.5, %v3987_v56  ;;  %v5785_v12 = vmul.f32 %v2056_v48, %v2040_v15  ;;  %v5797_v15 = vld [vmem:[#allocation10] ss:$8 sps:$4 sm:$0xff]   ;;  %6906 = vst [vmem:[#allocation64_spill] sm:$0xff] %v5814_v54 }
 0xfad   :  { %v2075_v45 = vmul.f32 0.5, %v3989_v63  ;;  %v3991_v40 = vpop.eup %3990  ;;  %v5781_v34 = vmul.f32 %v2057_v33, %v2041_v61  ;;  %v2078_v42 = vadd.f32 0.5, %v2074_v59  ;;  %6903 = vst [vmem:[#allocation61_spill] sm:$0xff] %v5797_v15  ;;  %v5820_v32 = vld [vmem:[#allocation10 + $0x34] ss:$8 sps:$4 sm:$0xff]  }
 0xfae   :  { %v2059_v27 = vadd.f32 0.5, %v2055_v2  ;;  %v5779_v53 = vmul.f32 %v2058_v22, %v2042_v43  ;;  %v2072_v47 = vmul.f32 0.5, %v3991_v40  ;;  %6908 = vst [vmem:[#allocation24_spill] sm:$0xff] %v5820_v32  ;;  %v5829_v30 = vld [vmem:[#allocation10 + $0x40] ss:$8 sps:$4 sm:$0xff]  }
 0xfaf   :  { %v2079_v24 = vadd.f32 0.5, %v2075_v45  ;;  %v5801_v5 = vmul.f32 %v2078_v42, %v5765_v57  ;;  %v5817_v57 = vld [vmem:[#allocation10 + $0x20] ss:$8 sps:$4 sm:$0xff]   ;;  %6911 = vst [vmem:[#allocation27_spill] sm:$0xff] %v5829_v30  ;;  %v5832_v56 = vld [vmem:[#allocation10 + $0x54] ss:$8 sps:$4 sm:$0xff]  }
 0xfb0   :  { %v5783_v38 = vmul.f32 %v2059_v27, %v2043_v6  ;;  %v2084_v43 = vpack.c.bf16 %v5779_v53, %v5785_v12  ;;  %v2076_v6 = vadd.f32 0.5, %v2072_v47  ;;  %6907 = vst [vmem:[#allocation65_spill] sm:$0xff] %v5817_v57  ;;  %6912 = vst [vmem:[#allocation28_spill] sm:$0xff] %v5832_v56  ;;  %v5835_v63 = vld [vmem:[#allocation10 + $0x50] ss:$8 sps:$4 sm:$0xff]  }
 0xfb1   :  { %v5787_v4 = vmul.f32 %v2079_v24, %v2038_v3  ;;  %v5803_v3 = vld [vmem:[#allocation10 + $0x14] ss:$8 sps:$4 sm:$0xff]   ;;  %6913 = vst [vmem:[#allocation29_spill] sm:$0xff] %v5835_v63  ;;  %v5838_v22 = vld [vmem:[#allocation10 + $0x64] ss:$8 sps:$4 sm:$0xff]  }
 0xfb2   :  { %v2085_v46 = vpack.c.bf16 %v5783_v38, %v5781_v34  ;;  %6904 = vst [vmem:[#allocation62_spill] sm:$0xff] %v5803_v3  ;;  %v5807_v23 = vmul.f32 %v2076_v6, %v5759_v49  ;;  %v5823_v49 = vld [vmem:[#allocation10 + $0x30] ss:$8 sps:$4 sm:$0xff]   ;;  %6914 = vst [vmem:[#allocation30_spill] sm:$0xff] %v5838_v22  ;;  %v5841_v2 = vld [vmem:[#allocation10 + $0x60] ss:$8 sps:$4 sm:$0xff]  }
 0xfb3   :  { %v2087_v61 = vpack.c.bf16 %v5787_v4, %v5789_v36  ;;  %6909 = vst [vmem:[#allocation25_spill] sm:$0xff] %v5823_v49  ;;  %6915 = vst [vmem:[#allocation31_spill] sm:$0xff] %v5841_v2  ;;  %v5844_v33 = vld [vmem:[#allocation10 + $0x74] ss:$8 sps:$4 sm:$0xff]   ;;  %v5847_v48 = vld [vmem:[#allocation10 + $0x70] ss:$8 sps:$4 sm:$0xff]  }
 0xfb4   :  { %2131 = vmatprep.mubr.bf16.mxu1 %v2085_v46  ;;  %v2086_v18 = vpack.c.bf16 %v5801_v5, %v5807_v23  ;;  %6916 = vst [vmem:[#allocation32_spill] sm:$0xff] %v5844_v33  ;;  %6917 = vst [vmem:[#allocation33_spill] sm:$0xff] %v5847_v48  ;;  %v5850_v45 = vld [vmem:[#allocation10 + $0x84] ss:$8 sps:$4 sm:$0xff]   ;;  %v5853_v40 = vld [vmem:[#allocation10 + $0x80] ss:$8 sps:$4 sm:$0xff]  }
 0xfb5   :  { %2132 = vmatmul.mubr.bf16.vlgmr.msra.gmra.mrb[40].mxu1 %v2084_v43  ;;  %6918 = vst [vmem:[#allocation34_spill] sm:$0xff] %v5850_v45  ;;  %6919 = vst [vmem:[#allocation36_spill] sm:$0xff] %v5853_v40  ;;  %v5856_v35 = vld [vmem:[#allocation10 + $0x94] ss:$8 sps:$4 sm:$0xff]   ;;  %v5859_v27 = vld [vmem:[#allocation10 + $0x90] ss:$8 sps:$4 sm:$0xff]  }
 0xfb6   :  { %2141 = vmatprep.mubr.bf16.mxu1 %v2087_v61  ;;  %2383 = vmatpush1.bf16.msra.mxu1 %v5797_v15  ;;  %6920 = vst [vmem:[#allocation37_spill] sm:$0xff] %v5856_v35  ;;  %6921 = vst [vmem:[#allocation40_spill] sm:$0xff] %v5859_v27  ;;  %v5862_v59 = vld [vmem:[#allocation10 + $0xa4] ss:$8 sps:$4 sm:$0xff]   ;;  %v5865_v24 = vld [vmem:[#allocation10 + $0xa0] ss:$8 sps:$4 sm:$0xff]  }
 0xfb7   :  { %2384 = vmatprep.subr.bf16.mxu1 %v5803_v3  ;;  %6922 = vst [vmem:[#allocation41_spill] sm:$0xff] %v5862_v59  ;;  %6923 = vst [vmem:[#allocation42_spill] sm:$0xff] %v5865_v24  ;;  %v5868_v47 = vld [vmem:[#allocation10 + $0xb4] ss:$8 sps:$4 sm:$0xff]   ;;  %v5871_v46 = vld [vmem:[#allocation10 + $0xb0] ss:$8 sps:$4 sm:$0xff]  }
 0xfb8   :  { %6924 = vst [vmem:[#allocation68_spill] sm:$0xff] %v5868_v47  ;;  %6925 = vst [vmem:[#allocation69_spill] sm:$0xff] %v5871_v46  ;;  %v5874_v42 = vld [vmem:[#allocation10 + $0xc4] ss:$8 sps:$4 sm:$0xff]   ;;  %v5877_v43 = vld [vmem:[#allocation10 + $0xc0] ss:$8 sps:$4 sm:$0xff]  }
 0xfb9   :  { %6926 = vst [vmem:[#allocation70_spill] sm:$0xff] %v5874_v42  ;;  %6927 = vst [vmem:[#allocation71_spill] sm:$0xff] %v5877_v43  ;;  %v5880_v61 = vld [vmem:[#allocation10 + $0xd4] ss:$8 sps:$4 sm:$0xff]   ;;  %v5883_v6 = vld [vmem:[#allocation10 + $0xd0] ss:$8 sps:$4 sm:$0xff]  }
 0xfba   :  { %2385 = vmatpush1.bf16.msra.mxu1 %v5809_v51  ;;  %6928 = vst [vmem:[#allocation35_spill] sm:$0xff] %v5880_v61  ;;  %6929 = vst [vmem:[#allocation38_spill] sm:$0xff] %v5883_v6 }
 0xfbb   :  { %2386 = vmatprep.subr.bf16.mxu1 %v5814_v54 }
 0xfbd   :  { %2142 = vmatmul.mubr.bf16.gmra.mrb[44].mxu1 %v2086_v18  ;;  %v5886_v18 = vld [vmem:[#allocation10 + $0xe4] ss:$8 sps:$4 sm:$0xff]  }
 0xfbe   :  { %2387 = vmatpush1.bf16.msra.mxu1 %v5817_v57  ;;  %6930 = vst [vmem:[#allocation39_spill] sm:$0xff] %v5886_v18 }
 0xfbf   :  { %2388 = vmatprep.subr.bf16.mxu1 %v5820_v32 }
 0xfc2   :  { %2389 = vmatpush1.bf16.msra.mxu1 %v5823_v49 }
 0xfc3   :  { %2390 = vmatprep.subr.bf16.mxu1 %v5826_v26 }
 0xfc6   :  { %2391 = vmatpush1.bf16.msra.mxu1 %v5829_v30 }
 0xfc7   :  { %2392 = vmatprep.subr.bf16.mxu1 %v5832_v56 }
 0xfca   :  { %2393 = vmatpush1.bf16.msra.mxu1 %v5835_v63 }
 0xfcb   :  { %2394 = vmatprep.subr.bf16.mxu1 %v5838_v22 }
 0xfce   :  { %2395 = vmatpush1.bf16.msra.mxu1 %v5841_v2 }
 0xfcf   :  { %2396 = vmatprep.subr.bf16.mxu1 %v5844_v33 }
 0xfd2   :  { %2397 = vmatpush1.bf16.msra.mxu1 %v5847_v48 }
 0xfd3   :  { %2398 = vmatprep.subr.bf16.mxu1 %v5850_v45 }
 0xfd6   :  { %2399 = vmatpush1.bf16.msra.mxu1 %v5853_v40 }
 0xfd7   :  { %2400 = vmatprep.subr.bf16.mxu1 %v5856_v35 }
 0xfda   :  { %2401 = vmatpush1.bf16.msra.mxu1 %v5859_v27 }
 0xfdb   :  { %2402 = vmatprep.subr.bf16.mxu1 %v5862_v59 }
 0xfde   :  { %2403 = vmatpush1.bf16.msra.mxu1 %v5865_v24 }
 0xfdf   :  { %2404 = vmatprep.subr.bf16.mxu1 %v5868_v47 }
 0xfe2   :  { %2405 = vmatpush1.bf16.msra.mxu1 %v5871_v46  ;;  %v5889_v46 = vld [vmem:[#allocation10 + $0xe0] ss:$8 sps:$4 sm:$0xff]  }
 0xfe3   :  { %2406 = vmatprep.subr.bf16.mxu1 %v5874_v42  ;;  %6931 = vst [vmem:[#allocation43_spill] sm:$0xff] %v5889_v46  ;;  %v5892_v42 = vld [vmem:[#allocation10 + $0xf4] ss:$8 sps:$4 sm:$0xff]  }
 0xfe4   :  { %6932 = vst [vmem:[#allocation44_spill] sm:$0xff] %v5892_v42 }
 0xfe6   :  { %2407 = vmatpush1.bf16.msra.mxu1 %v5877_v43  ;;  %v5895_v43 = vld [vmem:[#allocation10 + $0xf0] ss:$8 sps:$4 sm:$0xff]  }
 0xfe7   :  { %2408 = vmatprep.subr.bf16.mxu1 %v5880_v61  ;;  %6933 = vst [vmem:[#allocation45_spill] sm:$0xff] %v5895_v43  ;;  %v1983_v61 = vld [vmem:[#allocation14 + $0x5] ss:$8 sm:$0x3] }
 0xfe8   :  { %v2096_v47 = vrot.slane %v1983_v61, %v6861_v55 }
 0xfea   :  { %2409 = vmatpush1.bf16.msra.mxu1 %v5883_v6  ;;  %v2092_v6 = vrot.slane %v1983_v61, %v6860_v9 }
 0xfeb   :  { %2410 = vmatprep.subr.bf16.mxu1 %v5886_v18 }
 0xfee   :  { %2411 = vmatpush1.bf16.msra.mxu1 %v5889_v46 }
 0xfef   :  { %2412 = vmatprep.subr.bf16.mxu1 %v5892_v42 }
 0xff2   :  { %2413 = vmatpush1.bf16.msra.mxu1 %v5895_v43 }
 0xff3   :  { %2665 = vmatprep.subr.bf16.mxu1 %v5666_v20 }
0x1088   :  { %v2133_v18 = vpop.f32.mrb[40].mxu1 }
0x1089   :  { %v2134_v24 = vadd.f32 %v2133_v18, %v2092_v6  ;;  %v2135_v59 = vpop.f32.mrb[41].mxu1 }
0x108a   :  { %v2136_v27 = vadd.f32 %v2135_v59, %v2096_v47  ;;  %v2137_v46 = vpop.f32.mrb[42].mxu1 }
0x108b   :  { %v2152_v35 = vmul.f32 0.5, %v2134_v24  ;;  %v2138_v40 = vadd.f32 %v2137_v46, %v2092_v6  ;;  %v2139_v45 = vpop.f32.mrb[43].mxu1 }
0x108c   :  { %v2153_v42 = vmul.f32 0.5, %v2136_v27  ;;  %v2140_v48 = vadd.f32 %v2139_v45, %v2096_v47 }
0x108d   :  { %3992 = vtanh.f32 %v2152_v35  ;;  %v2154_v33 = vmul.f32 0.5, %v2138_v40 }
0x108e   :  { %3994 = vtanh.f32 %v2153_v42  ;;  %v2155_v43 = vmul.f32 0.5, %v2140_v48 }
0x108f   :  { %3996 = vtanh.f32 %v2154_v33 }
0x1090   :  { %3998 = vtanh.f32 %v2155_v43  ;;  %v2143_v20 = vpop.f32.mrb[44].mxu1 }
0x1091   :  { %v2144_v2 = vadd.f32 %v2143_v20, %v2092_v6  ;;  %v2145_v22 = vpop.f32.mrb[45].mxu1 }
0x1092   :  { %v2146_v61 = vadd.f32 %v2145_v22, %v2096_v47  ;;  %v2147_v63 = vpop.f32.mrb[46].mxu1 }
0x1093   :  { %v2156_v18 = vmul.f32 0.5, %v2144_v2  ;;  %v2148_v56 = vadd.f32 %v2147_v63, %v2092_v6  ;;  %v2149_v59 = vpop.f32.mrb[47].mxu1 }
0x1094   :  { %v2157_v30 = vmul.f32 0.5, %v2146_v61  ;;  %v2150_v26 = vadd.f32 %v2149_v59, %v2096_v47 }
0x1095   :  { %4000 = vtanh.f32 %v2156_v18  ;;  %v2158_v46 = vmul.f32 0.5, %v2148_v56 }
0x1096   :  { %4002 = vtanh.f32 %v2157_v30  ;;  %v2159_v45 = vmul.f32 0.5, %v2150_v26 }
0x1097   :  { %v3993_v35 = vpop.eup %3992  ;;  %4004 = vtanh.f32 %v2158_v46 }
0x1098   :  { %v3995_v42 = vpop.eup %3994  ;;  %v2168_v49 = vmul.f32 0.5, %v3993_v35  ;;  %4006 = vtanh.f32 %v2159_v45 }
0x1099   :  { %v3997_v33 = vpop.eup %3996  ;;  %v2169_v43 = vmul.f32 0.5, %v3995_v42 }
0x109a   :  { %v3999_v20 = vpop.eup %3998  ;;  %v2170_v32 = vmul.f32 0.5, %v3997_v33  ;;  %v2176_v57 = vadd.f32 0.5, %v2168_v49 }
0x109b   :  { %v2171_v22 = vmul.f32 0.5, %v3999_v20  ;;  %v2177_v54 = vadd.f32 0.5, %v2169_v43 }
0x109c   :  { %v2178_v63 = vadd.f32 0.5, %v2170_v32  ;;  %v2184_v18 = vmul.f32 %v2176_v57, %v2134_v24 }
0x109d   :  { %v2179_v51 = vadd.f32 0.5, %v2171_v22  ;;  %v2185_v3 = vmul.f32 %v2177_v54, %v2136_v27 }
0x109e   :  { %v2186_v58 = vmul.f32 %v2178_v63, %v2138_v40  ;;  %v2192_v33 = vadd.f32 %v2184_v18, %v5785_v12 }
0x109f   :  { %v4001_v6 = vpop.eup %4000  ;;  %v2187_v28 = vmul.f32 %v2179_v51, %v2140_v48  ;;  %v2193_v32 = vadd.f32 %v2185_v3, %v5781_v34 }
0x10a0   :  { %v4003_v47 = vpop.eup %4002  ;;  %v2172_v59 = vmul.f32 0.5, %v4001_v6  ;;  %v2194_v57 = vadd.f32 %v2186_v58, %v5779_v53 }
0x10a1   :  { %v4005_v30 = vpop.eup %4004  ;;  %v2173_v15 = vmul.f32 0.5, %v4003_v47  ;;  %v2195_v40 = vadd.f32 %v2187_v28, %v5783_v38 }
0x10a2   :  { %v4007_v46 = vpop.eup %4006  ;;  %v2180_v35 = vadd.f32 0.5, %v2172_v59  ;;  %v2174_v45 = vmul.f32 0.5, %v4005_v30  ;;  %v2202_v3 = vmul.f32 0.2028466, %v2194_v57  ;;  %v5962_v57 = vld [vmem:[#allocation11 + $0x60] sm:$0xff]  }
0x10a3   :  { %v2181_v42 = vadd.f32 0.5, %v2173_v15  ;;  %v2175_v0 = vmul.f32 0.5, %v4007_v46  ;;  %v2200_v15 = vmul.f32 0.2028466, %v2192_v33  ;;  %v2203_v58 = vmul.f32 0.2028466, %v2195_v40 }
0x10a4   :  { %v2188_v49 = vmul.f32 %v2180_v35, %v2144_v2  ;;  %v2182_v43 = vadd.f32 0.5, %v2174_v45  ;;  %v2201_v2 = vmul.f32 0.2028466, %v2193_v32  ;;  %v5941_v32 = vld [vmem:[#allocation11] sm:$0xff]   ;;  %6936 = vst [vmem:[#allocation48_spill] sm:$0xff] %v5962_v57  ;;  %v5971_v40 = vld [vmem:[#allocation11 + $0x28] sm:$0xff]  }
0x10a5   :  { %v2189_v20 = vmul.f32 %v2181_v42, %v2146_v61  ;;  %v2183_v22 = vadd.f32 0.5, %v2175_v0  ;;  %6939 = vst [vmem:[#allocation51_spill] sm:$0xff] %v5971_v40 }
0x10a6   :  { %v2196_v54 = vadd.f32 %v2188_v49, %v5807_v23  ;;  %v2190_v27 = vmul.f32 %v2182_v43, %v2148_v56 }
0x10a7   :  { %v2197_v24 = vadd.f32 %v2189_v20, %v5789_v36  ;;  %v2191_v51 = vmul.f32 %v2183_v22, %v2150_v26  ;;  %v5944_v20 = vld [vmem:[#allocation11 + $0x48] sm:$0xff]   ;;  %v5959_v22 = vld [vmem:[#allocation11 + $0x18] sm:$0xff]  }
0x10a8   :  { %v2204_v48 = vmul.f32 0.08352507, %v2196_v54  ;;  %v2198_v12 = vadd.f32 %v2190_v27, %v5801_v5  ;;  %v3487_v5 = vld [vmem:[%s6425_s8 + $0x5] ss:$0 sm:$0xff]  ;;  %6935 = vst [vmem:[#allocation47_spill] sm:$0xff] %v5959_v22  ;;  %v5968_v27 = vld [vmem:[#allocation11 + $0x68] sm:$0xff]  }
0x10a9   :  { %v2205_v63 = vmul.f32 0.08352507, %v2197_v24  ;;  %v2199_v34 = vadd.f32 %v2191_v51, %v5787_v4  ;;  %v5925_v4 = vld [vmem:[#allocation11 + $0x40] sm:$0xff]   ;;  %6938 = vst [vmem:[#allocation50_spill] sm:$0xff] %v5968_v27  ;;  %v5974_v24 = vld [vmem:[#allocation11 + $0x70] sm:$0xff]  }
0x10aa   :  { %v2208_v0 = vsub.f32 %v2200_v15, %v2204_v48  ;;  %v2206_v61 = vmul.f32 0.08352507, %v2198_v12  ;;  %v5965_v54 = vld [vmem:[#allocation11 + $0x20] sm:$0xff]   ;;  %6940 = vst [vmem:[#allocation52_spill] sm:$0xff] %v5974_v24  ;;  %v5977_v51 = vld [vmem:[#allocation11 + $0x30] sm:$0xff]   ;;  %v5980_v15 = vld [vmem:[#allocation11 + $0x78] sm:$0xff]  }
0x10ab   :  { %v2207_v53 = vmul.f32 0.08352507, %v2199_v34  ;;  %v2209_v23 = vsub.f32 %v2201_v2, %v2205_v63  ;;  %6937 = vst [vmem:[#allocation49_spill] sm:$0xff] %v5965_v54  ;;  %6941 = vst [vmem:[#allocation53_spill] sm:$0xff] %v5977_v51  ;;  %v5983_v48 = vld [vmem:[#allocation11 + $0x38] sm:$0xff]  }
0x10ac   :  { %v2210_v56 = vsub.f32 %v2202_v3, %v2206_v61  ;;  %6942 = vst [vmem:[#allocation54_spill] sm:$0xff] %v5980_v15  ;;  %6943 = vst [vmem:[#allocation55_spill] sm:$0xff] %v5983_v48  ;;  %v2264_v12 = vld [vmem:[#allocation13 + $0x6] ss:$8 sm:$0x3] }
0x10ad   :  { %v2211_v6 = vsub.f32 %v2203_v58, %v2207_v53  ;;  %v2273_v2 = vrot.slane %v2264_v12, %v6860_v9  ;;  %v2277_v63 = vrot.slane %v2264_v12, %v6861_v55 }
0x10ae   :  { %v2212_v28 = vpack.c.bf16 %v2210_v56, %v2208_v0 }
0x10af   :  { %v2213_v38 = vpack.c.bf16 %v2211_v6, %v2209_v23  ;;  %v6944_v6 = vld [vmem:[#allocation58_spill] sm:$0xff] }
0x10b1   :  { %2250 = vmatprep.mubr.bf16.mxu0 %v2213_v38 }
0x10b2   :  { %2251 = vmatmul.mubr.bf16.vlgmr.msra.gmra.mrb[44].mxu0 %v2212_v28 }
0x10b3   :  { %2281 = vmatpush1.bf16.msra.mxu0 %v5679_v44  ;;  %2312 = vmatprep.mubr.bf16.mxu0 %v6720_v25 }
0x10b4   :  { %2282 = vmatprep.subr.bf16.mxu0 %v5683_v14 }
0x10b7   :  { %2283 = vmatpush1.bf16.msra.mxu0 %v5686_v21 }
0x10b8   :  { %2284 = vmatprep.subr.bf16.mxu0 %v5689_v29 }
0x10bb   :  { %2285 = vmatpush1.bf16.msra.mxu0 %v5692_v52 }
0x10bc   :  { %2286 = vmatprep.subr.bf16.mxu0 %v5695_v41 }
0x10bf   :  { %2287 = vmatpush1.bf16.msra.mxu0 %v5698_v16 }
0x10c0   :  { %2288 = vmatprep.subr.bf16.mxu0 %v5701_v7 }
0x10c3   :  { %2289 = vmatpush1.bf16.msra.mxu0 %v5704_v62 }
0x10c4   :  { %2290 = vmatprep.subr.bf16.mxu0 %v5707_v31 }
0x10c7   :  { %2291 = vmatpush1.bf16.msra.mxu0 %v5710_v60 }
0x10c8   :  { %2292 = vmatprep.subr.bf16.mxu0 %v5713_v17 }
0x10cb   :  { %2293 = vmatpush1.bf16.msra.mxu0 %v5716_v1 }
0x10cc   :  { %2294 = vmatprep.subr.bf16.mxu0 %v5719_v13 }
0x10cf   :  { %2295 = vmatpush1.bf16.msra.mxu0 %v5722_v50 }
0x10d0   :  { %3624 = vmatprep.subr.bf16.mxu0 %v5925_v4 }
0x1185   :  { %v3618_v36 = vpop.f32.mrb[44].mxu0 }
0x1186   :  { %v3619_v26 = vpop.f32.mrb[45].mxu0 }
0x1187   :  { %v3620_v47 = vadd.f32 %v3619_v26, %v3618_v36  ;;  %v3621_v18 = vpop.f32.mrb[46].mxu0  ;;  %v6945_v26 = vld [vmem:[#allocation59_spill] sm:$0xff] }
0x1188   :  { %v3622_v59 = vpop.f32.mrb[47].mxu0 }
0x1189   :  { %v2253_v30 = vadd.f32 %v3620_v47, %v3487_v5  ;;  %v3623_v46 = vadd.f32 %v3622_v59, %v3621_v18 }
0x118b   :  { %v2259_v35 = vmul.f32 %v5570_v8, %v2253_v30  ;;  %v2256_v45 = vadd.f32 %v3623_v46, %v3487_v5  ;;  %v5947_v8 = vld [vmem:[#allocation11 + $0x8] sm:$0xff]   ;;  %v6946_v30 = vld [vmem:[#allocation60_spill] sm:$0xff] }
0x118d   :  { %v2260_v42 = vmul.f32 %v5573_v37, %v2256_v45  ;;  %v5934_v33 = vadd.f32 %v2259_v35, %v5732_v19  ;;  %v5950_v37 = vld [vmem:[#allocation11 + $0x50] sm:$0xff]  }
0x118e   :  { %v5953_v19 = vld [vmem:[#allocation11 + $0x10] sm:$0xff]  }
0x118f   :  { %v5937_v49 = vadd.f32 %v2260_v42, %v5735_v39  ;;  %v5956_v39 = vld [vmem:[#allocation11 + $0x58] sm:$0xff]  }
0x1190   :  { %6934 = vst [vmem:[#allocation46_spill] sm:$0xff] %v5956_v39 }
0x1191   :  { %v2268_v43 = vpack.c.bf16 %v5937_v49, %v5934_v33 }
0x1193   :  { %2313 = vmatmul.mubr.bf16.vlgmr.msra.gmra.mrb[48].mxu0 %v2268_v43 }
0x1194   :  { %3625 = vmatpush3.bf16.msra.mxu0 %v5941_v32 }
0x1195   :  { %3626 = vmatprep.subr.bf16.mxu0 %v5944_v20 }
0x1198   :  { %3627 = vmatpush3.bf16.msra.mxu0 %v5947_v8 }
0x1199   :  { %3628 = vmatprep.subr.bf16.mxu0 %v5950_v37 }
0x119c   :  { %3629 = vmatpush3.bf16.msra.mxu0 %v5953_v19 }
0x119d   :  { %3630 = vmatprep.subr.bf16.mxu0 %v5956_v39 }
0x11a0   :  { %3631 = vmatpush3.bf16.msra.mxu0 %v5959_v22 }
0x11a1   :  { %3632 = vmatprep.subr.bf16.mxu0 %v5962_v57 }
0x11a4   :  { %3633 = vmatpush3.bf16.msra.mxu0 %v5965_v54 }
0x11a5   :  { %3634 = vmatprep.subr.bf16.mxu0 %v5968_v27 }
0x11a8   :  { %3635 = vmatpush3.bf16.msra.mxu0 %v5971_v40 }
0x11a9   :  { %3636 = vmatprep.subr.bf16.mxu0 %v5974_v24 }
0x11ac   :  { %3637 = vmatpush3.bf16.msra.mxu0 %v5977_v51 }
0x11ad   :  { %3638 = vmatprep.subr.bf16.mxu0 %v5980_v15 }
0x11b0   :  { %3639 = vmatpush3.bf16.msra.mxu0 %v5983_v48 }
0x11b1   :  { %2563 = vmatprep.subr.bf16.mxu0 %v5754_v11 }
0x1266   :  { %v2314_v34 = vpop.f32.mrb[48].mxu0 }
0x1267   :  { %v5989_v3 = vadd.f32 %v2314_v34, %v2273_v2  ;;  %v2316_v0 = vpop.f32.mrb[49].mxu0 }
0x1268   :  { %v2317_v61 = vadd.f32 %v2316_v0, %v2277_v63  ;;  %v2318_v58 = vpop.f32.mrb[50].mxu0 }
0x1269   :  { %v2323_v53 = vadd.f32 %v5761_v10, %v5989_v3  ;;  %v2319_v23 = vadd.f32 %v2318_v58, %v2273_v2  ;;  %v2320_v56 = vpop.f32.mrb[51].mxu0  ;;  %v2347_v43 = vmul.f32 0.5, %v5989_v3 }
0x126a   :  { %v2324_v28 = vadd.f32 %v6944_v6, %v2317_v61  ;;  %v2348_v38 = vmul.f32 0.5, %v2317_v61  ;;  %v2321_v36 = vadd.f32 %v2320_v56, %v2277_v63 }
0x126b   :  { %v2327_v5 = vmul.f32 0.5, %v2323_v53  ;;  %v2325_v47 = vadd.f32 %v6945_v26, %v2319_v23  ;;  %v2349_v59 = vmul.f32 0.5, %v2319_v23 }
0x126c   :  { %v2328_v18 = vmul.f32 0.5, %v2324_v28  ;;  %4008 = vtanh.f32 %v2348_v38  ;;  %v2326_v46 = vadd.f32 %v6946_v30, %v2321_v36  ;;  %v2350_v42 = vmul.f32 0.5, %v2321_v36 }
0x126d   :  { %4010 = vtanh.f32 %v2327_v5  ;;  %v2329_v35 = vmul.f32 0.5, %v2325_v47 }
0x126e   :  { %4012 = vtanh.f32 %v2328_v18  ;;  %v2330_v45 = vmul.f32 0.5, %v2326_v46 }
0x126f   :  { %4014 = vtanh.f32 %v2329_v35 }
0x1270   :  { %4016 = vtanh.f32 %v2349_v59 }
0x1271   :  { %4018 = vtanh.f32 %v2330_v45 }
0x1272   :  { %4020 = vtanh.f32 %v2350_v42 }
0x1273   :  { %4022 = vtanh.f32 %v2347_v43 }
0x1276   :  { %v4009_v12 = vpop.eup %4008 }
0x1277   :  { %v4011_v2 = vpop.eup %4010  ;;  %v2356_v38 = vmul.f32 0.5, %v4009_v12 }
0x1278   :  { %v4013_v63 = vpop.eup %4012  ;;  %v2335_v0 = vmul.f32 0.5, %v4011_v2 }
0x1279   :  { %v4015_v34 = vpop.eup %4014  ;;  %v2336_v58 = vmul.f32 0.5, %v4013_v63  ;;  %v2360_v45 = vadd.f32 0.5, %v2356_v38  ;;  %v6955_v38 = vld [vmem:[#allocation27_spill] sm:$0xff] }
0x127a   :  { %v4017_v56 = vpop.eup %4016  ;;  %v2337_v5 = vmul.f32 0.5, %v4015_v34  ;;  %v2339_v10 = vadd.f32 0.5, %v2335_v0 }
0x127b   :  { %v4019_v30 = vpop.eup %4018  ;;  %v2340_v35 = vadd.f32 0.5, %v2336_v58  ;;  %v2357_v48 = vmul.f32 0.5, %v4017_v56  ;;  %v6953_v56 = vld [vmem:[#allocation25_spill] sm:$0xff] }
0x127c   :  { %v4021_v18 = vpop.eup %4020  ;;  %v2341_v26 = vadd.f32 0.5, %v2337_v5  ;;  %v2338_v6 = vmul.f32 0.5, %v4019_v30  ;;  %v6003_v12 = vmul.f32 %v2339_v10, %v2323_v53  ;;  %v6007_v30 = vmul.f32 %v2360_v45, %v2317_v61  ;;  %v6947_v10 = vld [vmem:[#allocation61_spill] sm:$0xff]  ;;  %v6948_v61 = vld [vmem:[#allocation62_spill] sm:$0xff] }
0x127d   :  { %v2358_v11 = vmul.f32 0.5, %v4021_v18  ;;  %v4023_v59 = vpop.eup %4022  ;;  %v5999_v51 = vmul.f32 %v2340_v35, %v2324_v28  ;;  %v2361_v58 = vadd.f32 0.5, %v2357_v48  ;;  %v6949_v48 = vld [vmem:[#allocation63_spill] sm:$0xff]  ;;  %v6957_v5 = vld [vmem:[#allocation29_spill] sm:$0xff]  ;;  %v6958_v18 = vld [vmem:[#allocation30_spill] sm:$0xff] }
0x127e   :  { %v2342_v42 = vadd.f32 0.5, %v2338_v6  ;;  %v5997_v43 = vmul.f32 %v2341_v26, %v2325_v47  ;;  %v2355_v63 = vmul.f32 0.5, %v4023_v59  ;;  %v6950_v26 = vld [vmem:[#allocation64_spill] sm:$0xff]  ;;  %v6951_v47 = vld [vmem:[#allocation65_spill] sm:$0xff]  ;;  %v6959_v35 = vld [vmem:[#allocation31_spill] sm:$0xff] }
0x127f   :  { %v2362_v15 = vadd.f32 0.5, %v2358_v11  ;;  %v6960_v59 = vld [vmem:[#allocation32_spill] sm:$0xff]  ;;  %v6961_v45 = vld [vmem:[#allocation33_spill] sm:$0xff] }
0x1280   :  { %v6001_v2 = vmul.f32 %v2342_v42, %v2326_v46  ;;  %v2367_v6 = vpack.c.bf16 %v5997_v43, %v6003_v12  ;;  %v2359_v28 = vadd.f32 0.5, %v2355_v63  ;;  %v6952_v46 = vld [vmem:[#allocation24_spill] sm:$0xff]  ;;  %v6962_v42 = vld [vmem:[#allocation34_spill] sm:$0xff] }
0x1281   :  { %v6005_v34 = vmul.f32 %v2362_v15, %v2321_v36  ;;  %v6016_v15 = vmul.f32 %v2361_v58, %v2319_v23  ;;  %v6954_v23 = vld [vmem:[#allocation26_spill] sm:$0xff]  ;;  %v6963_v63 = vld [vmem:[#allocation36_spill] sm:$0xff] }
0x1282   :  { %v2368_v0 = vpack.c.bf16 %v6001_v2, %v5999_v51  ;;  %v6020_v53 = vmul.f32 %v2359_v28, %v5989_v3  ;;  %v6956_v3 = vld [vmem:[#allocation28_spill] sm:$0xff] }
0x1283   :  { %v2370_v11 = vpack.c.bf16 %v6005_v34, %v6007_v30  ;;  %v6965_v58 = vld [vmem:[#allocation40_spill] sm:$0xff] }
0x1284   :  { %2414 = vmatprep.mubr.bf16.mxu1 %v2368_v0  ;;  %v2369_v36 = vpack.c.bf16 %v6016_v15, %v6020_v53  ;;  %v6964_v0 = vld [vmem:[#allocation37_spill] sm:$0xff]  ;;  %v6968_v28 = vld [vmem:[#allocation68_spill] sm:$0xff] }
0x1285   :  { %2415 = vmatmul.mubr.bf16.vlgmr.msra.gmra.mrb[48].mxu1 %v2367_v6  ;;  %v6966_v6 = vld [vmem:[#allocation41_spill] sm:$0xff] }
0x1286   :  { %2424 = vmatprep.mubr.bf16.mxu1 %v2370_v11  ;;  %2666 = vmatpush1.bf16.msra.mxu1 %v6947_v10  ;;  %v6967_v11 = vld [vmem:[#allocation42_spill] sm:$0xff] }
0x1287   :  { %2667 = vmatprep.subr.bf16.mxu1 %v6948_v61 }
0x128a   :  { %2668 = vmatpush1.bf16.msra.mxu1 %v6949_v48 }
0x128b   :  { %2669 = vmatprep.subr.bf16.mxu1 %v6950_v26 }
0x128d   :  { %2425 = vmatmul.mubr.bf16.gmra.mrb[52].mxu1 %v2369_v36  ;;  %v6969_v36 = vld [vmem:[#allocation69_spill] sm:$0xff] }
0x128e   :  { %2670 = vmatpush1.bf16.msra.mxu1 %v6951_v47 }
0x128f   :  { %2671 = vmatprep.subr.bf16.mxu1 %v6952_v46 }
0x1292   :  { %2672 = vmatpush1.bf16.msra.mxu1 %v6953_v56 }
0x1293   :  { %2673 = vmatprep.subr.bf16.mxu1 %v6954_v23 }
0x1296   :  { %2674 = vmatpush1.bf16.msra.mxu1 %v6955_v38 }
0x1297   :  { %2675 = vmatprep.subr.bf16.mxu1 %v6956_v3 }
0x129a   :  { %2676 = vmatpush1.bf16.msra.mxu1 %v6957_v5 }
0x129b   :  { %2677 = vmatprep.subr.bf16.mxu1 %v6958_v18 }
0x129e   :  { %2678 = vmatpush1.bf16.msra.mxu1 %v6959_v35  ;;  %v6970_v35 = vld [vmem:[#allocation70_spill] sm:$0xff] }
0x129f   :  { %2679 = vmatprep.subr.bf16.mxu1 %v6960_v59  ;;  %v6971_v59 = vld [vmem:[#allocation71_spill] sm:$0xff] }
0x12a2   :  { %2680 = vmatpush1.bf16.msra.mxu1 %v6961_v45  ;;  %v6972_v45 = vld [vmem:[#allocation35_spill] sm:$0xff] }
0x12a3   :  { %2681 = vmatprep.subr.bf16.mxu1 %v6962_v42  ;;  %v6973_v42 = vld [vmem:[#allocation38_spill] sm:$0xff] }
0x12a6   :  { %2682 = vmatpush1.bf16.msra.mxu1 %v6963_v63  ;;  %v6974_v63 = vld [vmem:[#allocation39_spill] sm:$0xff] }
0x12a7   :  { %2683 = vmatprep.subr.bf16.mxu1 %v6964_v0  ;;  %v6975_v0 = vld [vmem:[#allocation43_spill] sm:$0xff] }
0x12aa   :  { %2684 = vmatpush1.bf16.msra.mxu1 %v6965_v58  ;;  %v6976_v58 = vld [vmem:[#allocation44_spill] sm:$0xff] }
0x12ab   :  { %2685 = vmatprep.subr.bf16.mxu1 %v6966_v6  ;;  %v6977_v6 = vld [vmem:[#allocation45_spill] sm:$0xff] }
0x12ae   :  { %2686 = vmatpush1.bf16.msra.mxu1 %v6967_v11  ;;  %v6978_v11 = vld [vmem:[#allocation23_spill] sm:$0xff] }
0x12af   :  { %2687 = vmatprep.subr.bf16.mxu1 %v6968_v28  ;;  %v2266_v28 = vld [vmem:[#allocation14 + $0x6] ss:$8 sm:$0x3] }
0x12b2   :  { %2688 = vmatpush1.bf16.msra.mxu1 %v6969_v36  ;;  %v2375_v36 = vrot.slane %v2266_v28, %v6860_v9 }
0x12b3   :  { %2689 = vmatprep.subr.bf16.mxu1 %v6970_v35  ;;  %v2379_v35 = vrot.slane %v2266_v28, %v6861_v55 }
0x12b6   :  { %2690 = vmatpush1.bf16.msra.mxu1 %v6971_v59 }
0x12b7   :  { %2691 = vmatprep.subr.bf16.mxu1 %v6972_v45 }
0x12ba   :  { %2692 = vmatpush1.bf16.msra.mxu1 %v6973_v42 }
0x12bb   :  { %2693 = vmatprep.subr.bf16.mxu1 %v6974_v63 }
0x12be   :  { %2694 = vmatpush1.bf16.msra.mxu1 %v6975_v0 }
0x12bf   :  { %2695 = vmatprep.subr.bf16.mxu1 %v6976_v58 }
0x12c2   :  { %2696 = vmatpush1.bf16.msra.mxu1 %v6977_v6 }
0x12c3   :  { %2948 = vmatprep.subr.bf16.mxu1 %v6978_v11 }
0x1358   :  { %v2416_v59 = vpop.f32.mrb[48].mxu1 }
0x1359   :  { %v2417_v18 = vadd.f32 %v2416_v59, %v2375_v36  ;;  %v2418_v45 = vpop.f32.mrb[49].mxu1 }
0x135a   :  { %v2419_v5 = vadd.f32 %v2418_v45, %v2379_v35  ;;  %v2420_v42 = vpop.f32.mrb[50].mxu1 }
0x135b   :  { %v2435_v3 = vmul.f32 0.5, %v2417_v18  ;;  %v2421_v63 = vadd.f32 %v2420_v42, %v2375_v36  ;;  %v2422_v38 = vpop.f32.mrb[51].mxu1 }
0x135c   :  { %v2436_v0 = vmul.f32 0.5, %v2419_v5  ;;  %v2423_v23 = vadd.f32 %v2422_v38, %v2379_v35 }
0x135d   :  { %4024 = vtanh.f32 %v2435_v3  ;;  %v2437_v58 = vmul.f32 0.5, %v2421_v63 }
0x135e   :  { %4026 = vtanh.f32 %v2436_v0  ;;  %v2438_v6 = vmul.f32 0.5, %v2423_v23 }
0x135f   :  { %4028 = vtanh.f32 %v2437_v58 }
0x1360   :  { %4030 = vtanh.f32 %v2438_v6  ;;  %v2426_v11 = vpop.f32.mrb[52].mxu1 }
0x1361   :  { %v2427_v56 = vadd.f32 %v2426_v11, %v2375_v36  ;;  %v2428_v46 = vpop.f32.mrb[53].mxu1 }
0x1362   :  { %v2429_v28 = vadd.f32 %v2428_v46, %v2379_v35  ;;  %v2430_v47 = vpop.f32.mrb[54].mxu1 }
0x1363   :  { %v2439_v59 = vmul.f32 0.5, %v2427_v56  ;;  %v2431_v26 = vadd.f32 %v2430_v47, %v2375_v36  ;;  %v2432_v45 = vpop.f32.mrb[55].mxu1 }
0x1364   :  { %v2440_v48 = vmul.f32 0.5, %v2429_v28  ;;  %v2433_v61 = vadd.f32 %v2432_v45, %v2379_v35 }
0x1365   :  { %4032 = vtanh.f32 %v2439_v59  ;;  %v2441_v42 = vmul.f32 0.5, %v2431_v26 }
0x1366   :  { %4034 = vtanh.f32 %v2440_v48  ;;  %v2442_v38 = vmul.f32 0.5, %v2433_v61 }
0x1367   :  { %v4025_v3 = vpop.eup %4024  ;;  %4036 = vtanh.f32 %v2441_v42 }
0x1368   :  { %v4027_v0 = vpop.eup %4026  ;;  %v2451_v10 = vmul.f32 0.5, %v4025_v3  ;;  %4038 = vtanh.f32 %v2442_v38 }
0x1369   :  { %v4029_v58 = vpop.eup %4028  ;;  %v2452_v6 = vmul.f32 0.5, %v4027_v0 }
0x136a   :  { %v4031_v11 = vpop.eup %4030  ;;  %v2453_v55 = vmul.f32 0.5, %v4029_v58  ;;  %v2459_v9 = vadd.f32 0.5, %v2451_v10 }
0x136b   :  { %v2454_v46 = vmul.f32 0.5, %v4031_v11  ;;  %v2460_v24 = vadd.f32 0.5, %v2452_v6 }
0x136c   :  { %v2461_v47 = vadd.f32 0.5, %v2453_v55  ;;  %v2467_v59 = vmul.f32 %v2459_v9, %v2417_v18 }
0x136d   :  { %v2462_v40 = vadd.f32 0.5, %v2454_v46  ;;  %v2468_v27 = vmul.f32 %v2460_v24, %v2419_v5 }
0x136e   :  { %v2469_v57 = vmul.f32 %v2461_v47, %v2421_v63  ;;  %v2475_v58 = vadd.f32 %v2467_v59, %v6003_v12  ;;  %v6985_v59 = vld [vmem:[#allocation52_spill] sm:$0xff] }
0x136f   :  { %v4033_v36 = vpop.eup %4032  ;;  %v2470_v22 = vmul.f32 %v2462_v40, %v2423_v23  ;;  %v2476_v55 = vadd.f32 %v2468_v27, %v5999_v51 }
0x1370   :  { %v4035_v35 = vpop.eup %4034  ;;  %v2455_v45 = vmul.f32 0.5, %v4033_v36  ;;  %v2477_v9 = vadd.f32 %v2469_v57, %v5997_v43 }
0x1371   :  { %v4037_v48 = vpop.eup %4036  ;;  %v2456_v54 = vmul.f32 0.5, %v4035_v35  ;;  %v2478_v18 = vadd.f32 %v2470_v22, %v6001_v2  ;;  %v6984_v35 = vld [vmem:[#allocation51_spill] sm:$0xff] }
0x1372   :  { %v4039_v42 = vpop.eup %4038  ;;  %v2463_v3 = vadd.f32 0.5, %v2455_v45  ;;  %v2457_v38 = vmul.f32 0.5, %v4037_v48  ;;  %v2485_v51 = vmul.f32 0.22745109, %v2477_v9  ;;  %v6986_v45 = vld [vmem:[#allocation53_spill] sm:$0xff]  ;;  %v6987_v48 = vld [vmem:[#allocation54_spill] sm:$0xff] }
0x1373   :  { %v2464_v0 = vadd.f32 0.5, %v2456_v54  ;;  %v2458_v39 = vmul.f32 0.5, %v4039_v42  ;;  %v2483_v54 = vmul.f32 0.22745109, %v2475_v58  ;;  %v2486_v57 = vmul.f32 0.22745109, %v2478_v18 }
0x1374   :  { %v2471_v10 = vmul.f32 %v2463_v3, %v2427_v56  ;;  %v2465_v6 = vadd.f32 0.5, %v2457_v38  ;;  %v2484_v56 = vmul.f32 0.22745109, %v2476_v55  ;;  %v6988_v42 = vld [vmem:[#allocation55_spill] sm:$0xff]  ;;  %v6989_v3 = vld [vmem:[#allocation56_spill] sm:$0xff] }
0x1375   :  { %v2472_v11 = vmul.f32 %v2464_v0, %v2429_v28  ;;  %v2466_v46 = vadd.f32 0.5, %v2458_v39  ;;  %v2547_v38 = vld [vmem:[#allocation13 + $0x7] ss:$8 sm:$0x3] }
0x1376   :  { %v2479_v24 = vadd.f32 %v2471_v10, %v6020_v53  ;;  %v2473_v5 = vmul.f32 %v2465_v6, %v2431_v26  ;;  %v6990_v0 = vld [vmem:[#allocation66_spill] sm:$0xff]  ;;  %v6991_v10 = vld [vmem:[#allocation67_spill] sm:$0xff] }
0x1377   :  { %v2480_v63 = vadd.f32 %v2472_v11, %v6007_v30  ;;  %v2474_v40 = vmul.f32 %v2466_v46, %v2433_v61  ;;  %v6979_v30 = vld [vmem:[#allocation46_spill] sm:$0xff]  ;;  %v2556_v58 = vrot.slane %v2547_v38, %v6990_v0  ;;  %v2560_v6 = vrot.slane %v2547_v38, %v6991_v10 }
0x1378   :  { %v2487_v23 = vmul.f32 0.093656324, %v2479_v24  ;;  %v2481_v12 = vadd.f32 %v2473_v5, %v6016_v15  ;;  %v6982_v15 = vld [vmem:[#allocation49_spill] sm:$0xff]  ;;  %v6983_v61 = vld [vmem:[#allocation50_spill] sm:$0xff] }
0x1379   :  { %v2488_v47 = vmul.f32 0.093656324, %v2480_v63  ;;  %v2482_v27 = vadd.f32 %v2474_v40, %v6005_v34  ;;  %v6992_v5 = vld [vmem:[#allocation57_spill] sm:$0xff] }
0x137a   :  { %v2491_v39 = vsub.f32 %v2483_v54, %v2487_v23  ;;  %v2489_v28 = vmul.f32 0.093656324, %v2481_v12  ;;  %v6993_v54 = vld [vmem:[#allocation58_spill] sm:$0xff] }
0x137b   :  { %v2490_v43 = vmul.f32 0.093656324, %v2482_v27  ;;  %v2492_v53 = vsub.f32 %v2484_v56, %v2488_v47  ;;  %v6994_v27 = vld [vmem:[#allocation59_spill] sm:$0xff] }
0x137c   :  { %v2493_v26 = vsub.f32 %v2485_v51, %v2489_v28 }
0x137d   :  { %v2494_v36 = vsub.f32 %v2486_v57, %v2490_v43  ;;  %v6995_v57 = vld [vmem:[#allocation60_spill] sm:$0xff] }
0x137e   :  { %v2495_v22 = vpack.c.bf16 %v2493_v26, %v2491_v39 }
0x137f   :  { %v2496_v2 = vpack.c.bf16 %v2494_v36, %v2492_v53 }
0x1381   :  { %2533 = vmatprep.mubr.bf16.mxu0 %v2496_v2 }
0x1382   :  { %2534 = vmatmul.mubr.bf16.vlgmr.msra.gmra.mrb[52].mxu0 %v2495_v22 }
0x1383   :  { %2564 = vmatpush1.bf16.msra.mxu0 %v5679_v44  ;;  %2595 = vmatprep.mubr.bf16.mxu0 %v6720_v25 }
0x1384   :  { %2565 = vmatprep.subr.bf16.mxu0 %v5683_v14  ;;  %v3488_v14 = vld [vmem:[%s6425_s8 + $0x6] ss:$0 sm:$0xff] }
0x1387   :  { %2566 = vmatpush1.bf16.msra.mxu0 %v5686_v21 }
0x1388   :  { %2567 = vmatprep.subr.bf16.mxu0 %v5689_v29 }
0x138b   :  { %2568 = vmatpush1.bf16.msra.mxu0 %v5692_v52 }
0x138c   :  { %2569 = vmatprep.subr.bf16.mxu0 %v5695_v41 }
0x138f   :  { %2570 = vmatpush1.bf16.msra.mxu0 %v5698_v16 }
0x1390   :  { %2571 = vmatprep.subr.bf16.mxu0 %v5701_v7 }
0x1393   :  { %2572 = vmatpush1.bf16.msra.mxu0 %v5704_v62  ;;  %v6084_v62 = vld [vmem:[#allocation5] sm:$0xff] }
0x1394   :  { %2573 = vmatprep.subr.bf16.mxu0 %v5707_v31 }
0x1397   :  { %2574 = vmatpush1.bf16.msra.mxu0 %v5710_v60 }
0x1398   :  { %2575 = vmatprep.subr.bf16.mxu0 %v5713_v17  ;;  %v6087_v17 = vld [vmem:[#allocation5 + $0x8] sm:$0xff] }
0x139b   :  { %2576 = vmatpush1.bf16.msra.mxu0 %v5716_v1 }
0x139c   :  { %2577 = vmatprep.subr.bf16.mxu0 %v5719_v13 }
0x139f   :  { %2578 = vmatpush1.bf16.msra.mxu0 %v5722_v50 }
0x13a0   :  { %3646 = vmatprep.subr.bf16.mxu0 %v5925_v4 }
0x1455   :  { %v3640_v44 = vpop.f32.mrb[52].mxu0 }
0x1456   :  { %v3641_v21 = vpop.f32.mrb[53].mxu0 }
0x1457   :  { %v3642_v29 = vadd.f32 %v3641_v21, %v3640_v44  ;;  %v3643_v52 = vpop.f32.mrb[54].mxu0 }
0x1458   :  { %v3644_v41 = vpop.f32.mrb[55].mxu0 }
0x1459   :  { %v2536_v16 = vadd.f32 %v3642_v29, %v3488_v14  ;;  %v3645_v7 = vadd.f32 %v3644_v41, %v3643_v52 }
0x145b   :  { %v2542_v31 = vmul.f32 %v6084_v62, %v2536_v16  ;;  %v2539_v60 = vadd.f32 %v3645_v7, %v3488_v14 }
0x145d   :  { %v2543_v1 = vmul.f32 %v6087_v17, %v2539_v60  ;;  %v6091_v13 = vadd.f32 %v2542_v31, %v5934_v33  ;;  %v6980_v33 = vld [vmem:[#allocation47_spill] sm:$0xff] }
0x145f   :  { %v6094_v50 = vadd.f32 %v2543_v1, %v5937_v49  ;;  %v6981_v49 = vld [vmem:[#allocation48_spill] sm:$0xff] }
0x1461   :  { %v2551_v34 = vpack.c.bf16 %v6094_v50, %v6091_v13 }
0x1463   :  { %2596 = vmatmul.mubr.bf16.vlgmr.msra.gmra.mrb[56].mxu0 %v2551_v34 }
0x1464   :  { %3647 = vmatpush3.bf16.msra.mxu0 %v5941_v32 }
0x1465   :  { %3648 = vmatprep.subr.bf16.mxu0 %v5944_v20 }
0x1468   :  { %3649 = vmatpush3.bf16.msra.mxu0 %v5947_v8 }
0x1469   :  { %3650 = vmatprep.subr.bf16.mxu0 %v5950_v37 }
0x146c   :  { %3651 = vmatpush3.bf16.msra.mxu0 %v5953_v19 }
0x146d   :  { %3652 = vmatprep.subr.bf16.mxu0 %v6979_v30 }
0x1470   :  { %3653 = vmatpush3.bf16.msra.mxu0 %v6980_v33 }
0x1471   :  { %3654 = vmatprep.subr.bf16.mxu0 %v6981_v49 }
0x1474   :  { %3655 = vmatpush3.bf16.msra.mxu0 %v6982_v15 }
0x1475   :  { %3656 = vmatprep.subr.bf16.mxu0 %v6983_v61 }
0x1478   :  { %3657 = vmatpush3.bf16.msra.mxu0 %v6984_v35 }
0x1479   :  { %3658 = vmatprep.subr.bf16.mxu0 %v6985_v59 }
0x147c   :  { %3659 = vmatpush3.bf16.msra.mxu0 %v6986_v45 }
0x147d   :  { %3660 = vmatprep.subr.bf16.mxu0 %v6987_v48 }
0x1480   :  { %3661 = vmatpush3.bf16.msra.mxu0 %v6988_v42 }
0x1481   :  { %2846 = vmatprep.subr.bf16.mxu0 %v6989_v3 }
0x1536   :  { %v2597_v55 = vpop.f32.mrb[56].mxu0 }
0x1537   :  { %v6116_v11 = vadd.f32 %v2597_v55, %v2556_v58  ;;  %v2599_v46 = vpop.f32.mrb[57].mxu0 }
0x1538   :  { %v2600_v9 = vadd.f32 %v2599_v46, %v2560_v6  ;;  %v2601_v24 = vpop.f32.mrb[58].mxu0 }
0x1539   :  { %v2606_v18 = vadd.f32 %v6992_v5, %v6116_v11  ;;  %v2602_v63 = vadd.f32 %v2601_v24, %v2556_v58  ;;  %v2603_v40 = vpop.f32.mrb[59].mxu0  ;;  %v2630_v22 = vmul.f32 0.5, %v6116_v11 }
0x153a   :  { %v2607_v23 = vadd.f32 %v6993_v54, %v2600_v9  ;;  %v2631_v12 = vmul.f32 0.5, %v2600_v9  ;;  %v2604_v56 = vadd.f32 %v2603_v40, %v2560_v6 }
0x153b   :  { %v2610_v47 = vmul.f32 0.5, %v2606_v18  ;;  %v2608_v51 = vadd.f32 %v6994_v27, %v2602_v63  ;;  %v2632_v28 = vmul.f32 0.5, %v2602_v63 }
0x153c   :  { %v2611_v39 = vmul.f32 0.5, %v2607_v23  ;;  %4040 = vtanh.f32 %v2631_v12  ;;  %v2609_v43 = vadd.f32 %v6995_v57, %v2604_v56  ;;  %v2633_v36 = vmul.f32 0.5, %v2604_v56 }
0x153d   :  { %4042 = vtanh.f32 %v2610_v47  ;;  %v2612_v53 = vmul.f32 0.5, %v2608_v51 }
0x153e   :  { %4044 = vtanh.f32 %v2611_v39  ;;  %v2613_v26 = vmul.f32 0.5, %v2609_v43 }
0x153f   :  { %4046 = vtanh.f32 %v2612_v53 }
0x1540   :  { %4048 = vtanh.f32 %v2632_v28 }
0x1541   :  { %4050 = vtanh.f32 %v2613_v26 }
0x1542   :  { %4052 = vtanh.f32 %v2633_v36  ;;  %v6998_v36 = vld [vmem:[#allocation63_spill] sm:$0xff] }
0x1543   :  { %4054 = vtanh.f32 %v2630_v22 }
0x1546   :  { %v4041_v2 = vpop.eup %4040 }
0x1547   :  { %v4043_v44 = vpop.eup %4042  ;;  %v2639_v16 = vmul.f32 0.5, %v4041_v2  ;;  %v6999_v2 = vld [vmem:[#allocation64_spill] sm:$0xff] }
0x1548   :  { %v4045_v14 = vpop.eup %4044  ;;  %v2618_v29 = vmul.f32 0.5, %v4043_v44  ;;  %v7000_v44 = vld [vmem:[#allocation65_spill] sm:$0xff] }
0x1549   :  { %v4047_v21 = vpop.eup %4046  ;;  %v2619_v52 = vmul.f32 0.5, %v4045_v14  ;;  %v2643_v55 = vadd.f32 0.5, %v2639_v16  ;;  %v7001_v14 = vld [vmem:[#allocation24_spill] sm:$0xff]  ;;  %v7008_v16 = vld [vmem:[#allocation31_spill] sm:$0xff] }
0x154a   :  { %v4049_v41 = vpop.eup %4048  ;;  %v2620_v7 = vmul.f32 0.5, %v4047_v21  ;;  %v2622_v38 = vadd.f32 0.5, %v2618_v29  ;;  %v7002_v21 = vld [vmem:[#allocation25_spill] sm:$0xff]  ;;  %v7004_v29 = vld [vmem:[#allocation27_spill] sm:$0xff] }
0x154b   :  { %v4051_v31 = vpop.eup %4050  ;;  %v2623_v3 = vadd.f32 0.5, %v2619_v52  ;;  %v2640_v5 = vmul.f32 0.5, %v4049_v41  ;;  %v6134_v28 = vmul.f32 %v2643_v55, %v2600_v9  ;;  %v6997_v9 = vld [vmem:[#allocation62_spill] sm:$0xff]  ;;  %v7006_v52 = vld [vmem:[#allocation29_spill] sm:$0xff] }
0x154c   :  { %v4053_v60 = vpop.eup %4052  ;;  %v2624_v1 = vadd.f32 0.5, %v2620_v7  ;;  %v2621_v34 = vmul.f32 0.5, %v4051_v31  ;;  %v6130_v47 = vmul.f32 %v2622_v38, %v2606_v18  ;;  %v6996_v18 = vld [vmem:[#allocation61_spill] sm:$0xff]  ;;  %v7007_v41 = vld [vmem:[#allocation30_spill] sm:$0xff]  ;;  %v7009_v7 = vld [vmem:[#allocation32_spill] sm:$0xff] }
0x154d   :  { %v2641_v58 = vmul.f32 0.5, %v4053_v60  ;;  %v4055_v6 = vpop.eup %4054  ;;  %v6126_v54 = vmul.f32 %v2623_v3, %v2607_v23  ;;  %v2644_v53 = vadd.f32 0.5, %v2640_v5  ;;  %v7010_v31 = vld [vmem:[#allocation33_spill] sm:$0xff]  ;;  %v7011_v60 = vld [vmem:[#allocation34_spill] sm:$0xff]  ;;  %v7014_v3 = vld [vmem:[#allocation40_spill] sm:$0xff] }
0x154e   :  { %v2625_v46 = vadd.f32 0.5, %v2621_v34  ;;  %v6124_v24 = vmul.f32 %v2624_v1, %v2608_v51  ;;  %v2638_v27 = vmul.f32 0.5, %v4055_v6  ;;  %v7012_v1 = vld [vmem:[#allocation36_spill] sm:$0xff]  ;;  %v7013_v34 = vld [vmem:[#allocation37_spill] sm:$0xff]  ;;  %v7020_v5 = vld [vmem:[#allocation71_spill] sm:$0xff] }
0x154f   :  { %v2645_v40 = vadd.f32 0.5, %v2641_v58  ;;  %v7015_v38 = vld [vmem:[#allocation41_spill] sm:$0xff]  ;;  %v7016_v58 = vld [vmem:[#allocation42_spill] sm:$0xff]  ;;  %v7017_v6 = vld [vmem:[#allocation68_spill] sm:$0xff] }
0x1550   :  { %v6128_v12 = vmul.f32 %v2625_v46, %v2609_v43  ;;  %v2650_v51 = vpack.c.bf16 %v6124_v24, %v6130_v47  ;;  %v2642_v43 = vadd.f32 0.5, %v2638_v27  ;;  %v7018_v55 = vld [vmem:[#allocation69_spill] sm:$0xff]  ;;  %v7019_v46 = vld [vmem:[#allocation70_spill] sm:$0xff] }
0x1551   :  { %v6132_v39 = vmul.f32 %v2645_v40, %v2604_v56  ;;  %v6143_v56 = vmul.f32 %v2644_v53, %v2602_v63  ;;  %v7003_v63 = vld [vmem:[#allocation26_spill] sm:$0xff]  ;;  %v7021_v40 = vld [vmem:[#allocation35_spill] sm:$0xff] }
0x1552   :  { %v2651_v57 = vpack.c.bf16 %v6128_v12, %v6126_v54  ;;  %v6147_v26 = vmul.f32 %v2642_v43, %v6116_v11  ;;  %v7005_v11 = vld [vmem:[#allocation28_spill] sm:$0xff]  ;;  %v7022_v27 = vld [vmem:[#allocation38_spill] sm:$0xff]  ;;  %v7024_v53 = vld [vmem:[#allocation43_spill] sm:$0xff] }
0x1553   :  { %v2653_v23 = vpack.c.bf16 %v6132_v39, %v6134_v28  ;;  %v4276_v43 = vld [vmem:[#allocation10 + $0x4] ss:$8 sps:$4 sm:$0xff]  }
0x1554   :  { %2697 = vmatprep.mubr.bf16.mxu1 %v2651_v57  ;;  %v2652_v22 = vpack.c.bf16 %v6143_v56, %v6147_v26  ;;  %v7023_v57 = vld [vmem:[#allocation39_spill] sm:$0xff] }
0x1555   :  { %2698 = vmatmul.mubr.bf16.vlgmr.msra.gmra.mrb[56].mxu1 %v2650_v51  ;;  %v7025_v51 = vld [vmem:[#allocation44_spill] sm:$0xff] }
0x1556   :  { %2707 = vmatprep.mubr.bf16.mxu1 %v2653_v23  ;;  %2949 = vmatpush1.bf16.msra.mxu1 %v6996_v18  ;;  %v7026_v23 = vld [vmem:[#allocation45_spill] sm:$0xff] }
0x1557   :  { %2950 = vmatprep.subr.bf16.mxu1 %v6997_v9  ;;  %v2549_v18 = vld [vmem:[#allocation14 + $0x7] ss:$8 sm:$0x3] }
0x1558   :  { %v2658_v9 = vrot.slane %v2549_v18, %v6990_v0 }
0x155a   :  { %2951 = vmatpush1.bf16.msra.mxu1 %v6998_v36  ;;  %v2662_v36 = vrot.slane %v2549_v18, %v6991_v10 }
0x155b   :  { %2952 = vmatprep.subr.bf16.mxu1 %v6999_v2 }
0x155d   :  { %2708 = vmatmul.mubr.bf16.gmra.mrb[60].mxu1 %v2652_v22 }
0x155e   :  { %2953 = vmatpush1.bf16.msra.mxu1 %v7000_v44 }
0x155f   :  { %2954 = vmatprep.subr.bf16.mxu1 %v7001_v14 }
0x1562   :  { %2955 = vmatpush1.bf16.msra.mxu1 %v7002_v21 }
0x1563   :  { %2956 = vmatprep.subr.bf16.mxu1 %v7003_v63 }
0x1566   :  { %2957 = vmatpush1.bf16.msra.mxu1 %v7004_v29 }
0x1567   :  { %2958 = vmatprep.subr.bf16.mxu1 %v7005_v11 }
0x156a   :  { %2959 = vmatpush1.bf16.msra.mxu1 %v7006_v52 }
0x156b   :  { %2960 = vmatprep.subr.bf16.mxu1 %v7007_v41 }
0x156e   :  { %2961 = vmatpush1.bf16.msra.mxu1 %v7008_v16 }
0x156f   :  { %2962 = vmatprep.subr.bf16.mxu1 %v7009_v7 }
0x1572   :  { %2963 = vmatpush1.bf16.msra.mxu1 %v7010_v31 }
0x1573   :  { %2964 = vmatprep.subr.bf16.mxu1 %v7011_v60 }
0x1576   :  { %2965 = vmatpush1.bf16.msra.mxu1 %v7012_v1 }
0x1577   :  { %2966 = vmatprep.subr.bf16.mxu1 %v7013_v34 }
0x157a   :  { %2967 = vmatpush1.bf16.msra.mxu1 %v7014_v3 }
0x157b   :  { %2968 = vmatprep.subr.bf16.mxu1 %v7015_v38 }
0x157e   :  { %2969 = vmatpush1.bf16.msra.mxu1 %v7016_v58 }
0x157f   :  { %2970 = vmatprep.subr.bf16.mxu1 %v7017_v6 }
0x1582   :  { %2971 = vmatpush1.bf16.msra.mxu1 %v7018_v55 }
0x1583   :  { %2972 = vmatprep.subr.bf16.mxu1 %v7019_v46 }
0x1586   :  { %2973 = vmatpush1.bf16.msra.mxu1 %v7020_v5 }
0x1587   :  { %2974 = vmatprep.subr.bf16.mxu1 %v7021_v40 }
0x158a   :  { %2975 = vmatpush1.bf16.msra.mxu1 %v7022_v27 }
0x158b   :  { %2976 = vmatprep.subr.bf16.mxu1 %v7023_v57 }
0x158e   :  { %2977 = vmatpush1.bf16.msra.mxu1 %v7024_v53 }
0x158f   :  { %2978 = vmatprep.subr.bf16.mxu1 %v7025_v51 }
0x1592   :  { %2979 = vmatpush1.bf16.msra.mxu1 %v7026_v23 }
0x1593   :  { %3231 = vmatprep.subr.bf16.mxu1 %v4276_v43 }
0x1628   :  { %v2699_v22 = vpop.f32.mrb[56].mxu1 }
0x1629   :  { %v2700_v2 = vadd.f32 %v2699_v22, %v2658_v9  ;;  %v2701_v44 = vpop.f32.mrb[57].mxu1 }
0x162a   :  { %v2702_v14 = vadd.f32 %v2701_v44, %v2662_v36  ;;  %v2703_v21 = vpop.f32.mrb[58].mxu1 }
0x162b   :  { %v2718_v63 = vmul.f32 0.5, %v2700_v2  ;;  %v2704_v29 = vadd.f32 %v2703_v21, %v2658_v9  ;;  %v2705_v11 = vpop.f32.mrb[59].mxu1 }
0x162c   :  { %v2719_v52 = vmul.f32 0.5, %v2702_v14  ;;  %v2706_v41 = vadd.f32 %v2705_v11, %v2662_v36 }
0x162d   :  { %4056 = vtanh.f32 %v2718_v63  ;;  %v2720_v16 = vmul.f32 0.5, %v2704_v29 }
0x162e   :  { %4058 = vtanh.f32 %v2719_v52  ;;  %v2721_v7 = vmul.f32 0.5, %v2706_v41 }
0x162f   :  { %4060 = vtanh.f32 %v2720_v16 }
0x1630   :  { %4062 = vtanh.f32 %v2721_v7  ;;  %v2709_v31 = vpop.f32.mrb[60].mxu1 }
0x1631   :  { %v2710_v60 = vadd.f32 %v2709_v31, %v2658_v9  ;;  %v2711_v1 = vpop.f32.mrb[61].mxu1 }
0x1632   :  { %v2712_v34 = vadd.f32 %v2711_v1, %v2662_v36  ;;  %v2713_v3 = vpop.f32.mrb[62].mxu1 }
0x1633   :  { %v2722_v38 = vmul.f32 0.5, %v2710_v60  ;;  %v2714_v58 = vadd.f32 %v2713_v3, %v2658_v9  ;;  %v2715_v6 = vpop.f32.mrb[63].mxu1 }
0x1634   :  { %v2723_v55 = vmul.f32 0.5, %v2712_v34  ;;  %v2716_v46 = vadd.f32 %v2715_v6, %v2662_v36 }
0x1635   :  { %4064 = vtanh.f32 %v2722_v38  ;;  %v2724_v5 = vmul.f32 0.5, %v2714_v58 }
0x1636   :  { %4066 = vtanh.f32 %v2723_v55  ;;  %v2725_v40 = vmul.f32 0.5, %v2716_v46 }
0x1637   :  { %v4057_v27 = vpop.eup %4056  ;;  %4068 = vtanh.f32 %v2724_v5 }
0x1638   :  { %v4059_v57 = vpop.eup %4058  ;;  %v2734_v53 = vmul.f32 0.5, %v4057_v27  ;;  %4070 = vtanh.f32 %v2725_v40 }
0x1639   :  { %v4061_v51 = vpop.eup %4060  ;;  %v2735_v23 = vmul.f32 0.5, %v4059_v57 }
0x163a   :  { %v4063_v43 = vpop.eup %4062  ;;  %v2736_v18 = vmul.f32 0.5, %v4061_v51  ;;  %v2742_v44 = vadd.f32 0.5, %v2734_v53 }
0x163b   :  { %v2737_v22 = vmul.f32 0.5, %v4063_v43  ;;  %v2743_v21 = vadd.f32 0.5, %v2735_v23 }
0x163c   :  { %v2744_v9 = vadd.f32 0.5, %v2736_v18  ;;  %v2750_v52 = vmul.f32 %v2742_v44, %v2700_v2 }
0x163d   :  { %v2745_v11 = vadd.f32 0.5, %v2737_v22  ;;  %v2751_v31 = vmul.f32 %v2743_v21, %v2702_v14 }
0x163e   :  { %v2752_v38 = vmul.f32 %v2744_v9, %v2704_v29  ;;  %v2758_v57 = vadd.f32 %v2750_v52, %v6130_v47 }
0x163f   :  { %v4065_v63 = vpop.eup %4064  ;;  %v2753_v5 = vmul.f32 %v2745_v11, %v2706_v41  ;;  %v2759_v23 = vadd.f32 %v2751_v31, %v6126_v54  ;;  %v6203_v31 = vld [vmem:[#allocation8 + $0x20] ss:$8 sps:$4 sm:$0xff]  }
0x1640   :  { %v4067_v36 = vpop.eup %4066  ;;  %v2738_v16 = vmul.f32 0.5, %v4065_v63  ;;  %v2760_v2 = vadd.f32 %v2752_v38, %v6124_v24  ;;  %v2766_v21 = vmul.f32 0.24645495, %v2758_v57  ;;  %v6212_v38 = vld [vmem:[#allocation8 + $0x44] ss:$8 sps:$4 sm:$0xff]  }
0x1641   :  { %v4069_v7 = vpop.eup %4068  ;;  %v2739_v1 = vmul.f32 0.5, %v4067_v36  ;;  %v2761_v29 = vadd.f32 %v2753_v5, %v6128_v12  ;;  %v6221_v5 = vld [vmem:[#allocation8 + $0x50] ss:$8 sps:$4 sm:$0xff]   ;;  %v6230_v57 = vld [vmem:[#allocation8 + $0x74] ss:$8 sps:$4 sm:$0xff]  }
0x1642   :  { %v4071_v3 = vpop.eup %4070  ;;  %v2746_v6 = vadd.f32 0.5, %v2738_v16  ;;  %v2740_v55 = vmul.f32 0.5, %v4069_v7 }
0x1643   :  { %v2747_v40 = vadd.f32 0.5, %v2739_v1  ;;  %v2741_v27 = vmul.f32 0.5, %v4071_v3  ;;  %v2769_v24 = vmul.f32 0.24645495, %v2761_v29  ;;  %v6206_v1 = vld [vmem:[#allocation8 + $0x34] ss:$8 sps:$4 sm:$0xff]  }
0x1644   :  { %v2754_v53 = vmul.f32 %v2746_v6, %v2710_v60  ;;  %v2748_v51 = vadd.f32 0.5, %v2740_v55  ;;  %v2767_v60 = vmul.f32 0.24645495, %v2759_v23  ;;  %v6209_v3 = vld [vmem:[#allocation8 + $0x30] ss:$8 sps:$4 sm:$0xff]  }
0x1645   :  { %v2755_v43 = vmul.f32 %v2747_v40, %v2712_v34  ;;  %v2749_v18 = vadd.f32 0.5, %v2741_v27  ;;  %v2768_v34 = vmul.f32 0.24645495, %v2760_v2  ;;  %v6215_v6 = vld [vmem:[#allocation8 + $0x40] ss:$8 sps:$4 sm:$0xff]  }
0x1646   :  { %v2762_v14 = vadd.f32 %v2754_v53, %v6147_v26  ;;  %v2756_v22 = vmul.f32 %v2748_v51, %v2714_v58  ;;  %v6218_v55 = vld [vmem:[#allocation8 + $0x54] ss:$8 sps:$4 sm:$0xff]   ;;  %v6224_v40 = vld [vmem:[#allocation8 + $0x64] ss:$8 sps:$4 sm:$0xff]   ;;  %v6227_v27 = vld [vmem:[#allocation8 + $0x60] ss:$8 sps:$4 sm:$0xff]  }
0x1647   :  { %v2763_v44 = vadd.f32 %v2755_v43, %v6134_v28  ;;  %v2757_v41 = vmul.f32 %v2749_v18, %v2716_v46  ;;  %v6190_v28 = vld [vmem:[#allocation8] ss:$8 sps:$4 sm:$0xff]   ;;  %v6200_v46 = vld [vmem:[#allocation8 + $0x24] ss:$8 sps:$4 sm:$0xff]   ;;  %v6233_v53 = vld [vmem:[#allocation8 + $0x70] ss:$8 sps:$4 sm:$0xff]  }
0x1648   :  { %v2770_v9 = vmul.f32 0.10148145, %v2762_v14  ;;  %v2764_v47 = vadd.f32 %v2756_v22, %v6143_v56  ;;  %v6194_v56 = vld [vmem:[#allocation8 + $0x14] ss:$8 sps:$4 sm:$0xff]   ;;  %v3489_v23 = vld [vmem:[%s6425_s8 + $0x7] ss:$0 sm:$0xff] }
0x1649   :  { %v2771_v63 = vmul.f32 0.10148145, %v2763_v44  ;;  %v2765_v54 = vadd.f32 %v2757_v41, %v6132_v39  ;;  %v6197_v39 = vld [vmem:[#allocation8 + $0x10] ss:$8 sps:$4 sm:$0xff]  }
0x164a   :  { %v2774_v11 = vsub.f32 %v2766_v21, %v2770_v9  ;;  %v2772_v36 = vmul.f32 0.10148145, %v2764_v47 }
0x164b   :  { %v2773_v52 = vmul.f32 0.10148145, %v2765_v54  ;;  %v2775_v26 = vsub.f32 %v2767_v60, %v2771_v63  ;;  %v6278_v63 = vld [vmem:[#allocation7 + $0x10] sm:$0xff] }
0x164c   :  { %v2776_v58 = vsub.f32 %v2768_v34, %v2772_v36  ;;  %7027 = vst [vmem:[#allocation23_spill] sm:$0xff] %v6278_v63  ;;  %v6283_v36 = vld [vmem:[#allocation7 + $0x18] sm:$0xff] }
0x164d   :  { %v2777_v16 = vsub.f32 %v2769_v24, %v2773_v52  ;;  %7028 = vst [vmem:[#allocation46_spill] sm:$0xff] %v6283_v36 }
0x164e   :  { %v2778_v12 = vpack.c.bf16 %v2776_v58, %v2774_v11 }
0x164f   :  { %v2779_v7 = vpack.c.bf16 %v2777_v16, %v2775_v26 }
0x1651   :  { %2816 = vmatprep.mubr.bf16.mxu0 %v2779_v7 }
0x1652   :  { %2817 = vmatmul.mubr.bf16.vlgmr.msra.gmra.mrb[60].mxu0 %v2778_v12 }
0x1653   :  { %2847 = vmatpush1.bf16.msra.mxu0 %v6190_v28  ;;  %2878 = vmatprep.mubr.bf16.mxu0 %v6720_v25 }
0x1654   :  { %2848 = vmatprep.subr.bf16.mxu0 %v6194_v56 }
0x1657   :  { %2849 = vmatpush1.bf16.msra.mxu0 %v6197_v39 }
0x1658   :  { %2850 = vmatprep.subr.bf16.mxu0 %v6200_v46 }
0x165b   :  { %2851 = vmatpush1.bf16.msra.mxu0 %v6203_v31 }
0x165c   :  { %2852 = vmatprep.subr.bf16.mxu0 %v6206_v1 }
0x165f   :  { %2853 = vmatpush1.bf16.msra.mxu0 %v6209_v3 }
0x1660   :  { %2854 = vmatprep.subr.bf16.mxu0 %v6212_v38 }
0x1663   :  { %2855 = vmatpush1.bf16.msra.mxu0 %v6215_v6 }
0x1664   :  { %2856 = vmatprep.subr.bf16.mxu0 %v6218_v55 }
0x1667   :  { %2857 = vmatpush1.bf16.msra.mxu0 %v6221_v5 }
0x1668   :  { %2858 = vmatprep.subr.bf16.mxu0 %v6224_v40 }
0x166b   :  { %2859 = vmatpush1.bf16.msra.mxu0 %v6227_v27 }
0x166c   :  { %2860 = vmatprep.subr.bf16.mxu0 %v6230_v57 }
0x166f   :  { %2861 = vmatpush1.bf16.msra.mxu0 %v6233_v53 }
0x1670   :  { %3668 = vmatprep.subr.bf16.mxu0 %v5925_v4 }
0x1725   :  { %v3662_v51 = vpop.f32.mrb[60].mxu0 }
0x1726   :  { %v3663_v43 = vpop.f32.mrb[61].mxu0 }
0x1727   :  { %v3664_v18 = vadd.f32 %v3663_v43, %v3662_v51  ;;  %v3665_v2 = vpop.f32.mrb[62].mxu0 }
0x1728   :  { %v3666_v14 = vpop.f32.mrb[63].mxu0 }
0x1729   :  { %v2819_v22 = vadd.f32 %v3664_v18, %v3489_v23  ;;  %v3667_v29 = vadd.f32 %v3666_v14, %v3665_v2 }
0x172b   :  { %v2825_v44 = vmul.f32 %v6084_v62, %v2819_v22  ;;  %v2822_v41 = vadd.f32 %v3667_v29, %v3489_v23 }
0x172d   :  { %v2826_v21 = vmul.f32 %v6087_v17, %v2822_v41  ;;  %v6243_v9 = vadd.f32 %v2825_v44, %v6091_v13 }
0x172f   :  { %v6246_v4 = vadd.f32 %v2826_v21, %v6094_v50 }
0x1731   :  { %v2834_v47 = vpack.c.bf16 %v6246_v4, %v6243_v9 }
0x1733   :  { %2879 = vmatmul.mubr.bf16.vlgmr.msra.gmra.mrb[64].mxu0 %v2834_v47 }
0x1734   :  { %3669 = vmatpush3.bf16.msra.mxu0 %v5941_v32  ;;  %v4292_v32 = vld [vmem:[#allocation8 + $0x4] ss:$8 sps:$4 sm:$0xff]  }
0x1735   :  { %3670 = vmatprep.subr.bf16.mxu0 %v5944_v20  ;;  %v2830_v20 = vld [vmem:[#allocation13 + $0x10] ss:$8 sm:$0x3] }
0x1738   :  { %3671 = vmatpush3.bf16.msra.mxu0 %v5947_v8  ;;  %v2839_v8 = vrot.slane %v2830_v20, %v6990_v0 }
0x1739   :  { %3672 = vmatprep.subr.bf16.mxu0 %v5950_v37  ;;  %v2843_v37 = vrot.slane %v2830_v20, %v6991_v10 }
0x173c   :  { %3673 = vmatpush3.bf16.msra.mxu0 %v5953_v19 }
0x173d   :  { %3674 = vmatprep.subr.bf16.mxu0 %v6979_v30 }
0x1740   :  { %3675 = vmatpush3.bf16.msra.mxu0 %v6980_v33 }
0x1741   :  { %3676 = vmatprep.subr.bf16.mxu0 %v6981_v49  ;;  %v6269_v49 = vld [vmem:[#allocation7] sm:$0xff] }
0x1744   :  { %3677 = vmatpush3.bf16.msra.mxu0 %v6982_v15 }
0x1745   :  { %3678 = vmatprep.subr.bf16.mxu0 %v6983_v61 }
0x1748   :  { %3679 = vmatpush3.bf16.msra.mxu0 %v6984_v35 }
0x1749   :  { %3680 = vmatprep.subr.bf16.mxu0 %v6985_v59  ;;  %v6275_v59 = vld [vmem:[#allocation7 + $0x8] sm:$0xff] }
0x174c   :  { %3681 = vmatpush3.bf16.msra.mxu0 %v6986_v45 }
0x174d   :  { %3682 = vmatprep.subr.bf16.mxu0 %v6987_v48 }
0x1750   :  { %3683 = vmatpush3.bf16.msra.mxu0 %v6988_v42 }
0x1751   :  { %3129 = vmatprep.subr.bf16.mxu0 %v4292_v32 }
0x1806   :  { %v2880_v19 = vpop.f32.mrb[64].mxu0 }
0x1807   :  { %v6267_v13 = vadd.f32 %v2880_v19, %v2839_v8  ;;  %v2882_v50 = vpop.f32.mrb[65].mxu0 }
0x1808   :  { %v2883_v30 = vadd.f32 %v2882_v50, %v2843_v37  ;;  %v2884_v33 = vpop.f32.mrb[66].mxu0 }
0x1809   :  { %v2889_v15 = vadd.f32 %v6269_v49, %v6267_v13  ;;  %v6273_v61 = vadd.f32 %v2884_v33, %v2839_v8  ;;  %v2886_v35 = vpop.f32.mrb[67].mxu0  ;;  %v2913_v16 = vmul.f32 0.5, %v6267_v13 }
0x180a   :  { %v2890_v45 = vadd.f32 %v6275_v59, %v2883_v30  ;;  %v2914_v48 = vmul.f32 0.5, %v2883_v30  ;;  %v2887_v42 = vadd.f32 %v2886_v35, %v2843_v37 }
0x180b   :  { %v2893_v60 = vmul.f32 0.5, %v2889_v15  ;;  %v2891_v54 = vadd.f32 %v6278_v63, %v6273_v61  ;;  %v2915_v11 = vmul.f32 0.5, %v6273_v61 }
0x180c   :  { %v2894_v34 = vmul.f32 0.5, %v2890_v45  ;;  %4072 = vtanh.f32 %v2914_v48  ;;  %v2892_v24 = vadd.f32 %v6283_v36, %v2887_v42  ;;  %v2916_v58 = vmul.f32 0.5, %v2887_v42 }
0x180d   :  { %4074 = vtanh.f32 %v2893_v60  ;;  %v2895_v52 = vmul.f32 0.5, %v2891_v54 }
0x180e   :  { %4076 = vtanh.f32 %v2894_v34  ;;  %v2896_v26 = vmul.f32 0.5, %v2892_v24 }
0x180f   :  { %4078 = vtanh.f32 %v2895_v52 }
0x1810   :  { %4080 = vtanh.f32 %v2915_v11 }
0x1811   :  { %4082 = vtanh.f32 %v2896_v26 }
0x1812   :  { %4084 = vtanh.f32 %v2916_v58 }
0x1813   :  { %4086 = vtanh.f32 %v2913_v16 }
0x1816   :  { %v4073_v12 = vpop.eup %4072 }
0x1817   :  { %v4075_v7 = vpop.eup %4074  ;;  %v2922_v14 = vmul.f32 0.5, %v4073_v12 }
0x1818   :  { %v4077_v51 = vpop.eup %4076  ;;  %v2901_v43 = vmul.f32 0.5, %v4075_v7  ;;  %v4299_v7 = vld [vmem:[#allocation10 + $0x10] ss:$8 sps:$4 sm:$0xff]  }
0x1819   :  { %v4079_v23 = vpop.eup %4078  ;;  %v2902_v18 = vmul.f32 0.5, %v4077_v51  ;;  %v2926_v37 = vadd.f32 0.5, %v2922_v14  ;;  %v4305_v14 = vld [vmem:[#allocation10 + $0x40] ss:$8 sps:$4 sm:$0xff]  }
0x181a   :  { %v4081_v2 = vpop.eup %4080  ;;  %v2903_v22 = vmul.f32 0.5, %v4079_v23  ;;  %v2905_v32 = vadd.f32 0.5, %v2901_v43  ;;  %v4300_v23 = vld [vmem:[#allocation10 + $0x24] ss:$8 sps:$4 sm:$0xff]   ;;  %v4301_v43 = vld [vmem:[#allocation10 + $0x20] ss:$8 sps:$4 sm:$0xff]  }
0x181b   :  { %v4083_v29 = vpop.eup %4082  ;;  %v2906_v47 = vadd.f32 0.5, %v2902_v18  ;;  %v2923_v33 = vmul.f32 0.5, %v4081_v2  ;;  %v6297_v26 = vmul.f32 %v2926_v37, %v2883_v30  ;;  %v4298_v30 = vld [vmem:[#allocation10 + $0x14] ss:$8 sps:$4 sm:$0xff]   ;;  %v4303_v2 = vld [vmem:[#allocation10 + $0x30] ss:$8 sps:$4 sm:$0xff]  }
0x181c   :  { %v4085_v44 = vpop.eup %4084  ;;  %v2907_v41 = vadd.f32 0.5, %v2903_v22  ;;  %v2904_v21 = vmul.f32 0.5, %v4083_v29  ;;  %v6293_v34 = vmul.f32 %v2905_v32, %v2889_v15  ;;  %v4297_v15 = vld [vmem:[#allocation10] ss:$8 sps:$4 sm:$0xff]   ;;  %v4302_v18 = vld [vmem:[#allocation10 + $0x34] ss:$8 sps:$4 sm:$0xff]  }
0x181d   :  { %v2924_v20 = vmul.f32 0.5, %v4085_v44  ;;  %v4087_v8 = vpop.eup %4086  ;;  %v6289_v48 = vmul.f32 %v2906_v47, %v2890_v45  ;;  %v2927_v16 = vadd.f32 0.5, %v2923_v33  ;;  %v4307_v22 = vld [vmem:[#allocation10 + $0x50] ss:$8 sps:$4 sm:$0xff]   ;;  %v4308_v29 = vld [vmem:[#allocation10 + $0x64] ss:$8 sps:$4 sm:$0xff]  }
0x181e   :  { %v2908_v19 = vadd.f32 0.5, %v2904_v21  ;;  %v6287_v50 = vmul.f32 %v2907_v41, %v2891_v54  ;;  %v2921_v11 = vmul.f32 0.5, %v4087_v8  ;;  %v4309_v44 = vld [vmem:[#allocation10 + $0x60] ss:$8 sps:$4 sm:$0xff]   ;;  %v4310_v41 = vld [vmem:[#allocation10 + $0x74] ss:$8 sps:$4 sm:$0xff]  }
0x181f   :  { %v2928_v35 = vadd.f32 0.5, %v2924_v20  ;;  %v4311_v21 = vld [vmem:[#allocation10 + $0x70] ss:$8 sps:$4 sm:$0xff]   ;;  %v4312_v47 = vld [vmem:[#allocation10 + $0x84] ss:$8 sps:$4 sm:$0xff]  }
0x1820   :  { %v6291_v60 = vmul.f32 %v2908_v19, %v2892_v24  ;;  %v2933_v54 = vpack.c.bf16 %v6287_v50, %v6293_v34  ;;  %v2925_v24 = vadd.f32 0.5, %v2921_v11  ;;  %v4313_v32 = vld [vmem:[#allocation10 + $0x80] ss:$8 sps:$4 sm:$0xff]   ;;  %v4314_v20 = vld [vmem:[#allocation10 + $0x94] ss:$8 sps:$4 sm:$0xff]  }
0x1821   :  { %v6295_v52 = vmul.f32 %v2928_v35, %v2887_v42  ;;  %v6306_v42 = vmul.f32 %v2927_v16, %v6273_v61  ;;  %v4304_v61 = vld [vmem:[#allocation10 + $0x44] ss:$8 sps:$4 sm:$0xff]   ;;  %v4315_v8 = vld [vmem:[#allocation10 + $0x90] ss:$8 sps:$4 sm:$0xff]   ;;  %v4317_v19 = vld [vmem:[#allocation10 + $0xa0] ss:$8 sps:$4 sm:$0xff]  }
0x1822   :  { %v2934_v58 = vpack.c.bf16 %v6291_v60, %v6289_v48  ;;  %v6309_v12 = vmul.f32 %v2925_v24, %v6267_v13  ;;  %v4306_v13 = vld [vmem:[#allocation10 + $0x54] ss:$8 sps:$4 sm:$0xff]   ;;  %v4316_v37 = vld [vmem:[#allocation10 + $0xa4] ss:$8 sps:$4 sm:$0xff]   ;;  %v4319_v35 = vld [vmem:[#allocation10 + $0xb0] ss:$8 sps:$4 sm:$0xff]  }
0x1823   :  { %v2936_v45 = vpack.c.bf16 %v6295_v52, %v6297_v26  ;;  %v4318_v33 = vld [vmem:[#allocation10 + $0xb4] ss:$8 sps:$4 sm:$0xff]   ;;  %v4320_v11 = vld [vmem:[#allocation10 + $0xc4] ss:$8 sps:$4 sm:$0xff]   ;;  %v4325_v24 = vld [vmem:[#allocation10 + $0xe0] ss:$8 sps:$4 sm:$0xff]  }
0x1824   :  { %2980 = vmatprep.mubr.bf16.mxu1 %v2934_v58  ;;  %v2935_v51 = vpack.c.bf16 %v6306_v42, %v6309_v12  ;;  %v4321_v58 = vld [vmem:[#allocation10 + $0xc0] ss:$8 sps:$4 sm:$0xff]   ;;  %v4322_v16 = vld [vmem:[#allocation10 + $0xd4] ss:$8 sps:$4 sm:$0xff]  }
0x1825   :  { %2981 = vmatmul.mubr.bf16.vlgmr.msra.gmra.mrb[64].mxu1 %v2933_v54  ;;  %v4323_v54 = vld [vmem:[#allocation10 + $0xd0] ss:$8 sps:$4 sm:$0xff]  }
0x1826   :  { %2990 = vmatprep.mubr.bf16.mxu1 %v2936_v45  ;;  %3232 = vmatpush1.bf16.msra.mxu1 %v4297_v15  ;;  %v4324_v45 = vld [vmem:[#allocation10 + $0xe4] ss:$8 sps:$4 sm:$0xff]   ;;  %v4326_v15 = vld [vmem:[#allocation10 + $0xf4] ss:$8 sps:$4 sm:$0xff]  }
0x1827   :  { %3233 = vmatprep.subr.bf16.mxu1 %v4298_v30  ;;  %v4327_v30 = vld [vmem:[#allocation10 + $0xf0] ss:$8 sps:$4 sm:$0xff]  }
0x182a   :  { %3234 = vmatpush1.bf16.msra.mxu1 %v4299_v7  ;;  %v2832_v7 = vld [vmem:[#allocation14 + $0x10] ss:$8 sm:$0x3] }
0x182b   :  { %3235 = vmatprep.subr.bf16.mxu1 %v4300_v23  ;;  %v2945_v23 = vrot.slane %v2832_v7, %v6991_v10 }
0x182d   :  { %2991 = vmatmul.mubr.bf16.gmra.mrb[68].mxu1 %v2935_v51  ;;  %v2941_v51 = vrot.slane %v2832_v7, %v6990_v0 }
0x182e   :  { %3236 = vmatpush1.bf16.msra.mxu1 %v4301_v43 }
0x182f   :  { %3237 = vmatprep.subr.bf16.mxu1 %v4302_v18 }
0x1832   :  { %3238 = vmatpush1.bf16.msra.mxu1 %v4303_v2 }
0x1833   :  { %3239 = vmatprep.subr.bf16.mxu1 %v4304_v61 }
0x1836   :  { %3240 = vmatpush1.bf16.msra.mxu1 %v4305_v14 }
0x1837   :  { %3241 = vmatprep.subr.bf16.mxu1 %v4306_v13 }
0x183a   :  { %3242 = vmatpush1.bf16.msra.mxu1 %v4307_v22 }
0x183b   :  { %3243 = vmatprep.subr.bf16.mxu1 %v4308_v29 }
0x183e   :  { %3244 = vmatpush1.bf16.msra.mxu1 %v4309_v44 }
0x183f   :  { %3245 = vmatprep.subr.bf16.mxu1 %v4310_v41 }
0x1842   :  { %3246 = vmatpush1.bf16.msra.mxu1 %v4311_v21 }
0x1843   :  { %3247 = vmatprep.subr.bf16.mxu1 %v4312_v47 }
0x1846   :  { %3248 = vmatpush1.bf16.msra.mxu1 %v4313_v32 }
0x1847   :  { %3249 = vmatprep.subr.bf16.mxu1 %v4314_v20 }
0x184a   :  { %3250 = vmatpush1.bf16.msra.mxu1 %v4315_v8 }
0x184b   :  { %3251 = vmatprep.subr.bf16.mxu1 %v4316_v37 }
0x184e   :  { %3252 = vmatpush1.bf16.msra.mxu1 %v4317_v19 }
0x184f   :  { %3253 = vmatprep.subr.bf16.mxu1 %v4318_v33 }
0x1852   :  { %3254 = vmatpush1.bf16.msra.mxu1 %v4319_v35 }
0x1853   :  { %3255 = vmatprep.subr.bf16.mxu1 %v4320_v11 }
0x1856   :  { %3256 = vmatpush1.bf16.msra.mxu1 %v4321_v58 }
0x1857   :  { %3257 = vmatprep.subr.bf16.mxu1 %v4322_v16 }
0x185a   :  { %3258 = vmatpush1.bf16.msra.mxu1 %v4323_v54 }
0x185b   :  { %3259 = vmatprep.subr.bf16.mxu1 %v4324_v45 }
0x185e   :  { %3260 = vmatpush1.bf16.msra.mxu1 %v4325_v24 }
0x185f   :  { %3261 = vmatprep.subr.bf16.mxu1 %v4326_v15 }
0x1862   :  { %3262 = vmatpush1.bf16.msra.mxu1 %v4327_v30 }
0x18f8   :  { %v2982_v43 = vpop.f32.mrb[64].mxu1 }
0x18f9   :  { %v2983_v18 = vadd.f32 %v2982_v43, %v2941_v51  ;;  %v2984_v2 = vpop.f32.mrb[65].mxu1 }
0x18fa   :  { %v2985_v61 = vadd.f32 %v2984_v2, %v2945_v23  ;;  %v2986_v14 = vpop.f32.mrb[66].mxu1 }
0x18fb   :  { %v3001_v13 = vmul.f32 0.5, %v2983_v18  ;;  %v2987_v22 = vadd.f32 %v2986_v14, %v2941_v51  ;;  %v2988_v29 = vpop.f32.mrb[67].mxu1 }
0x18fc   :  { %v3002_v44 = vmul.f32 0.5, %v2985_v61  ;;  %v2989_v41 = vadd.f32 %v2988_v29, %v2945_v23 }
0x18fd   :  { %4088 = vtanh.f32 %v3001_v13  ;;  %v3003_v21 = vmul.f32 0.5, %v2987_v22 }
0x18fe   :  { %4090 = vtanh.f32 %v3002_v44  ;;  %v3004_v47 = vmul.f32 0.5, %v2989_v41 }
0x18ff   :  { %4092 = vtanh.f32 %v3003_v21 }
0x1900   :  { %4094 = vtanh.f32 %v3004_v47  ;;  %v2992_v32 = vpop.f32.mrb[68].mxu1 }
0x1901   :  { %v2993_v20 = vadd.f32 %v2992_v32, %v2941_v51  ;;  %v2994_v8 = vpop.f32.mrb[69].mxu1 }
0x1902   :  { %v2995_v37 = vadd.f32 %v2994_v8, %v2945_v23  ;;  %v2996_v19 = vpop.f32.mrb[70].mxu1 }
0x1903   :  { %v3005_v33 = vmul.f32 0.5, %v2993_v20  ;;  %v2997_v35 = vadd.f32 %v2996_v19, %v2941_v51  ;;  %v2998_v11 = vpop.f32.mrb[71].mxu1 }
0x1904   :  { %v3006_v58 = vmul.f32 0.5, %v2995_v37  ;;  %v2999_v16 = vadd.f32 %v2998_v11, %v2945_v23 }
0x1905   :  { %4096 = vtanh.f32 %v3005_v33  ;;  %v3007_v54 = vmul.f32 0.5, %v2997_v35 }
0x1906   :  { %4098 = vtanh.f32 %v3006_v58  ;;  %v3008_v45 = vmul.f32 0.5, %v2999_v16 }
0x1907   :  { %v4089_v24 = vpop.eup %4088  ;;  %4100 = vtanh.f32 %v3007_v54 }
0x1908   :  { %v4091_v15 = vpop.eup %4090  ;;  %v3017_v30 = vmul.f32 0.5, %v4089_v24  ;;  %4102 = vtanh.f32 %v3008_v45 }
0x1909   :  { %v4093_v7 = vpop.eup %4092  ;;  %v3018_v43 = vmul.f32 0.5, %v4091_v15 }
0x190a   :  { %v4095_v2 = vpop.eup %4094  ;;  %v3019_v14 = vmul.f32 0.5, %v4093_v7  ;;  %v3025_v29 = vadd.f32 0.5, %v3017_v30 }
0x190b   :  { %v3020_v13 = vmul.f32 0.5, %v4095_v2  ;;  %v3026_v44 = vadd.f32 0.5, %v3018_v43 }
0x190c   :  { %v3027_v51 = vadd.f32 0.5, %v3019_v14  ;;  %v3033_v32 = vmul.f32 %v3025_v29, %v2983_v18 }
0x190d   :  { %v3028_v47 = vadd.f32 0.5, %v3020_v13  ;;  %v3034_v33 = vmul.f32 %v3026_v44, %v2985_v61 }
0x190e   :  { %v3035_v54 = vmul.f32 %v3027_v51, %v2987_v22  ;;  %v3041_v7 = vadd.f32 %v3033_v32, %v6293_v34 }
0x190f   :  { %v4097_v21 = vpop.eup %4096  ;;  %v3036_v36 = vmul.f32 %v3028_v47, %v2989_v41  ;;  %v3042_v2 = vadd.f32 %v3034_v33, %v6289_v48  ;;  %v4339_v33 = vld [vmem:[#allocation11 + $0x28] sm:$0xff]  }
0x1910   :  { %v4099_v23 = vpop.eup %4098  ;;  %v3021_v8 = vmul.f32 0.5, %v4097_v21  ;;  %v3043_v18 = vadd.f32 %v3035_v54, %v6287_v50  ;;  %v3049_v51 = vmul.f32 0.2593903, %v3041_v7  ;;  %v4342_v54 = vld [vmem:[#allocation11 + $0x78] sm:$0xff]  }
0x1911   :  { %v4101_v19 = vpop.eup %4100  ;;  %v3022_v11 = vmul.f32 0.5, %v4099_v23  ;;  %v3044_v22 = vadd.f32 %v3036_v36, %v6291_v60 }
0x1912   :  { %v4103_v58 = vpop.eup %4102  ;;  %v3029_v24 = vadd.f32 0.5, %v3021_v8  ;;  %v3023_v45 = vmul.f32 0.5, %v4101_v19  ;;  %v4338_v19 = vld [vmem:[#allocation11 + $0x68] sm:$0xff]  }
0x1913   :  { %v3030_v15 = vadd.f32 0.5, %v3022_v11  ;;  %v3024_v63 = vmul.f32 0.5, %v4103_v58  ;;  %v3052_v50 = vmul.f32 0.2593903, %v3044_v22  ;;  %v4340_v11 = vld [vmem:[#allocation11 + $0x70] sm:$0xff]  }
0x1914   :  { %v3037_v30 = vmul.f32 %v3029_v24, %v2993_v20  ;;  %v3031_v43 = vadd.f32 0.5, %v3023_v45  ;;  %v3050_v20 = vmul.f32 0.2593903, %v3042_v2  ;;  %v4341_v58 = vld [vmem:[#allocation11 + $0x30] sm:$0xff]   ;;  %v4343_v24 = vld [vmem:[#allocation11 + $0x38] sm:$0xff]  }
0x1915   :  { %v3038_v14 = vmul.f32 %v3030_v15, %v2995_v37  ;;  %v3032_v13 = vadd.f32 0.5, %v3024_v63  ;;  %v3051_v37 = vmul.f32 0.2593903, %v3043_v18  ;;  %v3113_v45 = vld [vmem:[#allocation13 + $0x11] ss:$8 sm:$0x3] }
0x1916   :  { %v3045_v61 = vadd.f32 %v3037_v30, %v6309_v12  ;;  %v3039_v29 = vmul.f32 %v3031_v43, %v2997_v35  ;;  %v3122_v15 = vrot.slane %v3113_v45, %v6990_v0  ;;  %v3126_v7 = vrot.slane %v3113_v45, %v6991_v10 }
0x1917   :  { %v3046_v44 = vadd.f32 %v3038_v14, %v6297_v26  ;;  %v3040_v41 = vmul.f32 %v3032_v13, %v2999_v16  ;;  %v4331_v26 = vld [vmem:[#allocation11 + $0x8] sm:$0xff]   ;;  %v4337_v16 = vld [vmem:[#allocation11 + $0x20] sm:$0xff]  }
0x1918   :  { %v3053_v21 = vmul.f32 0.10680777, %v3045_v61  ;;  %v3047_v34 = vadd.f32 %v3039_v29, %v6306_v42  ;;  %v4333_v42 = vld [vmem:[#allocation11 + $0x10] sm:$0xff]  }
0x1919   :  { %v3054_v47 = vmul.f32 0.10680777, %v3046_v44  ;;  %v3048_v48 = vadd.f32 %v3040_v41, %v6295_v52  ;;  %v4330_v52 = vld [vmem:[#allocation11 + $0x48] sm:$0xff]  }
0x191a   :  { %v3057_v63 = vsub.f32 %v3049_v51, %v3053_v21  ;;  %v3055_v23 = vmul.f32 0.10680777, %v3047_v34  ;;  %v7029_v21 = vld [vmem:[#allocation23_spill] sm:$0xff] }
0x191b   :  { %v3056_v32 = vmul.f32 0.10680777, %v3048_v48  ;;  %v3058_v12 = vsub.f32 %v3050_v20, %v3054_v47  ;;  %v7030_v48 = vld [vmem:[#allocation46_spill] sm:$0xff] }
0x191c   :  { %v3059_v35 = vsub.f32 %v3051_v37, %v3055_v23 }
0x191d   :  { %v3060_v8 = vsub.f32 %v3052_v50, %v3056_v32 }
0x191e   :  { %v3061_v36 = vpack.c.bf16 %v3059_v35, %v3057_v63 }
0x191f   :  { %v3062_v60 = vpack.c.bf16 %v3060_v8, %v3058_v12 }
0x1921   :  { %3099 = vmatprep.mubr.bf16.mxu0 %v3062_v60 }
0x1922   :  { %3100 = vmatmul.mubr.bf16.vlgmr.msra.gmra.mrb[68].mxu0 %v3061_v36 }
0x1923   :  { %3130 = vmatpush1.bf16.msra.mxu0 %v6190_v28  ;;  %3161 = vmatprep.mubr.bf16.mxu0 %v6720_v25  ;;  %v4328_v25 = vld [vmem:[#allocation11 + $0x40] sm:$0xff]  }
0x1924   :  { %3131 = vmatprep.subr.bf16.mxu0 %v6194_v56  ;;  %v3490_v56 = vld [vmem:[%s6425_s8 + $0x8] ss:$0 sm:$0xff] }
0x1927   :  { %3132 = vmatpush1.bf16.msra.mxu0 %v6197_v39 }
0x1928   :  { %3133 = vmatprep.subr.bf16.mxu0 %v6200_v46 }
0x192b   :  { %3134 = vmatpush1.bf16.msra.mxu0 %v6203_v31 }
0x192c   :  { %3135 = vmatprep.subr.bf16.mxu0 %v6206_v1 }
0x192f   :  { %3136 = vmatpush1.bf16.msra.mxu0 %v6209_v3 }
0x1930   :  { %3137 = vmatprep.subr.bf16.mxu0 %v6212_v38 }
0x1933   :  { %3138 = vmatpush1.bf16.msra.mxu0 %v6215_v6 }
0x1934   :  { %3139 = vmatprep.subr.bf16.mxu0 %v6218_v55 }
0x1937   :  { %3140 = vmatpush1.bf16.msra.mxu0 %v6221_v5 }
0x1938   :  { %3141 = vmatprep.subr.bf16.mxu0 %v6224_v40 }
0x193b   :  { %3142 = vmatpush1.bf16.msra.mxu0 %v6227_v27 }
0x193c   :  { %3143 = vmatprep.subr.bf16.mxu0 %v6230_v57 }
0x193f   :  { %3144 = vmatpush1.bf16.msra.mxu0 %v6233_v53  ;;  %v4329_v53 = vld [vmem:[#allocation11] sm:$0xff]  }
0x1940   :  { %3690 = vmatprep.subr.bf16.mxu0 %v4328_v25 }
0x19f5   :  { %v3684_v28 = vpop.f32.mrb[68].mxu0 }
0x19f6   :  { %v3685_v39 = vpop.f32.mrb[69].mxu0 }
0x19f7   :  { %v3686_v46 = vadd.f32 %v3685_v39, %v3684_v28  ;;  %v3687_v31 = vpop.f32.mrb[70].mxu0 }
0x19f8   :  { %v3688_v1 = vpop.f32.mrb[71].mxu0 }
0x19f9   :  { %v3102_v3 = vadd.f32 %v3686_v46, %v3490_v56  ;;  %v3689_v38 = vadd.f32 %v3688_v1, %v3687_v31 }
0x19fb   :  { %v3108_v6 = vmul.f32 %v6084_v62, %v3102_v3  ;;  %v3105_v55 = vadd.f32 %v3689_v38, %v3490_v56  ;;  %v4332_v62 = vld [vmem:[#allocation11 + $0x50] sm:$0xff]  }
0x19fd   :  { %v3109_v5 = vmul.f32 %v6087_v17, %v3105_v55  ;;  %v6345_v40 = vadd.f32 %v3108_v6, %v6243_v9  ;;  %v4334_v17 = vld [vmem:[#allocation11 + $0x58] sm:$0xff]  }
0x19fe   :  { %v4335_v9 = vld [vmem:[#allocation11 + $0x18] sm:$0xff]  }
0x19ff   :  { %v6348_v27 = vadd.f32 %v3109_v5, %v6246_v4  ;;  %v4336_v4 = vld [vmem:[#allocation11 + $0x60] sm:$0xff]  }
0x1a01   :  { %v3117_v57 = vpack.c.bf16 %v6348_v27, %v6345_v40 }
0x1a03   :  { %3162 = vmatmul.mubr.bf16.vlgmr.msra.gmra.mrb[72].mxu0 %v3117_v57 }
0x1a04   :  { %3691 = vmatpush3.bf16.msra.mxu0 %v4329_v53 }
0x1a05   :  { %3692 = vmatprep.subr.bf16.mxu0 %v4330_v52 }
0x1a08   :  { %3693 = vmatpush3.bf16.msra.mxu0 %v4331_v26 }
0x1a09   :  { %3694 = vmatprep.subr.bf16.mxu0 %v4332_v62 }
0x1a0c   :  { %3695 = vmatpush3.bf16.msra.mxu0 %v4333_v42 }
0x1a0d   :  { %3696 = vmatprep.subr.bf16.mxu0 %v4334_v17 }
0x1a10   :  { %3697 = vmatpush3.bf16.msra.mxu0 %v4335_v9 }
0x1a11   :  { %3698 = vmatprep.subr.bf16.mxu0 %v4336_v4 }
0x1a14   :  { %3699 = vmatpush3.bf16.msra.mxu0 %v4337_v16 }
0x1a15   :  { %3700 = vmatprep.subr.bf16.mxu0 %v4338_v19 }
0x1a18   :  { %3701 = vmatpush3.bf16.msra.mxu0 %v4339_v33 }
0x1a19   :  { %3702 = vmatprep.subr.bf16.mxu0 %v4340_v11 }
0x1a1c   :  { %3703 = vmatpush3.bf16.msra.mxu0 %v4341_v58 }
0x1a1d   :  { %3704 = vmatprep.subr.bf16.mxu0 %v4342_v54 }
0x1a20   :  { %3705 = vmatpush3.bf16.msra.mxu0 %v4343_v24 }
0x1ad6   :  { %v3163_v30 = vpop.f32.mrb[72].mxu0 }
0x1ad7   :  { %v6354_v43 = vadd.f32 %v3163_v30, %v3122_v15  ;;  %v3165_v2 = vpop.f32.mrb[73].mxu0 }
0x1ad8   :  { %v3166_v14 = vadd.f32 %v3165_v2, %v3126_v7  ;;  %v3167_v13 = vpop.f32.mrb[74].mxu0 }
0x1ad9   :  { %v3172_v18 = vadd.f32 %v6269_v49, %v6354_v43  ;;  %v3168_v61 = vadd.f32 %v3167_v13, %v3122_v15  ;;  %v3169_v29 = vpop.f32.mrb[75].mxu0  ;;  %v3196_v49 = vmul.f32 0.5, %v6354_v43  ;;  %v3115_v15 = vld [vmem:[#allocation14 + $0x11] ss:$8 sm:$0x3] }
0x1ada   :  { %v3173_v22 = vadd.f32 %v6275_v59, %v3166_v14  ;;  %v3197_v44 = vmul.f32 0.5, %v3166_v14  ;;  %v3170_v41 = vadd.f32 %v3169_v29, %v3126_v7  ;;  %v3224_v7 = vrot.slane %v3115_v15, %v6990_v0 }
0x1adb   :  { %v3176_v51 = vmul.f32 0.5, %v3172_v18  ;;  %v3174_v34 = vadd.f32 %v7029_v21, %v3168_v61  ;;  %v3198_v47 = vmul.f32 0.5, %v3168_v61  ;;  %v3228_v30 = vrot.slane %v3115_v15, %v6991_v10 }
0x1adc   :  { %v3177_v20 = vmul.f32 0.5, %v3173_v22  ;;  %4104 = vtanh.f32 %v3197_v44  ;;  %v3175_v37 = vadd.f32 %v7030_v48, %v3170_v41  ;;  %v3199_v50 = vmul.f32 0.5, %v3170_v41 }
0x1add   :  { %4106 = vtanh.f32 %v3176_v51  ;;  %v3178_v63 = vmul.f32 0.5, %v3174_v34 }
0x1ade   :  { %4108 = vtanh.f32 %v3177_v20  ;;  %v3179_v23 = vmul.f32 0.5, %v3175_v37 }
0x1adf   :  { %4110 = vtanh.f32 %v3178_v63 }
0x1ae0   :  { %4112 = vtanh.f32 %v3198_v47 }
0x1ae1   :  { %4114 = vtanh.f32 %v3179_v23 }
0x1ae2   :  { %4116 = vtanh.f32 %v3199_v50 }
0x1ae3   :  { %4118 = vtanh.f32 %v3196_v49 }
0x1ae6   :  { %v4105_v59 = vpop.eup %4104 }
0x1ae7   :  { %v4107_v32 = vpop.eup %4106  ;;  %v3205_v25 = vmul.f32 0.5, %v4105_v59 }
0x1ae8   :  { %v4109_v12 = vpop.eup %4108  ;;  %v3184_v8 = vmul.f32 0.5, %v4107_v32 }
0x1ae9   :  { %v4111_v35 = vpop.eup %4110  ;;  %v3185_v36 = vmul.f32 0.5, %v4109_v12  ;;  %v3209_v55 = vadd.f32 0.5, %v3205_v25 }
0x1aea   :  { %v4113_v60 = vpop.eup %4112  ;;  %v3186_v28 = vmul.f32 0.5, %v4111_v35  ;;  %v3188_v3 = vadd.f32 0.5, %v3184_v8 }
0x1aeb   :  { %v4115_v56 = vpop.eup %4114  ;;  %v3189_v1 = vadd.f32 0.5, %v3185_v36  ;;  %v3206_v53 = vmul.f32 0.5, %v4113_v60  ;;  %v6372_v4 = vmul.f32 %v3209_v55, %v3166_v14 }
0x1aec   :  { %v4117_v39 = vpop.eup %4116  ;;  %v3190_v46 = vadd.f32 0.5, %v3186_v28  ;;  %v3187_v31 = vmul.f32 0.5, %v4115_v56  ;;  %v6368_v42 = vmul.f32 %v3188_v3, %v3172_v18 }
0x1aed   :  { %v3207_v38 = vmul.f32 0.5, %v4117_v39  ;;  %v4119_v6 = vpop.eup %4118  ;;  %v6364_v26 = vmul.f32 %v3189_v1, %v3173_v22  ;;  %v3210_v19 = vadd.f32 0.5, %v3206_v53 }
0x1aee   :  { %v3191_v5 = vadd.f32 0.5, %v3187_v31  ;;  %v6362_v57 = vmul.f32 %v3190_v46, %v3174_v34  ;;  %v3204_v17 = vmul.f32 0.5, %v4119_v6 }
0x1aef   :  { %v3211_v52 = vadd.f32 0.5, %v3207_v38  ;;  %v6380_v54 = vmul.f32 %v3210_v19, %v3168_v61 }
0x1af0   :  { %v6366_v62 = vmul.f32 %v3191_v5, %v3175_v37  ;;  %v3216_v33 = vpack.c.bf16 %v6362_v57, %v6368_v42  ;;  %v3208_v58 = vadd.f32 0.5, %v3204_v17 }
0x1af1   :  { %v6370_v9 = vmul.f32 %v3211_v52, %v3170_v41 }
0x1af2   :  { %v3217_v16 = vpack.c.bf16 %v6366_v62, %v6364_v26  ;;  %v6383_v24 = vmul.f32 %v3208_v58, %v6354_v43 }
0x1af3   :  { %v3219_v11 = vpack.c.bf16 %v6370_v9, %v6372_v4 }
0x1af4   :  { %3263 = vmatprep.mubr.bf16.mxu1 %v3217_v16  ;;  %v3218_v45 = vpack.c.bf16 %v6380_v54, %v6383_v24 }
0x1af5   :  { %3264 = vmatmul.mubr.bf16.vlgmr.msra.gmra.mrb[72].mxu1 %v3216_v33 }
0x1af6   :  { %3273 = vmatprep.mubr.bf16.mxu1 %v3219_v11 }
0x1afd   :  { %3274 = vmatmul.mubr.bf16.gmra.mrb[76].mxu1 %v3218_v45 }
0x1bc8   :  { %v3265_v2 = vpop.f32.mrb[72].mxu1 }
0x1bc9   :  { %v3266_v14 = vadd.f32 %v3265_v2, %v3224_v7  ;;  %v3267_v13 = vpop.f32.mrb[73].mxu1 }
0x1bca   :  { %v3268_v18 = vadd.f32 %v3267_v13, %v3228_v30  ;;  %v3269_v29 = vpop.f32.mrb[74].mxu1 }
0x1bcb   :  { %v3284_v22 = vmul.f32 0.5, %v3266_v14  ;;  %v3270_v61 = vadd.f32 %v3269_v29, %v3224_v7  ;;  %v3271_v44 = vpop.f32.mrb[75].mxu1 }
0x1bcc   :  { %v3285_v41 = vmul.f32 0.5, %v3268_v18  ;;  %v3272_v43 = vadd.f32 %v3271_v44, %v3228_v30 }
0x1bcd   :  { %4120 = vtanh.f32 %v3284_v22  ;;  %v3286_v51 = vmul.f32 0.5, %v3270_v61 }
0x1bce   :  { %4122 = vtanh.f32 %v3285_v41  ;;  %v3287_v21 = vmul.f32 0.5, %v3272_v43 }
0x1bcf   :  { %4124 = vtanh.f32 %v3286_v51 }
0x1bd0   :  { %4126 = vtanh.f32 %v3287_v21  ;;  %v3275_v34 = vpop.f32.mrb[76].mxu1 }
0x1bd1   :  { %v3276_v0 = vadd.f32 %v3275_v34, %v3224_v7  ;;  %v3277_v20 = vpop.f32.mrb[77].mxu1 }
0x1bd2   :  { %v3278_v10 = vadd.f32 %v3277_v20, %v3228_v30  ;;  %v3279_v47 = vpop.f32.mrb[78].mxu1 }
0x1bd3   :  { %v3288_v48 = vmul.f32 0.5, %v3276_v0  ;;  %v3280_v37 = vadd.f32 %v3279_v47, %v3224_v7  ;;  %v3281_v63 = vpop.f32.mrb[79].mxu1 }
0x1bd4   :  { %v3289_v23 = vmul.f32 0.5, %v3278_v10  ;;  %v3282_v50 = vadd.f32 %v3281_v63, %v3228_v30 }
0x1bd5   :  { %4128 = vtanh.f32 %v3288_v48  ;;  %v3290_v49 = vmul.f32 0.5, %v3280_v37 }
0x1bd6   :  { %4130 = vtanh.f32 %v3289_v23  ;;  %v3291_v59 = vmul.f32 0.5, %v3282_v50 }
0x1bd7   :  { %v4121_v32 = vpop.eup %4120  ;;  %4132 = vtanh.f32 %v3290_v49 }
0x1bd8   :  { %v4123_v12 = vpop.eup %4122  ;;  %v3300_v35 = vmul.f32 0.5, %v4121_v32  ;;  %4134 = vtanh.f32 %v3291_v59  ;;  %v4344_v32 = vld [vmem:[#allocation5] sm:$0xff] }
0x1bd9   :  { %v4125_v8 = vpop.eup %4124  ;;  %v3301_v36 = vmul.f32 0.5, %v4123_v12 }
0x1bda   :  { %v4127_v60 = vpop.eup %4126  ;;  %v3302_v25 = vmul.f32 0.5, %v4125_v8  ;;  %v3308_v56 = vadd.f32 0.5, %v3300_v35  ;;  %v4345_v8 = vld [vmem:[#allocation5 + $0x8] sm:$0xff] }
0x1bdb   :  { %v3303_v28 = vmul.f32 0.5, %v4127_v60  ;;  %v3309_v39 = vadd.f32 0.5, %v3301_v36 }
0x1bdc   :  { %v3310_v46 = vadd.f32 0.5, %v3302_v25  ;;  %v3316_v38 = vmul.f32 %v3308_v56, %v3266_v14 }
0x1bdd   :  { %v3311_v1 = vadd.f32 0.5, %v3303_v28  ;;  %v3317_v5 = vmul.f32 %v3309_v39, %v3268_v18 }
0x1bde   :  { %v3318_v17 = vmul.f32 %v3310_v46, %v3270_v61  ;;  %v3324_v45 = vadd.f32 %v3316_v38, %v6368_v42 }
0x1bdf   :  { %v4129_v31 = vpop.eup %4128  ;;  %v3319_v33 = vmul.f32 %v3311_v1, %v3272_v43  ;;  %v3325_v30 = vadd.f32 %v3317_v5, %v6364_v26 }
0x1be0   :  { %v4131_v3 = vpop.eup %4130  ;;  %v3304_v6 = vmul.f32 0.5, %v4129_v31  ;;  %v3326_v14 = vadd.f32 %v3318_v17, %v6362_v57  ;;  %v3332_v41 = vmul.f32 0.26593858, %v3324_v45 }
0x1be1   :  { %v4133_v55 = vpop.eup %4132  ;;  %v3305_v53 = vmul.f32 0.5, %v4131_v3  ;;  %v3327_v22 = vadd.f32 %v3319_v33, %v6366_v62  ;;  %v3333_v51 = vmul.f32 0.26593858, %v3325_v30 }
0x1be2   :  { %v4135_v52 = vpop.eup %4134  ;;  %v3312_v16 = vadd.f32 0.5, %v3304_v6  ;;  %v3306_v19 = vmul.f32 0.5, %v4133_v55  ;;  %v3334_v34 = vmul.f32 0.26593858, %v3326_v14 }
0x1be3   :  { %v3313_v11 = vadd.f32 0.5, %v3305_v53  ;;  %v3307_v58 = vmul.f32 0.5, %v4135_v52  ;;  %v3335_v57 = vmul.f32 0.26593858, %v3327_v22 }
0x1be4   :  { %v3320_v15 = vmul.f32 %v3312_v16, %v3276_v0  ;;  %v3314_v7 = vadd.f32 0.5, %v3306_v19 }
0x1be5   :  { %v3321_v2 = vmul.f32 %v3313_v11, %v3278_v10  ;;  %v3315_v13 = vadd.f32 0.5, %v3307_v58 }
0x1be6   :  { %v3328_v18 = vadd.f32 %v3320_v15, %v6383_v24  ;;  %v3322_v29 = vmul.f32 %v3314_v7, %v3280_v37 }
0x1be7   :  { %v3329_v61 = vadd.f32 %v3321_v2, %v6372_v4  ;;  %v3323_v44 = vmul.f32 %v3315_v13, %v3282_v50 }
0x1be8   :  { %v3336_v43 = vmul.f32 0.109504126, %v3328_v18  ;;  %v3330_v42 = vadd.f32 %v3322_v29, %v6380_v54  ;;  %v3491_v54 = vld [vmem:[%s6425_s8 + $0x9] ss:$0 sm:$0xff]  ;;  %s4522_s8 = scalar_lea.vmem %s3403_s15, 256 }
0x1be9   :  { %v3337_v21 = vmul.f32 0.109504126, %v3329_v61  ;;  %v3331_v26 = vadd.f32 %v3323_v44, %v6370_v9  ;;  %p4523_p8 = scmp.ne.s32.totalorder %s3403_s15, %s4522_s8  ;;  %p4528_p10 = scmp.lt.s32.totalorder %s4522_s8, %s4522_s8 }
0x1bea   :  { %v3340_v0 = vsub.f32 %v3332_v41, %v3336_v43  ;;  %v3338_v20 = vmul.f32 0.109504126, %v3330_v42 }
0x1beb   :  { %v3339_v10 = vmul.f32 0.109504126, %v3331_v26  ;;  %v3341_v24 = vsub.f32 %v3333_v51, %v3337_v21  ;;  %p4529_p11 = por %p4528_p10, %p4527_p9 }
0x1bec   :  { %v3342_v47 = vsub.f32 %v3334_v34, %v3338_v20 }
0x1bed   :  { %v3343_v48 = vsub.f32 %v3335_v57, %v3339_v10  ;;  %p4530_p12 = pnand %p4529_p11, %p4523_p8 }
0x1bee   :  { %v3344_v62 = vpack.c.bf16 %v3342_v47, %v3340_v0 }
0x1bef   :  { %v3345_v37 = vpack.c.bf16 %v3343_v48, %v3341_v24 }
0x1bf1   :  { %3382 = vmatprep.mubr.bf16.mxu0 %v3345_v37 }
0x1bf2   :  { %3383 = vmatmul.mubr.bf16.vlgmr.msra.gmra.mrb[76].mxu0 %v3344_v62 }
0x1cc5   :  { %v3706_v4 = vpop.f32.mrb[76].mxu0 }
0x1cc6   :  { %v3707_v63 = vpop.f32.mrb[77].mxu0 }
0x1cc7   :  { %v3708_v23 = vadd.f32 %v3707_v63, %v3706_v4  ;;  %v3709_v9 = vpop.f32.mrb[78].mxu0 }
0x1cc8   :  { %v3710_v50 = vpop.f32.mrb[79].mxu0 }
0x1cc9   :  { %v3385_v49 = vadd.f32 %v3708_v23, %v3491_v54  ;;  %v3711_v59 = vadd.f32 %v3710_v50, %v3709_v9 }
0x1ccb   :  { %v3391_v12 = vmul.f32 %v4344_v32, %v3385_v49  ;;  %v3388_v35 = vadd.f32 %v3711_v59, %v3491_v54 }
0x1ccd   :  { %v3392_v36 = vmul.f32 %v4345_v8, %v3388_v35  ;;  %v3393_v60 = vadd.f32 %v3391_v12, %v6345_v40 }
0x1ccf   :  { %v3394_v25 = vadd.f32 %v3392_v36, %v6348_v27  ;;  %3395 = vst [vmem:[#allocation16] sm:$0xff] %v3393_v60 }
0x1cd1   :  { %3396 = vst [vmem:[#allocation16 + $0x8] sm:$0xff] %v3394_v25 }
0x1cd2   :  { %4533 = shalt.err (!%p4530_p12)
}
0x1cd3   :  { %s4534_s2 = scalar_lea.hbm %s6426_s9, 256 }
0x1cd4   :  { %p4535_p13 = scmp.ne.s32.totalorder %s6426_s9, %s4534_s2  ;;  %p4538_p0 = scmp.lt.u32.totalorder %s4534_s2, %s6426_s9 }
0x1cd6   :  { %p4540_p1 = pnand %p4538_p0, %p4535_p13 }
0x1cd8   :  { %4543 = shalt.err (!%p4540_p1)
}
0x1cd9   :  { %3408 = dma.vmem_to_hbm [thread:$0]  %s3403_s15, 256, %s6426_s9, [#allocation4], %s4558_s21, %s4558_s21, %s4559_s22  }
0x1cda   :  { %4554 = dma.done.wait [#allocation4], 256  }
0x1cdb   :  { %4555 = vsyncadd [#allocation4], 4294967040 }
0x1cdc   :  { %3412 = vsyncpa [#allocation3], 1 }
0x1cdd   :  { %3413 = vsyncpa [#allocation6], 1 }
0x1cde   :  { %3414 = vsyncpa [#allocation9], 1 }
0x1cdf   :  { %3415 = vsyncpa [#allocation12], 1 }
0x1ce0   :  { %3416 = vsyncpa [#allocation15], 1 }
0x1ce1   :  { %3417 = vsyncpa [#allocation4], 1 }

</bundles_post_ra>
